<compile_context>
chip_gen: v6e
topology: v6e:2x2x1
jax: 0.10.0
libtpu: 0.0.40
codegen_flags: <defaults>
</compile_context>

<pallas_src>
import functools

import jax
import jax.numpy as jnp
from jax.experimental import pallas as pl
from jax.experimental.pallas import tpu as pltpu

EPS = 1e-5       # PyTorch BatchNorm2d default eps
LANE = 128       # TPU lane width: channel dims are padded to this
SUBLANE = 8      # sublane width: y1buf's second-to-last dim is padded to this


def _round_up(x, m):
    return (x + m - 1) // m * m


def _pad_last(a, size):
    return jnp.pad(a, [(0, 0)] * (a.ndim - 1) + [(0, size - a.shape[-1])])


# ------------------------------ in-kernel math -------------------------------

def _bn(acc, gamma, beta, *, relu):
    """Training-mode BatchNorm (batch stats), folded into one FMA per element.

    One-pass (sum, sum-of-squares) statistics in f32, then
    y = acc * scale + shift with scale = gamma*rsqrt(var+eps),
    shift = beta - mean*scale.
    """
    m = acc.shape[0]
    s = jnp.sum(acc, axis=0, keepdims=True)
    ss = jnp.sum(acc * acc, axis=0, keepdims=True)
    mean = s * (1.0 / m)
    var = jnp.maximum(ss * (1.0 / m) - mean * mean, 0.0)
    scale = gamma * jax.lax.rsqrt(var + EPS)          # rsqrt -> EUP (free slot)
    shift = beta - mean * scale
    y = acc * scale + shift                           # single FMA per element
    return jnp.maximum(y, 0.0) if relu else y


# ------------------------------- fused kernel --------------------------------

def _make_bottleneck_kernel(*, n, h, w, stride, downsampling):
    s = stride
    ho, wo = h // s, w // s            # 3x3 / stride-s / pad-1 output spatial dims
    ext = 2 // s                       # halo extent of the 3x3 read window
    lh = ho + ext                      # per-phase padded row extent
    lw = _round_up(wo + ext, SUBLANE)  # per-phase padded (sublane-aligned) cols
    mo = n * ho * wo

    def kernel(*refs):
        if downsampling:
            (x_ref, res_ref, w1_ref, g1_ref, b1_ref, w2_ref, g2_ref, b2_ref,
             w3_ref, g3_ref, b3_ref, wd_ref, gd_ref, bd_ref,
             o_ref, y1buf) = refs
        else:
            (x_ref, w1_ref, g1_ref, b1_ref, w2_ref, g2_ref, b2_ref,
             w3_ref, g3_ref, b3_ref,
             o_ref, y1buf) = refs

        c1p = y1buf.shape[-1]

        # -- stage 1: 1x1 conv (MXU matmul) + BN + ReLU ----------------------
        # rows of x are phase-major: (r, c, n, i, j) with (h, w) = (s*i+r, s*j+c)
        acc1 = jnp.dot(x_ref[...], w1_ref[...], preferred_element_type=jnp.float32)
        y1 = _bn(acc1, g1_ref[...], b1_ref[...], relu=True)

        # -- scatter y1 into the zero-padded, phase-decomposed buffer so every
        #    3x3 tap below is a static contiguous slice (stride 1 and 2 alike).
        #    Only the halo strips that the taps actually read are zeroed; the
        #    interior is fully overwritten by the scatter (no full memset).
        y1r = y1.reshape(s, s, n, ho, wo, c1p)
        for r in range(s):
            for c in range(s):
                rp, oh = (r + 1) % s, (r + 1) // s
                cp, ow = (c + 1) % s, (c + 1) // s
                p = rp * s + cp
                if oh > 0:      # top halo rows of the read window
                    y1buf[p, :, 0:oh, 0:wo + ext, :] = jnp.zeros(
                        (n, oh, wo + ext, c1p), y1buf.dtype)
                if oh < ext:    # bottom halo rows of the read window
                    y1buf[p, :, oh + ho:ho + ext, 0:wo + ext, :] = jnp.zeros(
                        (n, ext - oh, wo + ext, c1p), y1buf.dtype)
                if ow > 0:      # left halo cols
                    y1buf[p, :, oh:oh + ho, 0:ow, :] = jnp.zeros(
                        (n, ho, ow, c1p), y1buf.dtype)
                if ow < ext:    # right halo cols
                    y1buf[p, :, oh:oh + ho, ow + wo:wo + ext, :] = jnp.zeros(
                        (n, ho, ext - ow, c1p), y1buf.dtype)
                y1buf[p, :, oh:oh + ho, ow:ow + wo, :] = (
                    y1r[r, c].astype(y1buf.dtype))

        # -- stage 2: 3x3 conv as 9 accumulating K=C1 MXU matmuls + BN + ReLU
        #    (no im2col scratch: taps are read straight from y1buf).
        acc2 = None
        for t in range(9):
            dy, dx = t // 3, t % 3
            tap = y1buf[(dy % s) * s + (dx % s), :,
                        dy // s:dy // s + ho, dx // s:dx // s + wo, :]
            d = jnp.dot(tap.reshape(mo, c1p), w2_ref[t],
                        preferred_element_type=jnp.float32)
            acc2 = d if acc2 is None else acc2 + d
        y2 = _bn(acc2, g2_ref[...], b2_ref[...], relu=True)

        # -- stage 3: 1x1 conv + BN (ReLU applied after the residual add) ----
        acc3 = jnp.dot(y2.astype(w3_ref.dtype), w3_ref[...],
                       preferred_element_type=jnp.float32)
        y3 = _bn(acc3, g3_ref[...], b3_ref[...], relu=False)

        # -- residual branch: downsample 1x1 conv + BN, or identity ----------
        if downsampling:
            accd = jnp.dot(res_ref[...], wd_ref[...],
                           preferred_element_type=jnp.float32)
            resid = _bn(accd, gd_ref[...], bd_ref[...], relu=False)
        else:
            # stride == 1 ==> phase-major row order == natural row order, so
            # the (matmul_dtype) input doubles as the residual: no extra f32
            # copy of x is shipped to the kernel.
            resid = x_ref[...].astype(jnp.float32)

        o_ref[...] = jnp.maximum(y3 + resid, 0.0).astype(o_ref.dtype)

    return kernel, (lh, lw)


# ------------------------------- host wrapper ---------------------------------

def _prep_params(params, cin, c1, cout, downsampling, mdt):
    """Zero-pad channel dims to lane multiples; keep the 9 taps of w2 stacked."""
    cinp, c1p, coutp = (_round_up(c, LANE) for c in (cin, c1, cout))
    w1 = jnp.zeros((cinp, c1p), jnp.float32).at[:cin, :c1].set(params["w1"]).astype(mdt)
    w2 = jnp.zeros((9, c1p, c1p), jnp.float32).at[:, :c1, :c1].set(params["w2"]).astype(mdt)
    w3 = jnp.zeros((c1p, coutp), jnp.float32).at[:c1, :cout].set(params["w3"]).astype(mdt)
    out = [w1, _pad_last(params["g1"], c1p), _pad_last(params["b1"], c1p),
           w2, _pad_last(params["g2"], c1p), _pad_last(params["b2"], c1p),
           w3, _pad_last(params["g3"], coutp), _pad_last(params["b3"], coutp)]
    if downsampling:
        wd = jnp.zeros((cinp, coutp), jnp.float32).at[:cin, :cout].set(params["wd"]).astype(mdt)
        out += [wd, _pad_last(params["gd"], coutp), _pad_last(params["bd"], coutp)]
    return out


def _vmem_limit_bytes(estimate):
    """Per-call VMEM budget derived from actual buffer sizes (capped by HW)."""
    cap = 64 * 1024 * 1024
    try:
        cap = int(getattr(pltpu.get_tpu_info(), "vmem_capacity_bytes", cap))
    except Exception:
        pass
    want = max(2 * int(estimate) + (4 << 20), 32 << 20)
    return int(min(want, cap - (4 << 20)))


@functools.partial(jax.jit, static_argnames=("stride", "downsampling",
                                             "matmul_dtype", "output_layout"))
def bottleneck_forward(x_nchw, params, *, stride=1, downsampling=False,
                       matmul_dtype=jnp.bfloat16, output_layout="nchw"):
    """Pallas implementation of Bottleneck.forward (training-mode BatchNorm)."""
    n, cin, h, w = x_nchw.shape
    c1 = params["w1"].shape[1]
    cout = params["w3"].shape[1]
    s = stride
    assert h % s == 0 and w % s == 0
    cinp, c1p, coutp = (_round_up(c, LANE) for c in (cin, c1, cout))
    ho, wo = h // s, w // s
    m, mo = n * h * w, n * ho * wo

    # NCHW -> NHWC, zero-pad channels to a lane multiple, phase-major rows.
    # TODO(synk): in a full network this layout conversion happens once at the
    #   stem; blocks chain in padded-channel NHWC (output_layout="padded_2d")
    #   so no per-block host-side transpose / unpad passes are paid.
    xh = _pad_last(jnp.transpose(x_nchw, (0, 2, 3, 1)), cinp)
    x2d = (xh.reshape(n, ho, s, wo, s, cinp)
             .transpose(2, 4, 0, 1, 3, 5)
             .reshape(m, cinp).astype(matmul_dtype))

    args = [x2d]
    if downsampling:
        args.append(xh[:, ::s, ::s, :].reshape(mo, cinp).astype(matmul_dtype))
    else:
        if s != 1 or cin != cout:
            raise ValueError("identity residual requires stride == 1 and cin == cout")
        # identity residual reuses x2d inside the kernel; no extra input.
    args += _prep_params(params, cin, c1, cout, downsampling, matmul_dtype)

    kernel, (lh, lw) = _make_bottleneck_kernel(
        n=n, h=h, w=w, stride=s, downsampling=downsampling)

    mdt_bytes = jnp.dtype(matmul_dtype).itemsize
    y1buf_bytes = s * s * n * lh * lw * c1p * mdt_bytes
    io_bytes = sum(int(a.size) * a.dtype.itemsize for a in args) + mo * coutp * mdt_bytes
    f32_tmp_bytes = (2 * m * c1p + 2 * mo * c1p + 3 * mo * coutp) * 4
    vmem_limit = _vmem_limit_bytes(y1buf_bytes + io_bytes + f32_tmp_bytes)

    vmem = pl.BlockSpec(memory_space=pltpu.MemorySpace.VMEM)
    out2d = pl.pallas_call(
        kernel,
        out_shape=jax.ShapeDtypeStruct((mo, coutp), matmul_dtype),
        in_specs=[vmem] * len(args),
        out_specs=vmem,
        scratch_shapes=[
            pltpu.VMEM((s * s, n, lh, lw, c1p), matmul_dtype),  # padded stage-1 output
        ],
        compiler_params=pltpu.CompilerParams(vmem_limit_bytes=vmem_limit),
    )(*args)

    if output_layout == "padded_2d":
        return out2d                      # (N*Ho*Wo, Cout_padded), NHWC row order
    out = out2d[:, :cout].astype(jnp.float32).reshape(n, ho, wo, cout)
    return jnp.transpose(out, (0, 3, 1, 2))                     # back to NCHW


# ----------------------------- pure-JAX reference -----------------------------

def _extract_3x3_patches(x_nhwc, stride):
    n, h, w, c = x_nhwc.shape
    ho = (h - 1) // stride + 1
    wo = (w - 1) // stride + 1
    xp = jnp.pad(x_nhwc, ((0, 0), (1, 1), (1, 1), (0, 0)))
    taps = []
    for dy in range(3):
        for dx in range(3):
            sl = xp[:, dy:dy + (ho - 1) * stride + 1:stride,
                       dx:dx + (wo - 1) * stride + 1:stride, :]
            taps.append(sl.reshape(n * ho * wo, c))
    return jnp.stack(taps, axis=0), ho, wo


def _bn_ref(x2d, g, b):
    mean = jnp.mean(x2d, axis=0, keepdims=True)
    var = jnp.mean(jnp.square(x2d - mean), axis=0, keepdims=True)
    return (x2d - mean) * jax.lax.rsqrt(var + EPS) * g + b


def bottleneck_ref(x_nchw, params, *, stride=1, downsampling=False):
    n, cin, h, w = x_nchw.shape
    xh = jnp.transpose(x_nchw, (0, 2, 3, 1))
    c1 = params["w1"].shape[1]
    dot = functools.partial(jnp.dot, precision=jax.lax.Precision.HIGHEST)

    y1 = jnp.maximum(_bn_ref(dot(xh.reshape(-1, cin), params["w1"]),
                             params["g1"], params["b1"]), 0.0).reshape(n, h, w, c1)
    patches, ho, wo = _extract_3x3_patches(y1, stride)
    acc = sum(dot(patches[t], params["w2"][t]) for t in range(9))
    y2 = jnp.maximum(_bn_ref(acc, params["g2"], params["b2"]), 0.0)
    if downsampling:
        xd = xh[:, ::stride, ::stride, :].reshape(-1, cin)
        res = _bn_ref(dot(xd, params["wd"]), params["gd"], params["bd"])
    else:
        res = xh.reshape(-1, cin)
    y3 = jnp.maximum(_bn_ref(dot(y2, params["w3"]), params["g3"], params["b3"]) + res, 0.0)
    cout = params["w3"].shape[1]
    return jnp.transpose(y3.reshape(n, ho, wo, cout), (0, 3, 1, 2))


# ------------------------------- parameter init --------------------------------

def init_params(key, in_places, places, expansion, downsampling):
    ks = jax.random.split(key, 12)
    cout = places * expansion
    p = {
        "w1": 0.1 * jax.random.normal(ks[0], (in_places, places), jnp.float32),
        "g1": 1.0 + 0.1 * jax.random.normal(ks[1], (1, places), jnp.float32),
        "b1": 0.1 * jax.random.normal(ks[2], (1, places), jnp.float32),
        "w2": 0.1 * jax.random.normal(ks[3], (9, places, places), jnp.float32),
        "g2": 1.0 + 0.1 * jax.random.normal(ks[4], (1, places), jnp.float32),
        "b2": 0.1 * jax.random.normal(ks[5], (1, places), jnp.float32),
        "w3": 0.1 * jax.random.normal(ks[6], (places, cout), jnp.float32),
        "g3": 1.0 + 0.1 * jax.random.normal(ks[7], (1, cout), jnp.float32),
        "b3": 0.1 * jax.random.normal(ks[8], (1, cout), jnp.float32),
    }
    if downsampling:
        p["wd"] = 0.1 * jax.random.normal(ks[9], (in_places, cout), jnp.float32)
        p["gd"] = 1.0 + 0.1 * jax.random.normal(ks[10], (1, cout), jnp.float32)
        p["bd"] = 0.1 * jax.random.normal(ks[11], (1, cout), jnp.float32)
    return p


if __name__ == "__main__":
    key = jax.random.PRNGKey(0)

    configs = [
        # (n, in_places, h, w, places, expansion, stride, downsampling)
        (2, 8, 16, 16, 4, 4, 2, True),    # projection shortcut, stride 2
        (2, 16, 8, 8, 4, 4, 1, False),    # identity shortcut, stride 1
    ]
    for cfg_i, (n, in_places, h, w, places, expansion, stride, downsampling) in enumerate(configs):
        kx, kp = jax.random.split(jax.random.fold_in(key, cfg_i))
        x = jax.random.normal(kx, (n, in_places, h, w), jnp.float32)
        params = init_params(kp, in_places, places, expansion, downsampling)
        ref = bottleneck_ref(x, params, stride=stride, downsampling=downsampling)

        # f32 matmuls: tight absolute tolerance.  bf16 matmuls / IO (the
        # v6e/v7x performance configuration, f32 accumulate + f32 BN math):
        # looser mixed tolerance -- the toy config has only `places`=4
        # effective channels, so BatchNorm normalization amplifies bf16
        # rounding error; the output and identity residual are also bf16.
        for mdt, atol, rtol in ((jnp.float32, 5e-2, 0.0), (jnp.bfloat16, 1e-1, 1e-1)):
            out = bottleneck_forward(x, params, stride=stride,
                                     downsampling=downsampling, matmul_dtype=mdt)
            out = jax.block_until_ready(out)
            assert out.shape == (n, places * expansion, h // stride, w // stride), out.shape
            excess = float(jnp.max(jnp.abs(out - ref) - rtol * jnp.abs(ref)))
            if excess > atol:
                raise AssertionError(
                    f"Pallas mismatch (cfg {cfg_i}, dtype {mdt.__name__}): "
                    f"excess err {excess:.4f} > atol {atol}")

    print("KERNEL_OK")
</pallas_src>

<mosaic_0001>
module attributes {stable_mosaic.version = 11 : i64} {
  func.func @kernel(%arg0: memref<512x128xf32, #tpu.memory_space<vmem>>, %arg1: memref<128x128xf32, #tpu.memory_space<vmem>>, %arg2: memref<128x128xf32, #tpu.memory_space<vmem>>, %arg3: memref<1x128xf32, #tpu.memory_space<vmem>>, %arg4: memref<1x128xf32, #tpu.memory_space<vmem>>, %arg5: memref<9x128x128xf32, #tpu.memory_space<vmem>>, %arg6: memref<1x128xf32, #tpu.memory_space<vmem>>, %arg7: memref<1x128xf32, #tpu.memory_space<vmem>>, %arg8: memref<128x128xf32, #tpu.memory_space<vmem>>, %arg9: memref<1x128xf32, #tpu.memory_space<vmem>>, %arg10: memref<1x128xf32, #tpu.memory_space<vmem>>, %arg11: memref<128x128xf32, #tpu.memory_space<vmem>>, %arg12: memref<1x128xf32, #tpu.memory_space<vmem>>, %arg13: memref<1x128xf32, #tpu.memory_space<vmem>>, %arg14: memref<128x128xf32, #tpu.memory_space<vmem>>, %arg15: memref<4x2x9x16x128xf32, #tpu.memory_space<vmem>>) attributes {dimension_semantics = [], scalar_prefetch = 0 : i64, scratch_operands = 1 : i64, tpu.core_type = #tpu.core_type<tc>} {
    %c0 = arith.constant 0 : index
    %c0_0 = arith.constant 0 : index
    %0 = vector.load %arg0[%c0, %c0_0] : memref<512x128xf32, #tpu.memory_space<vmem>>, vector<512x128xf32>
    %c0_1 = arith.constant 0 : index
    %c0_2 = arith.constant 0 : index
    %1 = vector.load %arg2[%c0_1, %c0_2] : memref<128x128xf32, #tpu.memory_space<vmem>>, vector<128x128xf32>
    %cst = arith.constant dense<0.000000e+00> : vector<512x128xf32>
    %2 = tpu.matmul %0, %1, %cst {dimension_numbers = #tpu.dot_dimension_numbers<[1], [0], [0], [1], [0, 0, 1, 1], [], []>} : vector<512x128xf32>, vector<128x128xf32>, vector<512x128xf32> -> vector<512x128xf32>
    %c0_3 = arith.constant 0 : index
    %c0_4 = arith.constant 0 : index
    %3 = vector.load %arg3[%c0_3, %c0_4] : memref<1x128xf32, #tpu.memory_space<vmem>>, vector<1x128xf32>
    %c0_5 = arith.constant 0 : index
    %c0_6 = arith.constant 0 : index
    %4 = vector.load %arg4[%c0_5, %c0_6] : memref<1x128xf32, #tpu.memory_space<vmem>>, vector<1x128xf32>
    %cst_7 = arith.constant dense<0.000000e+00> : vector<128xf32>
    %5 = vector.multi_reduction <add>, %2, %cst_7 [0] : vector<512x128xf32> to vector<128xf32>
    %6 = vector.shape_cast %5 : vector<128xf32> to vector<1x128xf32>
    %7 = arith.mulf %2, %2 : vector<512x128xf32>
    %cst_8 = arith.constant dense<0.000000e+00> : vector<128xf32>
    %8 = vector.multi_reduction <add>, %7, %cst_8 [0] : vector<512x128xf32> to vector<128xf32>
    %9 = vector.shape_cast %8 : vector<128xf32> to vector<1x128xf32>
    %cst_9 = arith.constant 0.001953125 : f32
    %10 = vector.broadcast %cst_9 : f32 to vector<1x128xf32>
    %11 = arith.mulf %6, %10 : vector<1x128xf32>
    %cst_10 = arith.constant 0.001953125 : f32
    %12 = vector.broadcast %cst_10 : f32 to vector<1x128xf32>
    %13 = arith.mulf %9, %12 : vector<1x128xf32>
    %14 = arith.mulf %11, %11 : vector<1x128xf32>
    %15 = arith.subf %13, %14 : vector<1x128xf32>
    %cst_11 = arith.constant 0.000000e+00 : f32
    %16 = vector.broadcast %cst_11 : f32 to vector<1x128xf32>
    %17 = arith.maximumf %15, %16 : vector<1x128xf32>
    %cst_12 = arith.constant 9.99999974E-6 : f32
    %18 = vector.broadcast %cst_12 : f32 to vector<1x128xf32>
    %19 = arith.addf %17, %18 : vector<1x128xf32>
    %20 = math.rsqrt %19 : vector<1x128xf32>
    %21 = arith.mulf %3, %20 : vector<1x128xf32>
    %22 = arith.mulf %11, %21 : vector<1x128xf32>
    %23 = arith.subf %4, %22 : vector<1x128xf32>
    %24 = vector.broadcast %21 : vector<1x128xf32> to vector<512x128xf32>
    %25 = arith.mulf %2, %24 : vector<512x128xf32>
    %26 = vector.broadcast %23 : vector<1x128xf32> to vector<512x128xf32>
    %27 = arith.addf %25, %26 : vector<512x128xf32>
    %cst_13 = arith.constant 0.000000e+00 : f32
    %28 = vector.broadcast %cst_13 : f32 to vector<512x128xf32>
    %29 = arith.maximumf %27, %28 : vector<512x128xf32>
    %30 = vector.shape_cast %29 : vector<512x128xf32> to vector<2x2x2x8x8x128xf32>
    %cst_14 = arith.constant 0.000000e+00 : f32
    %31 = vector.broadcast %cst_14 : f32 to vector<2x1x9x128xf32>
    %c3 = arith.constant 3 : index
    %c0_15 = arith.constant 0 : index
    %c8 = arith.constant 8 : index
    %c0_16 = arith.constant 0 : index
    %c0_17 = arith.constant 0 : index
    %32 = vector.load %arg15[%c3, %c0_15, %c8, %c0_16, %c0_17] : memref<4x2x9x16x128xf32, #tpu.memory_space<vmem>>, vector<1x2x1x9x128xf32>
    %33 = vector.shape_cast %32 : vector<1x2x1x9x128xf32> to vector<2x1x9x128xf32>
    %34 = vector.shape_cast %31 : vector<2x1x9x128xf32> to vector<1x2x1x9x128xf32>
    tpu.vector_store %arg15[%c3, %c0_15, %c8, %c0_16, %c0_17], %34 {strides = array<i32>} : memref<4x2x9x16x128xf32, #tpu.memory_space<vmem>>, vector<1x2x1x9x128xf32>,
    %cst_18 = arith.constant 0.000000e+00 : f32
    %35 = vector.broadcast %cst_18 : f32 to vector<2x8x1x128xf32>
    %c3_19 = arith.constant 3 : index
    %c0_20 = arith.constant 0 : index
    %c0_21 = arith.constant 0 : index
    %c8_22 = arith.constant 8 : index
    %c0_23 = arith.constant 0 : index
    %36 = vector.load %arg15[%c3_19, %c0_20, %c0_21, %c8_22, %c0_23] : memref<4x2x9x16x128xf32, #tpu.memory_space<vmem>>, vector<1x2x8x1x128xf32>
    %37 = vector.shape_cast %36 : vector<1x2x8x1x128xf32> to vector<2x8x1x128xf32>
    %38 = vector.shape_cast %35 : vector<2x8x1x128xf32> to vector<1x2x8x1x128xf32>
    tpu.vector_store %arg15[%c3_19, %c0_20, %c0_21, %c8_22, %c0_23], %38 {strides = array<i32>} : memref<4x2x9x16x128xf32, #tpu.memory_space<vmem>>, vector<1x2x8x1x128xf32>,
    %39 = vector.extract_strided_slice %30 {offsets = [0, 0, 0, 0, 0, 0], sizes = [1, 1, 2, 8, 8, 128], strides = [1, 1, 1, 1, 1, 1]} : vector<2x2x2x8x8x128xf32> to vector<1x1x2x8x8x128xf32>
    %40 = vector.shape_cast %39 : vector<1x1x2x8x8x128xf32> to vector<2x8x8x128xf32>
    %c3_24 = arith.constant 3 : index
    %c0_25 = arith.constant 0 : index
    %c0_26 = arith.constant 0 : index
    %c0_27 = arith.constant 0 : index
    %c0_28 = arith.constant 0 : index
    %41 = vector.load %arg15[%c3_24, %c0_25, %c0_26, %c0_27, %c0_28] : memref<4x2x9x16x128xf32, #tpu.memory_space<vmem>>, vector<1x2x8x8x128xf32>
    %42 = vector.shape_cast %41 : vector<1x2x8x8x128xf32> to vector<2x8x8x128xf32>
    %43 = vector.shape_cast %40 : vector<2x8x8x128xf32> to vector<1x2x8x8x128xf32>
    tpu.vector_store %arg15[%c3_24, %c0_25, %c0_26, %c0_27, %c0_28], %43 {strides = array<i32>} : memref<4x2x9x16x128xf32, #tpu.memory_space<vmem>>, vector<1x2x8x8x128xf32>,
    %cst_29 = arith.constant 0.000000e+00 : f32
    %44 = vector.broadcast %cst_29 : f32 to vector<2x1x9x128xf32>
    %c2 = arith.constant 2 : index
    %c0_30 = arith.constant 0 : index
    %c8_31 = arith.constant 8 : index
    %c0_32 = arith.constant 0 : index
    %c0_33 = arith.constant 0 : index
    %45 = vector.load %arg15[%c2, %c0_30, %c8_31, %c0_32, %c0_33] : memref<4x2x9x16x128xf32, #tpu.memory_space<vmem>>, vector<1x2x1x9x128xf32>
    %46 = vector.shape_cast %45 : vector<1x2x1x9x128xf32> to vector<2x1x9x128xf32>
    %47 = vector.shape_cast %44 : vector<2x1x9x128xf32> to vector<1x2x1x9x128xf32>
    tpu.vector_store %arg15[%c2, %c0_30, %c8_31, %c0_32, %c0_33], %47 {strides = array<i32>} : memref<4x2x9x16x128xf32, #tpu.memory_space<vmem>>, vector<1x2x1x9x128xf32>,
    %cst_34 = arith.constant 0.000000e+00 : f32
    %48 = vector.broadcast %cst_34 : f32 to vector<2x8x1x128xf32>
    %c2_35 = arith.constant 2 : index
    %c0_36 = arith.constant 0 : index
    %c0_37 = arith.constant 0 : index
    %c0_38 = arith.constant 0 : index
    %c0_39 = arith.constant 0 : index
    %49 = vector.load %arg15[%c2_35, %c0_36, %c0_37, %c0_38, %c0_39] : memref<4x2x9x16x128xf32, #tpu.memory_space<vmem>>, vector<1x2x8x1x128xf32>
    %50 = vector.shape_cast %49 : vector<1x2x8x1x128xf32> to vector<2x8x1x128xf32>
    %51 = vector.shape_cast %48 : vector<2x8x1x128xf32> to vector<1x2x8x1x128xf32>
    tpu.vector_store %arg15[%c2_35, %c0_36, %c0_37, %c0_38, %c0_39], %51 {strides = array<i32>} : memref<4x2x9x16x128xf32, #tpu.memory_space<vmem>>, vector<1x2x8x1x128xf32>,
    %52 = vector.extract_strided_slice %30 {offsets = [0, 1, 0, 0, 0, 0], sizes = [1, 1, 2, 8, 8, 128], strides = [1, 1, 1, 1, 1, 1]} : vector<2x2x2x8x8x128xf32> to vector<1x1x2x8x8x128xf32>
    %53 = vector.shape_cast %52 : vector<1x1x2x8x8x128xf32> to vector<2x8x8x128xf32>
    %c2_40 = arith.constant 2 : index
    %c0_41 = arith.constant 0 : index
    %c0_42 = arith.constant 0 : index
    %c1 = arith.constant 1 : index
    %c0_43 = arith.constant 0 : index
    %54 = vector.load %arg15[%c2_40, %c0_41, %c0_42, %c1, %c0_43] : memref<4x2x9x16x128xf32, #tpu.memory_space<vmem>>, vector<1x2x8x8x128xf32>
    %55 = vector.shape_cast %54 : vector<1x2x8x8x128xf32> to vector<2x8x8x128xf32>
    %56 = vector.shape_cast %53 : vector<2x8x8x128xf32> to vector<1x2x8x8x128xf32>
    tpu.vector_store %arg15[%c2_40, %c0_41, %c0_42, %c1, %c0_43], %56 {strides = array<i32>} : memref<4x2x9x16x128xf32, #tpu.memory_space<vmem>>, vector<1x2x8x8x128xf32>,
    %cst_44 = arith.constant 0.000000e+00 : f32
    %57 = vector.broadcast %cst_44 : f32 to vector<2x1x9x128xf32>
    %c1_45 = arith.constant 1 : index
    %c0_46 = arith.constant 0 : index
    %c0_47 = arith.constant 0 : index
    %c0_48 = arith.constant 0 : index
    %c0_49 = arith.constant 0 : index
    %58 = vector.load %arg15[%c1_45, %c0_46, %c0_47, %c0_48, %c0_49] : memref<4x2x9x16x128xf32, #tpu.memory_space<vmem>>, vector<1x2x1x9x128xf32>
    %59 = vector.shape_cast %58 : vector<1x2x1x9x128xf32> to vector<2x1x9x128xf32>
    %60 = vector.shape_cast %57 : vector<2x1x9x128xf32> to vector<1x2x1x9x128xf32>
    tpu.vector_store %arg15[%c1_45, %c0_46, %c0_47, %c0_48, %c0_49], %60 {strides = array<i32>} : memref<4x2x9x16x128xf32, #tpu.memory_space<vmem>>, vector<1x2x1x9x128xf32>,
    %cst_50 = arith.constant 0.000000e+00 : f32
    %61 = vector.broadcast %cst_50 : f32 to vector<2x8x1x128xf32>
    %c1_51 = arith.constant 1 : index
    %c0_52 = arith.constant 0 : index
    %c1_53 = arith.constant 1 : index
    %c8_54 = arith.constant 8 : index
    %c0_55 = arith.constant 0 : index
    %62 = vector.load %arg15[%c1_51, %c0_52, %c1_53, %c8_54, %c0_55] : memref<4x2x9x16x128xf32, #tpu.memory_space<vmem>>, vector<1x2x8x1x128xf32>
    %63 = vector.shape_cast %62 : vector<1x2x8x1x128xf32> to vector<2x8x1x128xf32>
    %64 = vector.shape_cast %61 : vector<2x8x1x128xf32> to vector<1x2x8x1x128xf32>
    tpu.vector_store %arg15[%c1_51, %c0_52, %c1_53, %c8_54, %c0_55], %64 {strides = array<i32>} : memref<4x2x9x16x128xf32, #tpu.memory_space<vmem>>, vector<1x2x8x1x128xf32>,
    %65 = vector.extract_strided_slice %30 {offsets = [1, 0, 0, 0, 0, 0], sizes = [1, 1, 2, 8, 8, 128], strides = [1, 1, 1, 1, 1, 1]} : vector<2x2x2x8x8x128xf32> to vector<1x1x2x8x8x128xf32>
    %66 = vector.shape_cast %65 : vector<1x1x2x8x8x128xf32> to vector<2x8x8x128xf32>
    %c1_56 = arith.constant 1 : index
    %c0_57 = arith.constant 0 : index
    %c1_58 = arith.constant 1 : index
    %c0_59 = arith.constant 0 : index
    %c0_60 = arith.constant 0 : index
    %67 = vector.load %arg15[%c1_56, %c0_57, %c1_58, %c0_59, %c0_60] : memref<4x2x9x16x128xf32, #tpu.memory_space<vmem>>, vector<1x2x8x8x128xf32>
    %68 = vector.shape_cast %67 : vector<1x2x8x8x128xf32> to vector<2x8x8x128xf32>
    %69 = vector.shape_cast %66 : vector<2x8x8x128xf32> to vector<1x2x8x8x128xf32>
    tpu.vector_store %arg15[%c1_56, %c0_57, %c1_58, %c0_59, %c0_60], %69 {strides = array<i32>} : memref<4x2x9x16x128xf32, #tpu.memory_space<vmem>>, vector<1x2x8x8x128xf32>,
    %cst_61 = arith.constant 0.000000e+00 : f32
    %70 = vector.broadcast %cst_61 : f32 to vector<2x1x9x128xf32>
    %c0_62 = arith.constant 0 : index
    %c0_63 = arith.constant 0 : index
    %c0_64 = arith.constant 0 : index
    %c0_65 = arith.constant 0 : index
    %c0_66 = arith.constant 0 : index
    %71 = vector.load %arg15[%c0_62, %c0_63, %c0_64, %c0_65, %c0_66] : memref<4x2x9x16x128xf32, #tpu.memory_space<vmem>>, vector<1x2x1x9x128xf32>
    %72 = vector.shape_cast %71 : vector<1x2x1x9x128xf32> to vector<2x1x9x128xf32>
    %73 = vector.shape_cast %70 : vector<2x1x9x128xf32> to vector<1x2x1x9x128xf32>
    tpu.vector_store %arg15[%c0_62, %c0_63, %c0_64, %c0_65, %c0_66], %73 {strides = array<i32>} : memref<4x2x9x16x128xf32, #tpu.memory_space<vmem>>, vector<1x2x1x9x128xf32>,
    %cst_67 = arith.constant 0.000000e+00 : f32
    %74 = vector.broadcast %cst_67 : f32 to vector<2x8x1x128xf32>
    %c0_68 = arith.constant 0 : index
    %c0_69 = arith.constant 0 : index
    %c1_70 = arith.constant 1 : index
    %c0_71 = arith.constant 0 : index
    %c0_72 = arith.constant 0 : index
    %75 = vector.load %arg15[%c0_68, %c0_69, %c1_70, %c0_71, %c0_72] : memref<4x2x9x16x128xf32, #tpu.memory_space<vmem>>, vector<1x2x8x1x128xf32>
    %76 = vector.shape_cast %75 : vector<1x2x8x1x128xf32> to vector<2x8x1x128xf32>
    %77 = vector.shape_cast %74 : vector<2x8x1x128xf32> to vector<1x2x8x1x128xf32>
    tpu.vector_store %arg15[%c0_68, %c0_69, %c1_70, %c0_71, %c0_72], %77 {strides = array<i32>} : memref<4x2x9x16x128xf32, #tpu.memory_space<vmem>>, vector<1x2x8x1x128xf32>,
    %78 = vector.extract_strided_slice %30 {offsets = [1, 1, 0, 0, 0, 0], sizes = [1, 1, 2, 8, 8, 128], strides = [1, 1, 1, 1, 1, 1]} : vector<2x2x2x8x8x128xf32> to vector<1x1x2x8x8x128xf32>
    %79 = vector.shape_cast %78 : vector<1x1x2x8x8x128xf32> to vector<2x8x8x128xf32>
    %c0_73 = arith.constant 0 : index
    %c0_74 = arith.constant 0 : index
    %c1_75 = arith.constant 1 : index
    %c1_76 = arith.constant 1 : index
    %c0_77 = arith.constant 0 : index
    %80 = vector.load %arg15[%c0_73, %c0_74, %c1_75, %c1_76, %c0_77] : memref<4x2x9x16x128xf32, #tpu.memory_space<vmem>>, vector<1x2x8x8x128xf32>
    %81 = vector.shape_cast %80 : vector<1x2x8x8x128xf32> to vector<2x8x8x128xf32>
    %82 = vector.shape_cast %79 : vector<2x8x8x128xf32> to vector<1x2x8x8x128xf32>
    tpu.vector_store %arg15[%c0_73, %c0_74, %c1_75, %c1_76, %c0_77], %82 {strides = array<i32>} : memref<4x2x9x16x128xf32, #tpu.memory_space<vmem>>, vector<1x2x8x8x128xf32>,
    %c0_78 = arith.constant 0 : index
    %c0_79 = arith.constant 0 : index
    %c0_80 = arith.constant 0 : index
    %c0_81 = arith.constant 0 : index
    %c0_82 = arith.constant 0 : index
    %83 = vector.load %arg15[%c0_78, %c0_79, %c0_80, %c0_81, %c0_82] : memref<4x2x9x16x128xf32, #tpu.memory_space<vmem>>, vector<1x2x8x8x128xf32>
    %84 = vector.shape_cast %83 : vector<1x2x8x8x128xf32> to vector<2x8x8x128xf32>
    %85 = vector.shape_cast %84 : vector<2x8x8x128xf32> to vector<128x128xf32>
    %c0_83 = arith.constant 0 : index
    %c0_84 = arith.constant 0 : index
    %c0_85 = arith.constant 0 : index
    %86 = vector.load %arg5[%c0_83, %c0_84, %c0_85] : memref<9x128x128xf32, #tpu.memory_space<vmem>>, vector<1x128x128xf32>
    %87 = vector.shape_cast %86 : vector<1x128x128xf32> to vector<128x128xf32>
    %cst_86 = arith.constant dense<0.000000e+00> : vector<128x128xf32>
    %88 = tpu.matmul %85, %87, %cst_86 {dimension_numbers = #tpu.dot_dimension_numbers<[1], [0], [0], [1], [0, 0, 1, 1], [], []>} : vector<128x128xf32>, vector<128x128xf32>, vector<128x128xf32> -> vector<128x128xf32>
    %c1_87 = arith.constant 1 : index
    %c0_88 = arith.constant 0 : index
    %c0_89 = arith.constant 0 : index
    %c0_90 = arith.constant 0 : index
    %c0_91 = arith.constant 0 : index
    %89 = vector.load %arg15[%c1_87, %c0_88, %c0_89, %c0_90, %c0_91] : memref<4x2x9x16x128xf32, #tpu.memory_space<vmem>>, vector<1x2x8x8x128xf32>
    %90 = vector.shape_cast %89 : vector<1x2x8x8x128xf32> to vector<2x8x8x128xf32>
    %91 = vector.shape_cast %90 : vector<2x8x8x128xf32> to vector<128x128xf32>
    %c1_92 = arith.constant 1 : index
    %c0_93 = arith.constant 0 : index
    %c0_94 = arith.constant 0 : index
    %92 = vector.load %arg5[%c1_92, %c0_93, %c0_94] : memref<9x128x128xf32, #tpu.memory_space<vmem>>, vector<1x128x128xf32>
    %93 = vector.shape_cast %92 : vector<1x128x128xf32> to vector<128x128xf32>
    %cst_95 = arith.constant dense<0.000000e+00> : vector<128x128xf32>
    %94 = tpu.matmul %91, %93, %cst_95 {dimension_numbers = #tpu.dot_dimension_numbers<[1], [0], [0], [1], [0, 0, 1, 1], [], []>} : vector<128x128xf32>, vector<128x128xf32>, vector<128x128xf32> -> vector<128x128xf32>
    %95 = arith.addf %88, %94 : vector<128x128xf32>
    %c0_96 = arith.constant 0 : index
    %c0_97 = arith.constant 0 : index
    %c0_98 = arith.constant 0 : index
    %c1_99 = arith.constant 1 : index
    %c0_100 = arith.constant 0 : index
    %96 = vector.load %arg15[%c0_96, %c0_97, %c0_98, %c1_99, %c0_100] : memref<4x2x9x16x128xf32, #tpu.memory_space<vmem>>, vector<1x2x8x8x128xf32>
    %97 = vector.shape_cast %96 : vector<1x2x8x8x128xf32> to vector<2x8x8x128xf32>
    %98 = vector.shape_cast %97 : vector<2x8x8x128xf32> to vector<128x128xf32>
    %c2_101 = arith.constant 2 : index
    %c0_102 = arith.constant 0 : index
    %c0_103 = arith.constant 0 : index
    %99 = vector.load %arg5[%c2_101, %c0_102, %c0_103] : memref<9x128x128xf32, #tpu.memory_space<vmem>>, vector<1x128x128xf32>
    %100 = vector.shape_cast %99 : vector<1x128x128xf32> to vector<128x128xf32>
    %cst_104 = arith.constant dense<0.000000e+00> : vector<128x128xf32>
    %101 = tpu.matmul %98, %100, %cst_104 {dimension_numbers = #tpu.dot_dimension_numbers<[1], [0], [0], [1], [0, 0, 1, 1], [], []>} : vector<128x128xf32>, vector<128x128xf32>, vector<128x128xf32> -> vector<128x128xf32>
    %102 = arith.addf %95, %101 : vector<128x128xf32>
    %c2_105 = arith.constant 2 : index
    %c0_106 = arith.constant 0 : index
    %c0_107 = arith.constant 0 : index
    %c0_108 = arith.constant 0 : index
    %c0_109 = arith.constant 0 : index
    %103 = vector.load %arg15[%c2_105, %c0_106, %c0_107, %c0_108, %c0_109] : memref<4x2x9x16x128xf32, #tpu.memory_space<vmem>>, vector<1x2x8x8x128xf32>
    %104 = vector.shape_cast %103 : vector<1x2x8x8x128xf32> to vector<2x8x8x128xf32>
    %105 = vector.shape_cast %104 : vector<2x8x8x128xf32> to vector<128x128xf32>
    %c3_110 = arith.constant 3 : index
    %c0_111 = arith.constant 0 : index
    %c0_112 = arith.constant 0 : index
    %106 = vector.load %arg5[%c3_110, %c0_111, %c0_112] : memref<9x128x128xf32, #tpu.memory_space<vmem>>, vector<1x128x128xf32>
    %107 = vector.shape_cast %106 : vector<1x128x128xf32> to vector<128x128xf32>
    %cst_113 = arith.constant dense<0.000000e+00> : vector<128x128xf32>
    %108 = tpu.matmul %105, %107, %cst_113 {dimension_numbers = #tpu.dot_dimension_numbers<[1], [0], [0], [1], [0, 0, 1, 1], [], []>} : vector<128x128xf32>, vector<128x128xf32>, vector<128x128xf32> -> vector<128x128xf32>
    %109 = arith.addf %102, %108 : vector<128x128xf32>
    %c3_114 = arith.constant 3 : index
    %c0_115 = arith.constant 0 : index
    %c0_116 = arith.constant 0 : index
    %c0_117 = arith.constant 0 : index
    %c0_118 = arith.constant 0 : index
    %110 = vector.load %arg15[%c3_114, %c0_115, %c0_116, %c0_117, %c0_118] : memref<4x2x9x16x128xf32, #tpu.memory_space<vmem>>, vector<1x2x8x8x128xf32>
    %111 = vector.shape_cast %110 : vector<1x2x8x8x128xf32> to vector<2x8x8x128xf32>
    %112 = vector.shape_cast %111 : vector<2x8x8x128xf32> to vector<128x128xf32>
    %c4 = arith.constant 4 : index
    %c0_119 = arith.constant 0 : index
    %c0_120 = arith.constant 0 : index
    %113 = vector.load %arg5[%c4, %c0_119, %c0_120] : memref<9x128x128xf32, #tpu.memory_space<vmem>>, vector<1x128x128xf32>
    %114 = vector.shape_cast %113 : vector<1x128x128xf32> to vector<128x128xf32>
    %cst_121 = arith.constant dense<0.000000e+00> : vector<128x128xf32>
    %115 = tpu.matmul %112, %114, %cst_121 {dimension_numbers = #tpu.dot_dimension_numbers<[1], [0], [0], [1], [0, 0, 1, 1], [], []>} : vector<128x128xf32>, vector<128x128xf32>, vector<128x128xf32> -> vector<128x128xf32>
    %116 = arith.addf %109, %115 : vector<128x128xf32>
    %c2_122 = arith.constant 2 : index
    %c0_123 = arith.constant 0 : index
    %c0_124 = arith.constant 0 : index
    %c1_125 = arith.constant 1 : index
    %c0_126 = arith.constant 0 : index
    %117 = vector.load %arg15[%c2_122, %c0_123, %c0_124, %c1_125, %c0_126] : memref<4x2x9x16x128xf32, #tpu.memory_space<vmem>>, vector<1x2x8x8x128xf32>
    %118 = vector.shape_cast %117 : vector<1x2x8x8x128xf32> to vector<2x8x8x128xf32>
    %119 = vector.shape_cast %118 : vector<2x8x8x128xf32> to vector<128x128xf32>
    %c5 = arith.constant 5 : index
    %c0_127 = arith.constant 0 : index
    %c0_128 = arith.constant 0 : index
    %120 = vector.load %arg5[%c5, %c0_127, %c0_128] : memref<9x128x128xf32, #tpu.memory_space<vmem>>, vector<1x128x128xf32>
    %121 = vector.shape_cast %120 : vector<1x128x128xf32> to vector<128x128xf32>
    %cst_129 = arith.constant dense<0.000000e+00> : vector<128x128xf32>
    %122 = tpu.matmul %119, %121, %cst_129 {dimension_numbers = #tpu.dot_dimension_numbers<[1], [0], [0], [1], [0, 0, 1, 1], [], []>} : vector<128x128xf32>, vector<128x128xf32>, vector<128x128xf32> -> vector<128x128xf32>
    %123 = arith.addf %116, %122 : vector<128x128xf32>
    %c0_130 = arith.constant 0 : index
    %c0_131 = arith.constant 0 : index
    %c1_132 = arith.constant 1 : index
    %c0_133 = arith.constant 0 : index
    %c0_134 = arith.constant 0 : index
    %124 = vector.load %arg15[%c0_130, %c0_131, %c1_132, %c0_133, %c0_134] : memref<4x2x9x16x128xf32, #tpu.memory_space<vmem>>, vector<1x2x8x8x128xf32>
    %125 = vector.shape_cast %124 : vector<1x2x8x8x128xf32> to vector<2x8x8x128xf32>
    %126 = vector.shape_cast %125 : vector<2x8x8x128xf32> to vector<128x128xf32>
    %c6 = arith.constant 6 : index
    %c0_135 = arith.constant 0 : index
    %c0_136 = arith.constant 0 : index
    %127 = vector.load %arg5[%c6, %c0_135, %c0_136] : memref<9x128x128xf32, #tpu.memory_space<vmem>>, vector<1x128x128xf32>
    %128 = vector.shape_cast %127 : vector<1x128x128xf32> to vector<128x128xf32>
    %cst_137 = arith.constant dense<0.000000e+00> : vector<128x128xf32>
    %129 = tpu.matmul %126, %128, %cst_137 {dimension_numbers = #tpu.dot_dimension_numbers<[1], [0], [0], [1], [0, 0, 1, 1], [], []>} : vector<128x128xf32>, vector<128x128xf32>, vector<128x128xf32> -> vector<128x128xf32>
    %130 = arith.addf %123, %129 : vector<128x128xf32>
    %c1_138 = arith.constant 1 : index
    %c0_139 = arith.constant 0 : index
    %c1_140 = arith.constant 1 : index
    %c0_141 = arith.constant 0 : index
    %c0_142 = arith.constant 0 : index
    %131 = vector.load %arg15[%c1_138, %c0_139, %c1_140, %c0_141, %c0_142] : memref<4x2x9x16x128xf32, #tpu.memory_space<vmem>>, vector<1x2x8x8x128xf32>
    %132 = vector.shape_cast %131 : vector<1x2x8x8x128xf32> to vector<2x8x8x128xf32>
    %133 = vector.shape_cast %132 : vector<2x8x8x128xf32> to vector<128x128xf32>
    %c7 = arith.constant 7 : index
    %c0_143 = arith.constant 0 : index
    %c0_144 = arith.constant 0 : index
    %134 = vector.load %arg5[%c7, %c0_143, %c0_144] : memref<9x128x128xf32, #tpu.memory_space<vmem>>, vector<1x128x128xf32>
    %135 = vector.shape_cast %134 : vector<1x128x128xf32> to vector<128x128xf32>
    %cst_145 = arith.constant dense<0.000000e+00> : vector<128x128xf32>
    %136 = tpu.matmul %133, %135, %cst_145 {dimension_numbers = #tpu.dot_dimension_numbers<[1], [0], [0], [1], [0, 0, 1, 1], [], []>} : vector<128x128xf32>, vector<128x128xf32>, vector<128x128xf32> -> vector<128x128xf32>
    %137 = arith.addf %130, %136 : vector<128x128xf32>
    %c0_146 = arith.constant 0 : index
    %c0_147 = arith.constant 0 : index
    %c1_148 = arith.constant 1 : index
    %c1_149 = arith.constant 1 : index
    %c0_150 = arith.constant 0 : index
    %138 = vector.load %arg15[%c0_146, %c0_147, %c1_148, %c1_149, %c0_150] : memref<4x2x9x16x128xf32, #tpu.memory_space<vmem>>, vector<1x2x8x8x128xf32>
    %139 = vector.shape_cast %138 : vector<1x2x8x8x128xf32> to vector<2x8x8x128xf32>
    %140 = vector.shape_cast %139 : vector<2x8x8x128xf32> to vector<128x128xf32>
    %c8_151 = arith.constant 8 : index
    %c0_152 = arith.constant 0 : index
    %c0_153 = arith.constant 0 : index
    %141 = vector.load %arg5[%c8_151, %c0_152, %c0_153] : memref<9x128x128xf32, #tpu.memory_space<vmem>>, vector<1x128x128xf32>
    %142 = vector.shape_cast %141 : vector<1x128x128xf32> to vector<128x128xf32>
    %cst_154 = arith.constant dense<0.000000e+00> : vector<128x128xf32>
    %143 = tpu.matmul %140, %142, %cst_154 {dimension_numbers = #tpu.dot_dimension_numbers<[1], [0], [0], [1], [0, 0, 1, 1], [], []>} : vector<128x128xf32>, vector<128x128xf32>, vector<128x128xf32> -> vector<128x128xf32>
    %144 = arith.addf %137, %143 : vector<128x128xf32>
    %c0_155 = arith.constant 0 : index
    %c0_156 = arith.constant 0 : index
    %145 = vector.load %arg6[%c0_155, %c0_156] : memref<1x128xf32, #tpu.memory_space<vmem>>, vector<1x128xf32>
    %c0_157 = arith.constant 0 : index
    %c0_158 = arith.constant 0 : index
    %146 = vector.load %arg7[%c0_157, %c0_158] : memref<1x128xf32, #tpu.memory_space<vmem>>, vector<1x128xf32>
    %cst_159 = arith.constant dense<0.000000e+00> : vector<128xf32>
    %147 = vector.multi_reduction <add>, %144, %cst_159 [0] : vector<128x128xf32> to vector<128xf32>
    %148 = vector.shape_cast %147 : vector<128xf32> to vector<1x128xf32>
    %149 = arith.mulf %144, %144 : vector<128x128xf32>
    %cst_160 = arith.constant dense<0.000000e+00> : vector<128xf32>
    %150 = vector.multi_reduction <add>, %149, %cst_160 [0] : vector<128x128xf32> to vector<128xf32>
    %151 = vector.shape_cast %150 : vector<128xf32> to vector<1x128xf32>
    %cst_161 = arith.constant 7.812500e-03 : f32
    %152 = vector.broadcast %cst_161 : f32 to vector<1x128xf32>
    %153 = arith.mulf %148, %152 : vector<1x128xf32>
    %cst_162 = arith.constant 7.812500e-03 : f32
    %154 = vector.broadcast %cst_162 : f32 to vector<1x128xf32>
    %155 = arith.mulf %151, %154 : vector<1x128xf32>
    %156 = arith.mulf %153, %153 : vector<1x128xf32>
    %157 = arith.subf %155, %156 : vector<1x128xf32>
    %cst_163 = arith.constant 0.000000e+00 : f32
    %158 = vector.broadcast %cst_163 : f32 to vector<1x128xf32>
    %159 = arith.maximumf %157, %158 : vector<1x128xf32>
    %cst_164 = arith.constant 9.99999974E-6 : f32
    %160 = vector.broadcast %cst_164 : f32 to vector<1x128xf32>
    %161 = arith.addf %159, %160 : vector<1x128xf32>
    %162 = math.rsqrt %161 : vector<1x128xf32>
    %163 = arith.mulf %145, %162 : vector<1x128xf32>
    %164 = arith.mulf %153, %163 : vector<1x128xf32>
    %165 = arith.subf %146, %164 : vector<1x128xf32>
    %166 = vector.broadcast %163 : vector<1x128xf32> to vector<128x128xf32>
    %167 = arith.mulf %144, %166 : vector<128x128xf32>
    %168 = vector.broadcast %165 : vector<1x128xf32> to vector<128x128xf32>
    %169 = arith.addf %167, %168 : vector<128x128xf32>
    %cst_165 = arith.constant 0.000000e+00 : f32
    %170 = vector.broadcast %cst_165 : f32 to vector<128x128xf32>
    %171 = arith.maximumf %169, %170 : vector<128x128xf32>
    %c0_166 = arith.constant 0 : index
    %c0_167 = arith.constant 0 : index
    %172 = vector.load %arg8[%c0_166, %c0_167] : memref<128x128xf32, #tpu.memory_space<vmem>>, vector<128x128xf32>
    %cst_168 = arith.constant dense<0.000000e+00> : vector<128x128xf32>
    %173 = tpu.matmul %171, %172, %cst_168 {dimension_numbers = #tpu.dot_dimension_numbers<[1], [0], [0], [1], [0, 0, 1, 1], [], []>} : vector<128x128xf32>, vector<128x128xf32>, vector<128x128xf32> -> vector<128x128xf32>
    %c0_169 = arith.constant 0 : index
    %c0_170 = arith.constant 0 : index
    %174 = vector.load %arg9[%c0_169, %c0_170] : memref<1x128xf32, #tpu.memory_space<vmem>>, vector<1x128xf32>
    %c0_171 = arith.constant 0 : index
    %c0_172 = arith.constant 0 : index
    %175 = vector.load %arg10[%c0_171, %c0_172] : memref<1x128xf32, #tpu.memory_space<vmem>>, vector<1x128xf32>
    %cst_173 = arith.constant dense<0.000000e+00> : vector<128xf32>
    %176 = vector.multi_reduction <add>, %173, %cst_173 [0] : vector<128x128xf32> to vector<128xf32>
    %177 = vector.shape_cast %176 : vector<128xf32> to vector<1x128xf32>
    %178 = arith.mulf %173, %173 : vector<128x128xf32>
    %cst_174 = arith.constant dense<0.000000e+00> : vector<128xf32>
    %179 = vector.multi_reduction <add>, %178, %cst_174 [0] : vector<128x128xf32> to vector<128xf32>
    %180 = vector.shape_cast %179 : vector<128xf32> to vector<1x128xf32>
    %cst_175 = arith.constant 7.812500e-03 : f32
    %181 = vector.broadcast %cst_175 : f32 to vector<1x128xf32>
    %182 = arith.mulf %177, %181 : vector<1x128xf32>
    %cst_176 = arith.constant 7.812500e-03 : f32
    %183 = vector.broadcast %cst_176 : f32 to vector<1x128xf32>
    %184 = arith.mulf %180, %183 : vector<1x128xf32>
    %185 = arith.mulf %182, %182 : vector<1x128xf32>
    %186 = arith.subf %184, %185 : vector<1x128xf32>
    %cst_177 = arith.constant 0.000000e+00 : f32
    %187 = vector.broadcast %cst_177 : f32 to vector<1x128xf32>
    %188 = arith.maximumf %186, %187 : vector<1x128xf32>
    %cst_178 = arith.constant 9.99999974E-6 : f32
    %189 = vector.broadcast %cst_178 : f32 to vector<1x128xf32>
    %190 = arith.addf %188, %189 : vector<1x128xf32>
    %191 = math.rsqrt %190 : vector<1x128xf32>
    %192 = arith.mulf %174, %191 : vector<1x128xf32>
    %193 = arith.mulf %182, %192 : vector<1x128xf32>
    %194 = arith.subf %175, %193 : vector<1x128xf32>
    %195 = vector.broadcast %192 : vector<1x128xf32> to vector<128x128xf32>
    %196 = arith.mulf %173, %195 : vector<128x128xf32>
    %197 = vector.broadcast %194 : vector<1x128xf32> to vector<128x128xf32>
    %198 = arith.addf %196, %197 : vector<128x128xf32>
    %c0_179 = arith.constant 0 : index
    %c0_180 = arith.constant 0 : index
    %199 = vector.load %arg1[%c0_179, %c0_180] : memref<128x128xf32, #tpu.memory_space<vmem>>, vector<128x128xf32>
    %c0_181 = arith.constant 0 : index
    %c0_182 = arith.constant 0 : index
    %200 = vector.load %arg11[%c0_181, %c0_182] : memref<128x128xf32, #tpu.memory_space<vmem>>, vector<128x128xf32>
    %cst_183 = arith.constant dense<0.000000e+00> : vector<128x128xf32>
    %201 = tpu.matmul %199, %200, %cst_183 {dimension_numbers = #tpu.dot_dimension_numbers<[1], [0], [0], [1], [0, 0, 1, 1], [], []>} : vector<128x128xf32>, vector<128x128xf32>, vector<128x128xf32> -> vector<128x128xf32>
    %c0_184 = arith.constant 0 : index
    %c0_185 = arith.constant 0 : index
    %202 = vector.load %arg12[%c0_184, %c0_185] : memref<1x128xf32, #tpu.memory_space<vmem>>, vector<1x128xf32>
    %c0_186 = arith.constant 0 : index
    %c0_187 = arith.constant 0 : index
    %203 = vector.load %arg13[%c0_186, %c0_187] : memref<1x128xf32, #tpu.memory_space<vmem>>, vector<1x128xf32>
    %cst_188 = arith.constant dense<0.000000e+00> : vector<128xf32>
    %204 = vector.multi_reduction <add>, %201, %cst_188 [0] : vector<128x128xf32> to vector<128xf32>
    %205 = vector.shape_cast %204 : vector<128xf32> to vector<1x128xf32>
    %206 = arith.mulf %201, %201 : vector<128x128xf32>
    %cst_189 = arith.constant dense<0.000000e+00> : vector<128xf32>
    %207 = vector.multi_reduction <add>, %206, %cst_189 [0] : vector<128x128xf32> to vector<128xf32>
    %208 = vector.shape_cast %207 : vector<128xf32> to vector<1x128xf32>
    %cst_190 = arith.constant 7.812500e-03 : f32
    %209 = vector.broadcast %cst_190 : f32 to vector<1x128xf32>
    %210 = arith.mulf %205, %209 : vector<1x128xf32>
    %cst_191 = arith.constant 7.812500e-03 : f32
    %211 = vector.broadcast %cst_191 : f32 to vector<1x128xf32>
    %212 = arith.mulf %208, %211 : vector<1x128xf32>
    %213 = arith.mulf %210, %210 : vector<1x128xf32>
    %214 = arith.subf %212, %213 : vector<1x128xf32>
    %cst_192 = arith.constant 0.000000e+00 : f32
    %215 = vector.broadcast %cst_192 : f32 to vector<1x128xf32>
    %216 = arith.maximumf %214, %215 : vector<1x128xf32>
    %cst_193 = arith.constant 9.99999974E-6 : f32
    %217 = vector.broadcast %cst_193 : f32 to vector<1x128xf32>
    %218 = arith.addf %216, %217 : vector<1x128xf32>
    %219 = math.rsqrt %218 : vector<1x128xf32>
    %220 = arith.mulf %202, %219 : vector<1x128xf32>
    %221 = arith.mulf %210, %220 : vector<1x128xf32>
    %222 = arith.subf %203, %221 : vector<1x128xf32>
    %223 = vector.broadcast %220 : vector<1x128xf32> to vector<128x128xf32>
    %224 = arith.mulf %201, %223 : vector<128x128xf32>
    %225 = vector.broadcast %222 : vector<1x128xf32> to vector<128x128xf32>
    %226 = arith.addf %224, %225 : vector<128x128xf32>
    %227 = arith.addf %198, %226 : vector<128x128xf32>
    %cst_194 = arith.constant 0.000000e+00 : f32
    %228 = vector.broadcast %cst_194 : f32 to vector<128x128xf32>
    %229 = arith.maximumf %227, %228 : vector<128x128xf32>
    %c0_195 = arith.constant 0 : index
    %c0_196 = arith.constant 0 : index
    %230 = vector.load %arg14[%c0_195, %c0_196] : memref<128x128xf32, #tpu.memory_space<vmem>>, vector<128x128xf32>
    tpu.vector_store %arg14[%c0_195, %c0_196], %229 {strides = array<i32>} : memref<128x128xf32, #tpu.memory_space<vmem>>, vector<128x128xf32>,
    return
  }
}

</mosaic_0001>

<bundles_post_ra>
// kernel: bottleneck_forward.1
= control target key start
LH: loop header
LB: loop body
LE: loop exit
PB: predicated region body
PF: predicated region fallthrough
CT: control target
= control target key end

     0   :  { %s7513_s0 = inlined_call_operand.vmem [shape: f32[512,128], index: 0, kind: input, shape index: {}]   ;;  %s7514_s1 = inlined_call_operand.vmem [shape: f32[128,128], index: 1, kind: input, shape index: {}]   ;;  %s7515_s2 = inlined_call_operand.vmem [shape: f32[128,128], index: 2, kind: input, shape index: {}]   ;;  %s7516_s3 = inlined_call_operand.vmem [shape: f32[1,128], index: 3, kind: input, shape index: {}]   ;;  %s7517_s4 = inlined_call_operand.vmem [shape: f32[1,128], index: 4, kind: input, shape index: {}]   ;;  %s7518_s5 = inlined_call_operand.vmem [shape: f32[9,128,128], index: 5, kind: input, shape index: {}]   ;;  %s7519_s6 = inlined_call_operand.vmem [shape: f32[1,128], index: 6, kind: input, shape index: {}]   ;;  %s7520_s7 = inlined_call_operand.vmem [shape: f32[1,128], index: 7, kind: input, shape index: {}]   ;;  %s7521_s8 = inlined_call_operand.vmem [shape: f32[128,128], index: 8, kind: input, shape index: {}]   ;;  %s7522_s9 = inlined_call_operand.vmem [shape: f32[1,128], index: 9, kind: input, shape index: {}]   ;;  %s7523_s10 = inlined_call_operand.vmem [shape: f32[1,128], index: 10, kind: input, shape index: {}]   ;;  %s7524_s11 = inlined_call_operand.vmem [shape: f32[128,128], index: 11, kind: input, shape index: {}]   ;;  %s7525_s12 = inlined_call_operand.vmem [shape: f32[1,128], index: 12, kind: input, shape index: {}]   ;;  %s7526_s13 = inlined_call_operand.vmem [shape: f32[1,128], index: 13, kind: input, shape index: {}]   ;;  %s7527_s14 = inlined_call_operand.hbm [shape: f32[128,128], index: 14, kind: output, shape index: {}]  }
   0x1   :  { %v127_v0 = vld [vmem:[%s7515_s2 + $0x78] sm:$0xff]  ;;  %v126_v1 = vld [vmem:[%s7515_s2 + $0x70] sm:$0xff]  ;;  %v125_v2 = vld [vmem:[%s7515_s2 + $0x68] sm:$0xff] }
   0x2   :  { %4115 = vmatprep.subr.mxu0 %v127_v0  ;;  %v124_v3 = vld [vmem:[%s7515_s2 + $0x60] sm:$0xff]  ;;  %v123_v5 = vld [vmem:[%s7515_s2 + $0x58] sm:$0xff]  ;;  %v122_v6 = vld [vmem:[%s7515_s2 + $0x50] sm:$0xff] }
   0x3   :  { %4116 = vmatpush3.msra.mxu0 %v127_v0  ;;  %v48_v4 = vld [vmem:[%s7513_s0] sm:$0xff]  ;;  %v121_v7 = vld [vmem:[%s7515_s2 + $0x48] sm:$0xff]  ;;  %v119_v9 = vld [vmem:[%s7515_s2 + $0x38] sm:$0xff] }
   0x4   :  { %4117 = vmatprep.subr.mxu0 %v126_v1  ;;  %4147 = vmatprep.mubr.f32.mxu0 %v48_v4  ;;  %v120_v8 = vld [vmem:[%s7515_s2 + $0x40] sm:$0xff]  ;;  %v118_v10 = vld [vmem:[%s7515_s2 + $0x30] sm:$0xff]  ;;  %v117_v11 = vld [vmem:[%s7515_s2 + $0x28] sm:$0xff] }
   0x5   :  { %4118 = vmatpush3.msra.mxu0 %v126_v1  ;;  %v116_v12 = vld [vmem:[%s7515_s2 + $0x20] sm:$0xff]  ;;  %v115_v13 = vld [vmem:[%s7515_s2 + $0x18] sm:$0xff]  ;;  %v114_v14 = vld [vmem:[%s7515_s2 + $0x10] sm:$0xff] }
   0x6   :  { %4119 = vmatprep.subr.mxu0 %v125_v2  ;;  %v113_v15 = vld [vmem:[%s7515_s2 + $0x8] sm:$0xff] }
   0x7   :  { %4120 = vmatpush3.msra.mxu0 %v125_v2 }
   0x8   :  { %4121 = vmatprep.subr.mxu0 %v124_v3 }
   0x9   :  { %4122 = vmatpush3.msra.mxu0 %v124_v3 }
   0xa   :  { %4123 = vmatprep.subr.mxu0 %v123_v5 }
   0xb   :  { %4124 = vmatpush3.msra.mxu0 %v123_v5 }
   0xc   :  { %4125 = vmatprep.subr.mxu0 %v122_v6 }
   0xd   :  { %4126 = vmatpush3.msra.mxu0 %v122_v6 }
   0xe   :  { %4127 = vmatprep.subr.mxu0 %v121_v7 }
   0xf   :  { %4128 = vmatpush3.msra.mxu0 %v121_v7 }
  0x10   :  { %4129 = vmatprep.subr.mxu0 %v120_v8 }
  0x11   :  { %4130 = vmatpush3.msra.mxu0 %v120_v8 }
  0x12   :  { %4131 = vmatprep.subr.mxu0 %v119_v9 }
  0x13   :  { %4132 = vmatpush3.msra.mxu0 %v119_v9 }
  0x14   :  { %4133 = vmatprep.subr.mxu0 %v118_v10 }
  0x15   :  { %4134 = vmatpush3.msra.mxu0 %v118_v10 }
  0x16   :  { %4135 = vmatprep.subr.mxu0 %v117_v11 }
  0x17   :  { %4136 = vmatpush3.msra.mxu0 %v117_v11 }
  0x18   :  { %4137 = vmatprep.subr.mxu0 %v116_v12 }
  0x19   :  { %4138 = vmatpush3.msra.mxu0 %v116_v12 }
  0x1a   :  { %4139 = vmatprep.subr.mxu0 %v115_v13 }
  0x1b   :  { %4140 = vmatpush3.msra.mxu0 %v115_v13 }
  0x1c   :  { %19 = vsyncpa [#allocation4], 0  ;;  %4141 = vmatprep.subr.mxu0 %v114_v14  ;;  %v112_v16 = vld [vmem:[%s7515_s2] sm:$0xff]  ;;  %v49_v17 = vld [vmem:[%s7513_s0 + $0x8] sm:$0xff] }
  0x1d   :  { %4142 = vmatpush3.msra.mxu0 %v114_v14  ;;  %v50_v18 = vld [vmem:[%s7513_s0 + $0x10] sm:$0xff]  ;;  %v51_v19 = vld [vmem:[%s7513_s0 + $0x18] sm:$0xff]  ;;  %v52_v20 = vld [vmem:[%s7513_s0 + $0x20] sm:$0xff] }
  0x1e   :  { %4143 = vmatprep.subr.mxu0 %v113_v15  ;;  %v53_v21 = vld [vmem:[%s7513_s0 + $0x28] sm:$0xff]  ;;  %v54_v22 = vld [vmem:[%s7513_s0 + $0x30] sm:$0xff]  ;;  %v55_v23 = vld [vmem:[%s7513_s0 + $0x38] sm:$0xff] }
  0x1f   :  { %4144 = vmatpush3.msra.mxu0 %v113_v15  ;;  %v56_v24 = vld [vmem:[%s7513_s0 + $0x40] sm:$0xff]  ;;  %v57_v25 = vld [vmem:[%s7513_s0 + $0x48] sm:$0xff]  ;;  %v58_v26 = vld [vmem:[%s7513_s0 + $0x50] sm:$0xff] }
  0x20   :  { %4145 = vmatprep.subr.mxu0 %v112_v16  ;;  %v59_v27 = vld [vmem:[%s7513_s0 + $0x58] sm:$0xff]  ;;  %v60_v28 = vld [vmem:[%s7513_s0 + $0x60] sm:$0xff]  ;;  %v61_v29 = vld [vmem:[%s7513_s0 + $0x68] sm:$0xff] }
  0x21   :  { %4146 = vmatpush3.msra.mxu0 %v112_v16  ;;  %v62_v30 = vld [vmem:[%s7513_s0 + $0x70] sm:$0xff]  ;;  %v63_v31 = vld [vmem:[%s7513_s0 + $0x78] sm:$0xff]  ;;  %v64_v32 = vld [vmem:[%s7513_s0 + $0x80] sm:$0xff] }
  0x22   :  { %4148 = vmatmul.mubr.f32.vlgmr.msra.gmra.mxu0 %v49_v17  ;;  %v65_v33 = vld [vmem:[%s7513_s0 + $0x88] sm:$0xff]  ;;  %v66_v34 = vld [vmem:[%s7513_s0 + $0x90] sm:$0xff]  ;;  %v67_v35 = vld [vmem:[%s7513_s0 + $0x98] sm:$0xff] }
  0x23   :  { %4150 = vmatprep.mubr.f32.mxu0 %v50_v18  ;;  %v68_v36 = vld [vmem:[%s7513_s0 + $0xa0] sm:$0xff]  ;;  %v69_v37 = vld [vmem:[%s7513_s0 + $0xa8] sm:$0xff]  ;;  %v70_v38 = vld [vmem:[%s7513_s0 + $0xb0] sm:$0xff] }
  0x24   :  { %v71_v39 = vld [vmem:[%s7513_s0 + $0xb8] sm:$0xff]  ;;  %v72_v40 = vld [vmem:[%s7513_s0 + $0xc0] sm:$0xff]  ;;  %v73_v41 = vld [vmem:[%s7513_s0 + $0xc8] sm:$0xff] }
  0x25   :  { %v74_v42 = vld [vmem:[%s7513_s0 + $0xd0] sm:$0xff]  ;;  %v75_v43 = vld [vmem:[%s7513_s0 + $0xd8] sm:$0xff]  ;;  %v76_v44 = vld [vmem:[%s7513_s0 + $0xe0] sm:$0xff] }
  0x26   :  { %4151 = vmatmul.mubr.f32.gmra.mxu0 %v51_v19  ;;  %v77_v45 = vld [vmem:[%s7513_s0 + $0xe8] sm:$0xff]  ;;  %v78_v46 = vld [vmem:[%s7513_s0 + $0xf0] sm:$0xff]  ;;  %v79_v47 = vld [vmem:[%s7513_s0 + $0xf8] sm:$0xff] }
  0x27   :  { %4153 = vmatprep.mubr.f32.mxu0 %v52_v20  ;;  %v80_v48 = vld [vmem:[%s7513_s0 + $0x100] sm:$0xff]  ;;  %v81_v49 = vld [vmem:[%s7513_s0 + $0x108] sm:$0xff]  ;;  %v82_v50 = vld [vmem:[%s7513_s0 + $0x110] sm:$0xff] }
  0x28   :  { %v83_v51 = vld [vmem:[%s7513_s0 + $0x118] sm:$0xff]  ;;  %v84_v52 = vld [vmem:[%s7513_s0 + $0x120] sm:$0xff]  ;;  %v85_v53 = vld [vmem:[%s7513_s0 + $0x128] sm:$0xff] }
  0x29   :  { %v86_v54 = vld [vmem:[%s7513_s0 + $0x130] sm:$0xff]  ;;  %v87_v55 = vld [vmem:[%s7513_s0 + $0x138] sm:$0xff]  ;;  %v88_v56 = vld [vmem:[%s7513_s0 + $0x140] sm:$0xff] }
  0x2a   :  { %4154 = vmatmul.mubr.f32.gmra.mxu0 %v53_v21  ;;  %v89_v57 = vld [vmem:[%s7513_s0 + $0x148] sm:$0xff]  ;;  %v90_v58 = vld [vmem:[%s7513_s0 + $0x150] sm:$0xff]  ;;  %v91_v59 = vld [vmem:[%s7513_s0 + $0x158] sm:$0xff] }
  0x2b   :  { %4156 = vmatprep.mubr.f32.mxu0 %v54_v22  ;;  %v92_v60 = vld [vmem:[%s7513_s0 + $0x160] sm:$0xff]  ;;  %v93_v61 = vld [vmem:[%s7513_s0 + $0x168] sm:$0xff]  ;;  %v94_v62 = vld [vmem:[%s7513_s0 + $0x170] sm:$0xff] }
  0x2c   :  { %v95_v63 = vld [vmem:[%s7513_s0 + $0x178] sm:$0xff]  ;;  %v96_v0 = vld [vmem:[%s7513_s0 + $0x180] sm:$0xff]  ;;  %v97_v1 = vld [vmem:[%s7513_s0 + $0x188] sm:$0xff] }
  0x2d   :  { %v98_v2 = vld [vmem:[%s7513_s0 + $0x190] sm:$0xff]  ;;  %v99_v3 = vld [vmem:[%s7513_s0 + $0x198] sm:$0xff]  ;;  %v100_v4 = vld [vmem:[%s7513_s0 + $0x1a0] sm:$0xff] }
  0x2e   :  { %4157 = vmatmul.mubr.f32.gmra.mxu0 %v55_v23  ;;  %v101_v5 = vld [vmem:[%s7513_s0 + $0x1a8] sm:$0xff]  ;;  %v102_v6 = vld [vmem:[%s7513_s0 + $0x1b0] sm:$0xff]  ;;  %v103_v7 = vld [vmem:[%s7513_s0 + $0x1b8] sm:$0xff] }
  0x2f   :  { %4159 = vmatprep.mubr.f32.mxu0 %v56_v24  ;;  %v104_v8 = vld [vmem:[%s7513_s0 + $0x1c0] sm:$0xff]  ;;  %v105_v9 = vld [vmem:[%s7513_s0 + $0x1c8] sm:$0xff]  ;;  %v106_v10 = vld [vmem:[%s7513_s0 + $0x1d0] sm:$0xff] }
  0x30   :  { %v107_v11 = vld [vmem:[%s7513_s0 + $0x1d8] sm:$0xff]  ;;  %v108_v12 = vld [vmem:[%s7513_s0 + $0x1e0] sm:$0xff]  ;;  %v109_v13 = vld [vmem:[%s7513_s0 + $0x1e8] sm:$0xff] }
  0x31   :  { %v110_v14 = vld [vmem:[%s7513_s0 + $0x1f0] sm:$0xff]  ;;  %v111_v15 = vld [vmem:[%s7513_s0 + $0x1f8] sm:$0xff] }
  0x32   :  { %4160 = vmatmul.mubr.f32.gmra.mxu0 %v57_v25 }
  0x33   :  { %4162 = vmatprep.mubr.f32.mxu0 %v58_v26 }
  0x36   :  { %4163 = vmatmul.mubr.f32.gmra.mxu0 %v59_v27 }
  0x37   :  { %4165 = vmatprep.mubr.f32.mxu0 %v60_v28 }
  0x3a   :  { %4166 = vmatmul.mubr.f32.gmra.mxu0 %v61_v29 }
  0x3b   :  { %4168 = vmatprep.mubr.f32.mxu0 %v62_v30 }
  0x3e   :  { %4169 = vmatmul.mubr.f32.gmra.mxu0 %v63_v31 }
  0x3f   :  { %4171 = vmatprep.mubr.f32.mxu0 %v64_v32 }
  0x42   :  { %4172 = vmatmul.mubr.f32.gmra.mxu0 %v65_v33 }
  0x43   :  { %4174 = vmatprep.mubr.f32.mxu0 %v66_v34 }
  0x46   :  { %4175 = vmatmul.mubr.f32.gmra.mxu0 %v67_v35 }
  0x47   :  { %4177 = vmatprep.mubr.f32.mxu0 %v68_v36 }
  0x4a   :  { %4178 = vmatmul.mubr.f32.gmra.mxu0 %v69_v37 }
  0x4b   :  { %4180 = vmatprep.mubr.f32.mxu0 %v70_v38 }
  0x4e   :  { %4181 = vmatmul.mubr.f32.gmra.mxu0 %v71_v39 }
  0x4f   :  { %4183 = vmatprep.mubr.f32.mxu0 %v72_v40 }
  0x52   :  { %4184 = vmatmul.mubr.f32.gmra.mxu0 %v73_v41 }
  0x53   :  { %4186 = vmatprep.mubr.f32.mxu0 %v74_v42 }
  0x56   :  { %4187 = vmatmul.mubr.f32.gmra.mxu0 %v75_v43 }
  0x57   :  { %4189 = vmatprep.mubr.f32.mxu0 %v76_v44 }
  0x5a   :  { %4190 = vmatmul.mubr.f32.gmra.mxu0 %v77_v45 }
  0x5b   :  { %4192 = vmatprep.mubr.f32.mxu0 %v78_v46 }
  0x5e   :  { %4193 = vmatmul.mubr.f32.gmra.mxu0 %v79_v47 }
  0x5f   :  { %4195 = vmatprep.mubr.f32.mxu0 %v80_v48 }
  0x62   :  { %4196 = vmatmul.mubr.f32.gmra.mxu0 %v81_v49 }
  0x63   :  { %4198 = vmatprep.mubr.f32.mxu0 %v82_v50 }
  0x66   :  { %4199 = vmatmul.mubr.f32.gmra.mxu0 %v83_v51 }
  0x67   :  { %4201 = vmatprep.mubr.f32.mxu0 %v84_v52 }
  0x6a   :  { %4202 = vmatmul.mubr.f32.gmra.mxu0 %v85_v53 }
  0x6b   :  { %4204 = vmatprep.mubr.f32.mxu0 %v86_v54 }
  0x6e   :  { %4205 = vmatmul.mubr.f32.gmra.mxu0 %v87_v55 }
  0x6f   :  { %4207 = vmatprep.mubr.f32.mxu0 %v88_v56 }
  0x72   :  { %4208 = vmatmul.mubr.f32.gmra.mxu0 %v89_v57 }
  0x73   :  { %4210 = vmatprep.mubr.f32.mxu0 %v90_v58 }
  0x76   :  { %4211 = vmatmul.mubr.f32.gmra.mxu0 %v91_v59 }
  0x77   :  { %4213 = vmatprep.mubr.f32.mxu0 %v92_v60 }
  0x7a   :  { %4214 = vmatmul.mubr.f32.gmra.mxu0 %v93_v61 }
  0x7b   :  { %4216 = vmatprep.mubr.f32.mxu0 %v94_v62 }
  0x7e   :  { %4217 = vmatmul.mubr.f32.gmra.mxu0 %v95_v63 }
  0x7f   :  { %4219 = vmatprep.mubr.f32.mxu0 %v96_v0 }
  0x82   :  { %4220 = vmatmul.mubr.f32.gmra.mxu0 %v97_v1 }
  0x83   :  { %4222 = vmatprep.mubr.f32.mxu0 %v98_v2 }
  0x86   :  { %4223 = vmatmul.mubr.f32.gmra.mxu0 %v99_v3 }
  0x87   :  { %4225 = vmatprep.mubr.f32.mxu0 %v100_v4 }
  0x8a   :  { %4226 = vmatmul.mubr.f32.gmra.mxu0 %v101_v5 }
  0x8b   :  { %4228 = vmatprep.mubr.f32.mxu0 %v102_v6 }
  0x8e   :  { %4229 = vmatmul.mubr.f32.gmra.mxu0 %v103_v7 }
  0x8f   :  { %4231 = vmatprep.mubr.f32.mxu0 %v104_v8 }
  0x92   :  { %4232 = vmatmul.mubr.f32.gmra.mxu0 %v105_v9 }
  0x93   :  { %4234 = vmatprep.mubr.f32.mxu0 %v106_v10 }
  0x96   :  { %4235 = vmatmul.mubr.f32.gmra.mxu0 %v107_v11 }
  0x97   :  { %4237 = vmatprep.mubr.f32.mxu0 %v108_v12 }
  0x9a   :  { %4238 = vmatmul.mubr.f32.gmra.mxu0 %v109_v13 }
  0x9b   :  { %4240 = vmatprep.mubr.f32.mxu0 %v110_v14 }
  0x9e   :  { %4241 = vmatmul.mubr.f32.gmra.mxu0 %v111_v15 }
  0xe2   :  { %v5245_v16 = vpop.f32.mrf.mxu0 }
  0xe3   :  { %v585_v20 = vmul.f32 %v5245_v16, %v5245_v16 }
  0xe4   :  { %v5247_v17 = vpop.f32.mrf.mxu0 }
  0xe5   :  { %v584_v18 = vmul.f32 %v5247_v17, %v5247_v17  ;;  %v515_v21 = vadd.f32 %v5245_v16, %v5247_v17 }
  0xe6   :  { %v5251_v19 = vpop.f32.mrf.mxu0 }
  0xe7   :  { %v648_v23 = vadd.f32 %v585_v20, %v584_v18  ;;  %v587_v27 = vmul.f32 %v5251_v19, %v5251_v19 }
  0xe8   :  { %v5257_v22 = vpop.f32.mrf.mxu0 }
  0xe9   :  { %v516_v24 = vadd.f32 %v515_v21, %v5257_v22  ;;  %v586_v25 = vmul.f32 %v5257_v22, %v5257_v22 }
  0xea   :  { %v5262_v26 = vpop.f32.mrf.mxu0 }
  0xeb   :  { %v517_v28 = vadd.f32 %v5251_v19, %v516_v24  ;;  %v649_v29 = vadd.f32 %v648_v23, %v586_v25  ;;  %v589_v35 = vmul.f32 %v5262_v26, %v5262_v26 }
  0xec   :  { %v5267_v30 = vpop.f32.mrf.mxu0 }
  0xed   :  { %v650_v31 = vadd.f32 %v649_v29, %v587_v27  ;;  %v518_v32 = vadd.f32 %v517_v28, %v5267_v30  ;;  %v588_v33 = vmul.f32 %v5267_v30, %v5267_v30 }
  0xee   :  { %v5272_v34 = vpop.f32.mrf.mxu0 }
  0xef   :  { %v651_v36 = vadd.f32 %v650_v31, %v588_v33  ;;  %v519_v37 = vadd.f32 %v5262_v26, %v518_v32  ;;  %v591_v43 = vmul.f32 %v5272_v34, %v5272_v34 }
  0xf0   :  { %v5277_v38 = vpop.f32.mrf.mxu0 }
  0xf1   :  { %v520_v39 = vadd.f32 %v519_v37, %v5277_v38  ;;  %v590_v40 = vmul.f32 %v5277_v38, %v5277_v38  ;;  %v652_v41 = vadd.f32 %v651_v36, %v589_v35 }
  0xf2   :  { %v5282_v42 = vpop.f32.mrf.mxu0 }
  0xf3   :  { %v653_v44 = vadd.f32 %v652_v41, %v590_v40  ;;  %v521_v45 = vadd.f32 %v5272_v34, %v520_v39  ;;  %v593_v51 = vmul.f32 %v5282_v42, %v5282_v42 }
  0xf4   :  { %v5287_v46 = vpop.f32.mrf.mxu0 }
  0xf5   :  { %v522_v47 = vadd.f32 %v521_v45, %v5287_v46  ;;  %v592_v48 = vmul.f32 %v5287_v46, %v5287_v46  ;;  %v654_v49 = vadd.f32 %v653_v44, %v591_v43 }
  0xf6   :  { %v5292_v50 = vpop.f32.mrf.mxu0 }
  0xf7   :  { %v655_v52 = vadd.f32 %v654_v49, %v592_v48  ;;  %v523_v53 = vadd.f32 %v5282_v42, %v522_v47  ;;  %v595_v59 = vmul.f32 %v5292_v50, %v5292_v50 }
  0xf8   :  { %v5297_v54 = vpop.f32.mrf.mxu0 }
  0xf9   :  { %v524_v55 = vadd.f32 %v523_v53, %v5297_v54  ;;  %v594_v56 = vmul.f32 %v5297_v54, %v5297_v54  ;;  %v656_v57 = vadd.f32 %v655_v52, %v593_v51 }
  0xfa   :  { %v5302_v58 = vpop.f32.mrf.mxu0 }
  0xfb   :  { %v657_v60 = vadd.f32 %v656_v57, %v594_v56  ;;  %v525_v61 = vadd.f32 %v5292_v50, %v524_v55  ;;  %v597_v3 = vmul.f32 %v5302_v58, %v5302_v58 }
  0xfc   :  { %v5307_v62 = vpop.f32.mrf.mxu0 }
  0xfd   :  { %v526_v63 = vadd.f32 %v525_v61, %v5307_v62  ;;  %v596_v0 = vmul.f32 %v5307_v62, %v5307_v62  ;;  %v658_v1 = vadd.f32 %v657_v60, %v595_v59 }
  0xfe   :  { %v5312_v2 = vpop.f32.mrf.mxu0 }
  0xff   :  { %v659_v4 = vadd.f32 %v658_v1, %v596_v0  ;;  %v527_v5 = vadd.f32 %v5302_v58, %v526_v63  ;;  %v599_v11 = vmul.f32 %v5312_v2, %v5312_v2 }
 0x100   :  { %v5317_v6 = vpop.f32.mrf.mxu0 }
 0x101   :  { %v528_v7 = vadd.f32 %v527_v5, %v5317_v6  ;;  %v598_v8 = vmul.f32 %v5317_v6, %v5317_v6  ;;  %v660_v9 = vadd.f32 %v659_v4, %v597_v3 }
 0x102   :  { %v5322_v10 = vpop.f32.mrf.mxu0 }
 0x103   :  { %v661_v12 = vadd.f32 %v660_v9, %v598_v8  ;;  %v529_v13 = vadd.f32 %v5312_v2, %v528_v7  ;;  %v601_v23 = vmul.f32 %v5322_v10, %v5322_v10 }
 0x104   :  { %v5327_v14 = vpop.f32.mrf.mxu0 }
 0x105   :  { %v530_v15 = vadd.f32 %v529_v13, %v5327_v14  ;;  %v600_v18 = vmul.f32 %v5327_v14, %v5327_v14  ;;  %v662_v20 = vadd.f32 %v661_v12, %v599_v11 }
 0x106   :  { %v5332_v21 = vpop.f32.mrf.mxu0 }
 0x107   :  { %v663_v24 = vadd.f32 %v662_v20, %v600_v18  ;;  %v531_v25 = vadd.f32 %v5322_v10, %v530_v15  ;;  %v603_v33 = vmul.f32 %v5332_v21, %v5332_v21 }
 0x108   :  { %v5337_v27 = vpop.f32.mrf.mxu0 }
 0x109   :  { %v532_v28 = vadd.f32 %v531_v25, %v5337_v27  ;;  %v602_v29 = vmul.f32 %v5337_v27, %v5337_v27  ;;  %v664_v31 = vadd.f32 %v663_v24, %v601_v23 }
 0x10a   :  { %v5342_v32 = vpop.f32.mrf.mxu0 }
 0x10b   :  { %v665_v35 = vadd.f32 %v664_v31, %v602_v29  ;;  %v533_v36 = vadd.f32 %v5332_v21, %v532_v28  ;;  %v605_v44 = vmul.f32 %v5342_v32, %v5342_v32  ;;  %v3570_v28 = vld [vmem:[%s7518_s5 + $0xf8] sm:$0xff] }
 0x10c   :  { %v5347_v37 = vpop.f32.mrf.mxu0  ;;  %4243 = vmatprep.subr.mxu1 %v3570_v28 }
 0x10d   :  { %v534_v39 = vadd.f32 %v533_v36, %v5347_v37  ;;  %v604_v40 = vmul.f32 %v5347_v37, %v5347_v37  ;;  %v666_v41 = vadd.f32 %v665_v35, %v603_v33  ;;  %v3618_v35 = vld [vmem:[%s7518_s5 + $0x278] sm:$0xff]  ;;  %4244 = vmatpush3.msra.mxu1 %v3570_v28 }
 0x10e   :  { %v5352_v43 = vpop.f32.mrf.mxu0  ;;  %4467 = vmatprep.subr.mxu0 %v3618_v35 }
 0x10f   :  { %v667_v45 = vadd.f32 %v666_v41, %v604_v40  ;;  %v535_v47 = vadd.f32 %v5342_v32, %v534_v39  ;;  %v607_v55 = vmul.f32 %v5352_v43, %v5352_v43  ;;  %v3569_v39 = vld [vmem:[%s7518_s5 + $0xf0] sm:$0xff]  ;;  %4468 = vmatpush3.msra.mxu0 %v3618_v35 }
 0x110   :  { %v5357_v48 = vpop.f32.mrf.mxu0  ;;  %4245 = vmatprep.subr.mxu1 %v3569_v39 }
 0x111   :  { %v536_v49 = vadd.f32 %v535_v47, %v5357_v48  ;;  %v606_v51 = vmul.f32 %v5357_v48, %v5357_v48  ;;  %v668_v52 = vadd.f32 %v667_v45, %v605_v44  ;;  %v3617_v45 = vld [vmem:[%s7518_s5 + $0x270] sm:$0xff]  ;;  %4246 = vmatpush3.msra.mxu1 %v3569_v39 }
 0x112   :  { %v5362_v53 = vpop.f32.mrf.mxu0  ;;  %4469 = vmatprep.subr.mxu0 %v3617_v45 }
 0x113   :  { %v669_v56 = vadd.f32 %v668_v52, %v606_v51  ;;  %v537_v57 = vadd.f32 %v5352_v43, %v536_v49  ;;  %v609_v1 = vmul.f32 %v5362_v53, %v5362_v53  ;;  %v3568_v49 = vld [vmem:[%s7518_s5 + $0xe8] sm:$0xff]  ;;  %4470 = vmatpush3.msra.mxu0 %v3617_v45  ;;  %v3563_v45 = vld [vmem:[%s7518_s5 + $0xc0] sm:$0xff] }
 0x114   :  { %v5367_v59 = vpop.f32.mrf.mxu0  ;;  %4247 = vmatprep.subr.mxu1 %v3568_v49 }
 0x115   :  { %v538_v60 = vadd.f32 %v537_v57, %v5367_v59  ;;  %v608_v61 = vmul.f32 %v5367_v59, %v5367_v59  ;;  %v670_v63 = vadd.f32 %v669_v56, %v607_v55  ;;  %v3616_v56 = vld [vmem:[%s7518_s5 + $0x268] sm:$0xff]  ;;  %4248 = vmatpush3.msra.mxu1 %v3568_v49 }
 0x116   :  { %v5372_v0 = vpop.f32.mrf.mxu0  ;;  %4471 = vmatprep.subr.mxu0 %v3616_v56 }
 0x117   :  { %v671_v3 = vadd.f32 %v670_v63, %v608_v61  ;;  %v539_v4 = vadd.f32 %v5362_v53, %v538_v60  ;;  %v611_v12 = vmul.f32 %v5372_v0, %v5372_v0  ;;  %v3567_v60 = vld [vmem:[%s7518_s5 + $0xe0] sm:$0xff]  ;;  %4472 = vmatpush3.msra.mxu0 %v3616_v56 }
 0x118   :  { %v5377_v5 = vpop.f32.mrf.mxu0  ;;  %4249 = vmatprep.subr.mxu1 %v3567_v60 }
 0x119   :  { %v540_v7 = vadd.f32 %v539_v4, %v5377_v5  ;;  %v610_v8 = vmul.f32 %v5377_v5, %v5377_v5  ;;  %v672_v9 = vadd.f32 %v671_v3, %v609_v1  ;;  %v3615_v3 = vld [vmem:[%s7518_s5 + $0x260] sm:$0xff]  ;;  %4250 = vmatpush3.msra.mxu1 %v3567_v60  ;;  %v3562_v60 = vld [vmem:[%s7518_s5 + $0xb8] sm:$0xff] }
 0x11a   :  { %v5382_v11 = vpop.f32.mrf.mxu0  ;;  %4473 = vmatprep.subr.mxu0 %v3615_v3 }
 0x11b   :  { %v673_v13 = vadd.f32 %v672_v9, %v610_v8  ;;  %v541_v15 = vadd.f32 %v5372_v0, %v540_v7  ;;  %v613_v29 = vmul.f32 %v5382_v11, %v5382_v11  ;;  %v3566_v7 = vld [vmem:[%s7518_s5 + $0xd8] sm:$0xff]  ;;  %4474 = vmatpush3.msra.mxu0 %v3615_v3 }
 0x11c   :  { %v5387_v18 = vpop.f32.mrf.mxu0  ;;  %4251 = vmatprep.subr.mxu1 %v3566_v7  ;;  %v3610_v3 = vld [vmem:[%s7518_s5 + $0x238] sm:$0xff] }
 0x11d   :  { %v542_v20 = vadd.f32 %v541_v15, %v5387_v18  ;;  %v612_v23 = vmul.f32 %v5387_v18, %v5387_v18  ;;  %v674_v24 = vadd.f32 %v673_v13, %v611_v12  ;;  %v3614_v13 = vld [vmem:[%s7518_s5 + $0x258] sm:$0xff]  ;;  %4252 = vmatpush3.msra.mxu1 %v3566_v7 }
 0x11e   :  { %v5392_v25 = vpop.f32.mrf.mxu0  ;;  %4475 = vmatprep.subr.mxu0 %v3614_v13 }
 0x11f   :  { %v675_v31 = vadd.f32 %v674_v24, %v612_v23  ;;  %v543_v33 = vadd.f32 %v5382_v11, %v542_v20  ;;  %v615_v51 = vmul.f32 %v5392_v25, %v5392_v25  ;;  %v3565_v20 = vld [vmem:[%s7518_s5 + $0xd0] sm:$0xff]  ;;  %4476 = vmatpush3.msra.mxu0 %v3614_v13 }
 0x120   :  { %v5403_v36 = vpop.f32.mrf.mxu0  ;;  %4253 = vmatprep.subr.mxu1 %v3565_v20 }
 0x121   :  { %v544_v40 = vadd.f32 %v543_v33, %v5403_v36  ;;  %v614_v41 = vmul.f32 %v5403_v36, %v5403_v36  ;;  %v676_v44 = vadd.f32 %v675_v31, %v613_v29  ;;  %v3613_v29 = vld [vmem:[%s7518_s5 + $0x250] sm:$0xff]  ;;  %4254 = vmatpush3.msra.mxu1 %v3565_v20  ;;  %v3564_v33 = vld [vmem:[%s7518_s5 + $0xc8] sm:$0xff] }
 0x122   :  { %v5414_v47 = vpop.f32.mrf.mxu0  ;;  %4477 = vmatprep.subr.mxu0 %v3613_v29  ;;  %4255 = vmatprep.subr.mxu1 %v3564_v33  ;;  %v3609_v20 = vld [vmem:[%s7518_s5 + $0x230] sm:$0xff] }
 0x123   :  { %v677_v52 = vadd.f32 %v676_v44, %v614_v41  ;;  %v545_v55 = vadd.f32 %v5392_v25, %v544_v40  ;;  %v617_v8 = vmul.f32 %v5414_v47, %v5414_v47  ;;  %4478 = vmatpush3.msra.mxu0 %v3613_v29  ;;  %v3612_v41 = vld [vmem:[%s7518_s5 + $0x248] sm:$0xff]  ;;  %4256 = vmatpush3.msra.mxu1 %v3564_v33 }
 0x124   :  { %v5425_v57 = vpop.f32.mrf.mxu0  ;;  %4479 = vmatprep.subr.mxu0 %v3612_v41  ;;  %4257 = vmatprep.subr.mxu1 %v3563_v45 }
 0x125   :  { %v546_v61 = vadd.f32 %v545_v55, %v5425_v57  ;;  %v616_v63 = vmul.f32 %v5425_v57, %v5425_v57  ;;  %v678_v1 = vadd.f32 %v677_v52, %v615_v51  ;;  %4480 = vmatpush3.msra.mxu0 %v3612_v41  ;;  %v3611_v55 = vld [vmem:[%s7518_s5 + $0x240] sm:$0xff]  ;;  %4258 = vmatpush3.msra.mxu1 %v3563_v45 }
 0x126   :  { %v5436_v4 = vpop.f32.mrf.mxu0  ;;  %4481 = vmatprep.subr.mxu0 %v3611_v55  ;;  %4259 = vmatprep.subr.mxu1 %v3562_v60 }
 0x127   :  { %v679_v9 = vadd.f32 %v678_v1, %v616_v63  ;;  %v547_v12 = vadd.f32 %v5414_v47, %v546_v61  ;;  %v619_v35 = vmul.f32 %v5436_v4, %v5436_v4  ;;  %4482 = vmatpush3.msra.mxu0 %v3611_v55  ;;  %4260 = vmatpush3.msra.mxu1 %v3562_v60  ;;  %v3558_v55 = vld [vmem:[%s7518_s5 + $0x98] sm:$0xff] }
 0x128   :  { %v5447_v15 = vpop.f32.mrf.mxu0  ;;  %4483 = vmatprep.subr.mxu0 %v3610_v3 }
 0x129   :  { %v548_v23 = vadd.f32 %v547_v12, %v5447_v15  ;;  %v618_v24 = vmul.f32 %v5447_v15, %v5447_v15  ;;  %v680_v28 = vadd.f32 %v679_v9, %v617_v8  ;;  %v3561_v8 = vld [vmem:[%s7518_s5 + $0xb0] sm:$0xff]  ;;  %4484 = vmatpush3.msra.mxu0 %v3610_v3 }
 0x12a   :  { %v5458_v31 = vpop.f32.mrf.mxu0  ;;  %4261 = vmatprep.subr.mxu1 %v3561_v8  ;;  %4485 = vmatprep.subr.mxu0 %v3609_v20 }
 0x12b   :  { %v681_v39 = vadd.f32 %v680_v28, %v618_v24  ;;  %v549_v40 = vadd.f32 %v5436_v4, %v548_v23  ;;  %v621_v61 = vmul.f32 %v5458_v31, %v5458_v31  ;;  %4262 = vmatpush3.msra.mxu1 %v3561_v8  ;;  %v3560_v24 = vld [vmem:[%s7518_s5 + $0xa8] sm:$0xff]  ;;  %4486 = vmatpush3.msra.mxu0 %v3609_v20  ;;  %v3557_v8 = vld [vmem:[%s7518_s5 + $0x90] sm:$0xff] }
 0x12c   :  { %v5469_v44 = vpop.f32.mrf.mxu0  ;;  %4263 = vmatprep.subr.mxu1 %v3560_v24  ;;  %v3605_v20 = vld [vmem:[%s7518_s5 + $0x210] sm:$0xff] }
 0x12d   :  { %v550_v49 = vadd.f32 %v549_v40, %v5469_v44  ;;  %v620_v51 = vmul.f32 %v5469_v44, %v5469_v44  ;;  %v682_v52 = vadd.f32 %v681_v39, %v619_v35  ;;  %v3608_v35 = vld [vmem:[%s7518_s5 + $0x228] sm:$0xff]  ;;  %4264 = vmatpush3.msra.mxu1 %v3560_v24  ;;  %v3559_v40 = vld [vmem:[%s7518_s5 + $0xa0] sm:$0xff] }
 0x12e   :  { %v5480_v56 = vpop.f32.mrf.mxu0  ;;  %4487 = vmatprep.subr.mxu0 %v3608_v35  ;;  %4265 = vmatprep.subr.mxu1 %v3559_v40 }
 0x12f   :  { %7591 = vst [vmem:[#allocation6_spill] sm:$0xff] %v5480_v56  ;;  %v683_v63 = vadd.f32 %v682_v52, %v620_v51  ;;  %v551_v1 = vadd.f32 %v5458_v31, %v550_v49  ;;  %v623_v28 = vmul.f32 %v5480_v56, %v5480_v56  ;;  %4488 = vmatpush3.msra.mxu0 %v3608_v35  ;;  %v3607_v51 = vld [vmem:[%s7518_s5 + $0x220] sm:$0xff] }
 0x130   :  { %v5491_v7 = vpop.f32.mrf.mxu0  ;;  %4266 = vmatpush3.msra.mxu1 %v3559_v40  ;;  %4489 = vmatprep.subr.mxu0 %v3607_v51  ;;  %v3604_v40 = vld [vmem:[%s7518_s5 + $0x208] sm:$0xff] }
 0x131   :  { %7592 = vst [vmem:[#allocation7_spill] sm:$0xff] %v5491_v7  ;;  %v552_v9 = vadd.f32 %v551_v1, %v5491_v7  ;;  %v622_v12 = vmul.f32 %v5491_v7, %v5491_v7  ;;  %v684_v13 = vadd.f32 %v683_v63, %v621_v61  ;;  %4267 = vmatprep.subr.mxu1 %v3558_v55  ;;  %v3606_v1 = vld [vmem:[%s7518_s5 + $0x218] sm:$0xff] }
 0x132   :  { %v5502_v23 = vpop.f32.mrf.mxu0  ;;  %4490 = vmatpush3.msra.mxu0 %v3607_v51  ;;  %4268 = vmatpush3.msra.mxu1 %v3558_v55 }
 0x133   :  { %7593 = vst [vmem:[#allocation8_spill] sm:$0xff] %v5502_v23  ;;  %v685_v29 = vadd.f32 %v684_v13, %v622_v12  ;;  %v553_v33 = vadd.f32 %v5480_v56, %v552_v9  ;;  %v625_v60 = vmul.f32 %v5502_v23, %v5502_v23  ;;  %4491 = vmatprep.subr.mxu0 %v3606_v1 }
 0x134   :  { %v5513_v39 = vpop.f32.mrf.mxu0  ;;  %4269 = vmatprep.subr.mxu1 %v3557_v8  ;;  %4492 = vmatpush3.msra.mxu0 %v3606_v1  ;;  %v5611_v1 = vld [vmem:[%s7518_s5 + $0x78] sm:$0xff] }
 0x135   :  { %7594 = vst [vmem:[#allocation9_spill] sm:$0xff] %v5513_v39  ;;  %v554_v41 = vadd.f32 %v553_v33, %v5513_v39  ;;  %v624_v45 = vmul.f32 %v5513_v39, %v5513_v39  ;;  %v686_v49 = vadd.f32 %v685_v29, %v623_v28  ;;  %4270 = vmatpush3.msra.mxu1 %v3557_v8  ;;  %v3556_v28 = vld [vmem:[%s7518_s5 + $0x88] sm:$0xff]  ;;  %7600 = vst [vmem:[#allocation15_spill] sm:$0xff] %v5611_v1 }
 0x136   :  { %v5524_v52 = vpop.f32.mrf.mxu0  ;;  %4493 = vmatprep.subr.mxu0 %v3605_v20  ;;  %4271 = vmatprep.subr.mxu1 %v3556_v28 }
 0x137   :  { %7595 = vst [vmem:[#allocation10_spill] sm:$0xff] %v5524_v52  ;;  %v687_v61 = vadd.f32 %v686_v49, %v624_v45  ;;  %v555_v63 = vadd.f32 %v5502_v23, %v554_v41  ;;  %v627_v29 = vmul.f32 %v5524_v52, %v5524_v52  ;;  %4494 = vmatpush3.msra.mxu0 %v3605_v20  ;;  %v3555_v45 = vld [vmem:[%s7518_s5 + $0x80] sm:$0xff] }
 0x138   :  { %v5535_v3 = vpop.f32.mrf.mxu0  ;;  %4272 = vmatpush3.msra.mxu1 %v3556_v28  ;;  %4495 = vmatprep.subr.mxu0 %v3604_v40 }
 0x139   :  { %7596 = vst [vmem:[#allocation11_spill] sm:$0xff] %v5535_v3  ;;  %v556_v9 = vadd.f32 %v555_v63, %v5535_v3  ;;  %v626_v12 = vmul.f32 %v5535_v3, %v5535_v3  ;;  %v688_v13 = vadd.f32 %v687_v61, %v625_v60  ;;  %4273 = vmatprep.subr.mxu1 %v3555_v45  ;;  %v3603_v60 = vld [vmem:[%s7518_s5 + $0x200] sm:$0xff]  ;;  %v7528_v63 = vmov 0.0  }
 0x13a   :  { %v5546_v24 = vpop.f32.mrf.mxu0  ;;  %4496 = vmatpush3.msra.mxu0 %v3604_v40  ;;  %4274 = vmatpush3.msra.mxu1 %v3555_v45  ;;  %932 = vst [vmem:[#allocation2 + $0x3e0] sm:$0xff] %v7528_v63  ;;  %975 = vst [vmem:[#allocation2 + $0x240] sm:$0x1] %v7528_v63 }
 0x13b   :  { %7597 = vst [vmem:[#allocation12_spill] sm:$0xff] %v5546_v24  ;;  %v689_v33 = vadd.f32 %v688_v13, %v626_v12  ;;  %v557_v35 = vadd.f32 %v5524_v52, %v556_v9  ;;  %4275 = vmatprep.mubr.f32.mxu1 %v7528_v63  ;;  %976 = vst [vmem:[#allocation2 + $0x250] sm:$0x1] %v7528_v63  ;;  %v629_v8 = vmul.f32 %v5546_v24, %v5546_v24  ;;  %v5620_v13 = vld [vmem:[%s7518_s5 + $0x378] sm:$0xff] }
 0x13c   :  { %v5557_v41 = vpop.f32.mrf.mxu0  ;;  %977 = vst [vmem:[#allocation2 + $0x260] sm:$0x1] %v7528_v63  ;;  %978 = vst [vmem:[#allocation2 + $0x270] sm:$0x1] %v7528_v63  ;;  %4299 = vmatprep.subr.mxu1 %v5611_v1  ;;  %4497 = vmatprep.subr.mxu0 %v3603_v60 }
 0x13d   :  { %7598 = vst [vmem:[#allocation13_spill] sm:$0xff] %v5557_v41  ;;  %v558_v49 = vadd.f32 %v557_v35, %v5557_v41  ;;  %v628_v51 = vmul.f32 %v5557_v41, %v5557_v41  ;;  %v690_v55 = vadd.f32 %v689_v33, %v627_v29  ;;  %979 = vst [vmem:[#allocation2 + $0x280] sm:$0x1] %v7528_v63  ;;  %4498 = vmatpush3.msra.mxu0 %v3603_v60 }
 0x13e   :  { %v5568_v61 = vpop.f32.mrf.mxu0  ;;  %980 = vst [vmem:[#allocation2 + $0x290] sm:$0x1] %v7528_v63  ;;  %981 = vst [vmem:[#allocation2 + $0x2a0] sm:$0x1] %v7528_v63  ;;  %4579 = vmatprep.subr.mxu0 %v5620_v13 }
 0x13f   :  { %7599 = vst [vmem:[#allocation14_spill] sm:$0xff] %v5568_v61  ;;  %982 = vst [vmem:[#allocation2 + $0x2b0] sm:$0x1] %v7528_v63  ;;  %v691_v9 = vadd.f32 %v690_v55, %v628_v51  ;;  %v559_v12 = vadd.f32 %v5546_v24, %v558_v49  ;;  %v631_v40 = vmul.f32 %v5568_v61, %v5568_v61 }
 0x140   :  { %983 = vst [vmem:[#allocation2 + $0x2d0] sm:$0x1] %v7528_v63  ;;  %984 = vst [vmem:[#allocation2 + $0x2e0] sm:$0x1] %v7528_v63  ;;  %v5622_v20 = vpop.f32.mrf.mxu0 }
 0x141   :  { %985 = vst [vmem:[#allocation2 + $0x2f0] sm:$0x1] %v7528_v63  ;;  %986 = vst [vmem:[#allocation2 + $0x300] sm:$0x1] %v7528_v63  ;;  %v560_v28 = vadd.f32 %v559_v12, %v5622_v20  ;;  %v630_v29 = vmul.f32 %v5622_v20, %v5622_v20  ;;  %v692_v33 = vadd.f32 %v691_v9, %v629_v8 }
 0x142   :  { %987 = vst [vmem:[#allocation2 + $0x310] sm:$0x1] %v7528_v63  ;;  %988 = vst [vmem:[#allocation2 + $0x320] sm:$0x1] %v7528_v63  ;;  %v5628_v35 = vpop.f32.mrf.mxu0 }
 0x143   :  { %989 = vst [vmem:[#allocation2 + $0x330] sm:$0x1] %v7528_v63  ;;  %990 = vst [vmem:[#allocation2 + $0x340] sm:$0x1] %v7528_v63  ;;  %v693_v45 = vadd.f32 %v692_v33, %v630_v29  ;;  %v561_v49 = vadd.f32 %v5568_v61, %v560_v28  ;;  %v633_v8 = vmul.f32 %v5628_v35, %v5628_v35 }
 0x144   :  { %1045 = vst [vmem:[#allocation2] sm:$0xff] %v7528_v63  ;;  %1046 = vst [vmem:[#allocation2 + $0x8] sm:$0x1] %v7528_v63  ;;  %v5633_v51 = vpop.f32.mrf.mxu0 }
 0x145   :  { %1047 = vst [vmem:[#allocation2 + $0x90] sm:$0xff] %v7528_v63  ;;  %1048 = vst [vmem:[#allocation2 + $0x98] sm:$0x1] %v7528_v63  ;;  %v562_v55 = vadd.f32 %v561_v49, %v5633_v51  ;;  %v632_v60 = vmul.f32 %v5633_v51, %v5633_v51  ;;  %v694_v12 = vadd.f32 %v693_v45, %v631_v40 }
 0x146   :  { %1050 = vst [vmem:[#allocation2 + $0x10] sm:$0x1] %v7528_v63  ;;  %1051 = vst [vmem:[#allocation2 + $0x20] sm:$0x1] %v7528_v63 }
 0x147   :  { %1052 = vst [vmem:[#allocation2 + $0x30] sm:$0x1] %v7528_v63  ;;  %1053 = vst [vmem:[#allocation2 + $0x40] sm:$0x1] %v7528_v63  ;;  %v695_v9 = vadd.f32 %v694_v12, %v632_v60  ;;  %v563_v1 = vadd.f32 %v5628_v35, %v562_v55 }
 0x148   :  { %1054 = vst [vmem:[#allocation2 + $0x50] sm:$0x1] %v7528_v63  ;;  %1055 = vst [vmem:[#allocation2 + $0x60] sm:$0x1] %v7528_v63 }
 0x149   :  { %1056 = vst [vmem:[#allocation2 + $0x70] sm:$0x1] %v7528_v63  ;;  %1057 = vst [vmem:[#allocation2 + $0x80] sm:$0x1] %v7528_v63  ;;  %v696_v33 = vadd.f32 %v695_v9, %v633_v8 }
 0x14a   :  { %1058 = vst [vmem:[#allocation2 + $0xa0] sm:$0x1] %v7528_v63  ;;  %1059 = vst [vmem:[#allocation2 + $0xb0] sm:$0x1] %v7528_v63 }
 0x14b   :  { %1060 = vst [vmem:[#allocation2 + $0xc0] sm:$0x1] %v7528_v63  ;;  %1061 = vst [vmem:[#allocation2 + $0xd0] sm:$0x1] %v7528_v63 }
 0x14c   :  { %1062 = vst [vmem:[#allocation2 + $0xe0] sm:$0x1] %v7528_v63  ;;  %1063 = vst [vmem:[#allocation2 + $0xf0] sm:$0x1] %v7528_v63 }
 0x14d   :  { %1064 = vst [vmem:[#allocation2 + $0x100] sm:$0x1] %v7528_v63  ;;  %1065 = vst [vmem:[#allocation2 + $0x110] sm:$0x1] %v7528_v63  ;;  %v5638_v63 = vpop.f32.mrf.mxu0 }
 0x14e   :  { %7601 = vst [vmem:[#allocation16_spill] sm:$0xff] %v5620_v13  ;;  %7602 = vst [vmem:[#allocation17_spill] sm:$0xff] %v5622_v20  ;;  %v635_v40 = vmul.f32 %v5638_v63, %v5638_v63 }
 0x14f   :  { %7603 = vst [vmem:[#allocation18_spill] sm:$0xff] %v5628_v35  ;;  %7604 = vst [vmem:[#allocation19_spill] sm:$0xff] %v5633_v51  ;;  %v5643_v13 = vpop.f32.mrf.mxu0 }
 0x150   :  { %7605 = vst [vmem:[#allocation20_spill] sm:$0xff] %v5638_v63  ;;  %7606 = vst [vmem:[#allocation21_spill] sm:$0xff] %v5643_v13  ;;  %v564_v28 = vadd.f32 %v563_v1, %v5643_v13  ;;  %v634_v29 = vmul.f32 %v5643_v13, %v5643_v13 }
 0x151   :  { %v5648_v49 = vpop.f32.mrf.mxu0 }
 0x152   :  { %7607 = vst [vmem:[#allocation22_spill] sm:$0xff] %v5648_v49  ;;  %v697_v45 = vadd.f32 %v696_v33, %v634_v29  ;;  %v565_v51 = vadd.f32 %v5638_v63, %v564_v28  ;;  %v637_v8 = vmul.f32 %v5648_v49, %v5648_v49 }
 0x153   :  { %v5653_v61 = vpop.f32.mrf.mxu0 }
 0x154   :  { %7608 = vst [vmem:[#allocation23_spill] sm:$0xff] %v5653_v61  ;;  %v566_v55 = vadd.f32 %v565_v51, %v5653_v61  ;;  %v636_v60 = vmul.f32 %v5653_v61, %v5653_v61  ;;  %v698_v1 = vadd.f32 %v697_v45, %v635_v40 }
 0x155   :  { %v5658_v12 = vpop.f32.mrf.mxu0 }
 0x156   :  { %7609 = vst [vmem:[#allocation24_spill] sm:$0xff] %v5658_v12  ;;  %v699_v9 = vadd.f32 %v698_v1, %v636_v60  ;;  %v567_v13 = vadd.f32 %v5648_v49, %v566_v55  ;;  %v639_v40 = vmul.f32 %v5658_v12, %v5658_v12 }
 0x157   :  { %v5663_v35 = vpop.f32.mrf.mxu0 }
 0x158   :  { %7610 = vst [vmem:[#allocation25_spill] sm:$0xff] %v5663_v35  ;;  %v568_v28 = vadd.f32 %v567_v13, %v5663_v35  ;;  %v638_v29 = vmul.f32 %v5663_v35, %v5663_v35  ;;  %v700_v51 = vadd.f32 %v699_v9, %v637_v8 }
 0x159   :  { %v5668_v33 = vpop.f32.mrf.mxu0 }
 0x15a   :  { %7611 = vst [vmem:[#allocation26_spill] sm:$0xff] %v5668_v33  ;;  %v701_v45 = vadd.f32 %v700_v51, %v638_v29  ;;  %v569_v61 = vadd.f32 %v5658_v12, %v568_v28  ;;  %v641_v8 = vmul.f32 %v5668_v33, %v5668_v33 }
 0x15b   :  { %v5673_v63 = vpop.f32.mrf.mxu0 }
 0x15c   :  { %7612 = vst [vmem:[#allocation27_spill] sm:$0xff] %v5673_v63  ;;  %v570_v55 = vadd.f32 %v569_v61, %v5673_v63  ;;  %v640_v60 = vmul.f32 %v5673_v63, %v5673_v63  ;;  %v702_v13 = vadd.f32 %v701_v45, %v639_v40 }
 0x15d   :  { %v5678_v1 = vpop.f32.mrf.mxu0 }
 0x15e   :  { %7613 = vst [vmem:[#allocation28_spill] sm:$0xff] %v5678_v1  ;;  %v703_v9 = vadd.f32 %v702_v13, %v640_v60  ;;  %v571_v35 = vadd.f32 %v5668_v33, %v570_v55  ;;  %v643_v40 = vmul.f32 %v5678_v1, %v5678_v1 }
 0x15f   :  { %v5683_v49 = vpop.f32.mrf.mxu0 }
 0x160   :  { %7614 = vst [vmem:[#allocation29_spill] sm:$0xff] %v5683_v49  ;;  %v572_v28 = vadd.f32 %v571_v35, %v5683_v49  ;;  %v642_v29 = vmul.f32 %v5683_v49, %v5683_v49  ;;  %v704_v61 = vadd.f32 %v703_v9, %v641_v8 }
 0x161   :  { %v5688_v51 = vpop.f32.mrf.mxu0 }
 0x162   :  { %7615 = vst [vmem:[#allocation30_spill] sm:$0xff] %v5688_v51  ;;  %v705_v45 = vadd.f32 %v704_v61, %v642_v29  ;;  %v573_v63 = vadd.f32 %v5678_v1, %v572_v28  ;;  %v645_v8 = vmul.f32 %v5688_v51, %v5688_v51 }
 0x163   :  { %v5693_v12 = vpop.f32.mrf.mxu0 }
 0x164   :  { %7616 = vst [vmem:[#allocation31_spill] sm:$0xff] %v5693_v12  ;;  %v574_v55 = vadd.f32 %v573_v63, %v5693_v12  ;;  %v644_v60 = vmul.f32 %v5693_v12, %v5693_v12  ;;  %v706_v35 = vadd.f32 %v705_v45, %v643_v40 }
 0x165   :  { %v5698_v13 = vpop.f32.mrf.mxu0 }
 0x166   :  { %v707_v9 = vadd.f32 %v706_v35, %v644_v60  ;;  %v575_v49 = vadd.f32 %v5688_v51, %v574_v55  ;;  %v647_v1 = vmul.f32 %v5698_v13, %v5698_v13 }
 0x167   :  { %v504_v33 = vpop.f32.mrf.mxu0 }
 0x168   :  { %v576_v29 = vadd.f32 %v575_v49, %v504_v33  ;;  %v646_v61 = vmul.f32 %v504_v33, %v504_v33  ;;  %v708_v28 = vadd.f32 %v707_v9, %v645_v8 }
 0x16a   :  { %v577_v63 = vadd.f32 %v5698_v13, %v576_v29  ;;  %v709_v20 = vadd.f32 %v708_v28, %v646_v61  ;;  %v728_v61 = vlaneseq }
 0x16c   :  { %v578_v12 = vrot.slane %v577_v63, 4  ;;  %v710_v40 = vadd.f32 %v709_v20, %v647_v1  ;;  %v729_v20 = vshrl.u32 %v728_v61, 7 }
 0x16e   :  { %v579_v45 = vadd.f32 %v578_v12, %v577_v63  ;;  %v711_v24 = vrot.slane %v710_v40, 4 }
 0x170   :  { %v580_v41 = vrot.slane %v579_v45, 2  ;;  %v712_v52 = vadd.f32 %v711_v24, %v710_v40  ;;  %v513_v24 = vld [vmem:[%s7516_s3] sm:$0x1] }
 0x172   :  { %v581_v3 = vadd.f32 %v580_v41, %v579_v45  ;;  %v713_v60 = vrot.slane %v712_v52, 2  ;;  %v5709_v41 = vsub.s32 0, %v729_v20  ;;  %v7624_v20 = vld [vmem:[#allocation13_spill] sm:$0xff] }
 0x174   :  { %v582_v35 = vrot.slane %v581_v3, 1  ;;  %v714_v55 = vadd.f32 %v713_v60, %v712_v52  ;;  %7617 = vst [vmem:[#allocation32_spill] sm:$0xff] %v5709_v41 }
 0x176   :  { %v583_v51 = vadd.f32 %v582_v35, %v581_v3  ;;  %v715_v49 = vrot.slane %v714_v55, 1  ;;  %v514_v3 = vld [vmem:[%s7517_s4] sm:$0x1]  ;;  %v7618_v35 = vld [vmem:[#allocation7_spill] sm:$0xff] }
 0x178   :  { %v716_v23 = vadd.f32 %v715_v49, %v714_v55  ;;  %v717_v8 = vmul.f32 0.001953125, %v583_v51  ;;  %v7619_v55 = vld [vmem:[#allocation6_spill] sm:$0xff]  ;;  %v7620_v49 = vld [vmem:[#allocation9_spill] sm:$0xff] }
 0x17a   :  { %v718_v9 = vmul.f32 0.001953125, %v716_v23  ;;  %v719_v39 = vmul.f32 %v717_v8, %v717_v8 }
 0x17c   :  { %v720_v56 = vsub.f32 %v718_v9, %v719_v39  ;;  %v7622_v9 = vld [vmem:[#allocation11_spill] sm:$0xff] }
 0x17e   :  { %v721_v7 = vmax.f32 %v720_v56, 0.0 }
 0x180   :  { %v722_v29 = vadd.f32 1e-05, %v721_v7 }
 0x182   :  { %4895 = vrsqrt.f32 %v722_v29  ;;  %v7623_v29 = vld [vmem:[#allocation10_spill] sm:$0xff] }
 0x18f   :  { %v4896_v12 = vpop.eup %4895 }
 0x190   :  { %v724_v52 = vmul.f32 %v4896_v12, %v513_v24  ;;  %v7625_v12 = vld [vmem:[#allocation12_spill] sm:$0xff] }
 0x192   :  { %v725_v23 = vmul.f32 %v724_v52, %v717_v8  ;;  %v5715_v39 = vrot.slane %v724_v52, %v5709_v41  ;;  %v7621_v8 = vld [vmem:[#allocation8_spill] sm:$0xff] }
 0x194   :  { %v726_v56 = vsub.f32 %v514_v3, %v725_v23  ;;  %v795_v7 = vmul.f32 %v5715_v39, %v504_v33  ;;  %v5720_v1 = vmul.f32 %v5715_v39, %v5247_v17  ;;  %v5724_v51 = vmul.f32 %v5245_v16, %v5715_v39  ;;  %v7626_v3 = vld [vmem:[#allocation17_spill] sm:$0xff] }
 0x195   :  { %v5728_v28 = vmul.f32 %v5715_v39, %v5257_v22  ;;  %v5732_v63 = vmul.f32 %v5251_v19, %v5715_v39  ;;  %v5736_v40 = vmul.f32 %v5715_v39, %v5267_v30  ;;  %v5740_v17 = vmul.f32 %v5262_v26, %v5715_v39 }
 0x196   :  { %v5743_v33 = vrot.slane %v726_v56, %v5709_v41  ;;  %v5747_v16 = vmul.f32 %v5715_v39, %v5277_v38  ;;  %v5751_v22 = vmul.f32 %v5272_v34, %v5715_v39  ;;  %v5755_v19 = vmul.f32 %v5715_v39, %v5287_v46  ;;  %v7627_v56 = vld [vmem:[#allocation14_spill] sm:$0xff]  ;;  %v7640_v41 = vld [vmem:[#allocation24_spill] sm:$0xff] }
 0x197   :  { %v5759_v30 = vmul.f32 %v5282_v42, %v5715_v39  ;;  %v5763_v26 = vmul.f32 %v5715_v39, %v5297_v54  ;;  %v5767_v38 = vmul.f32 %v5292_v50, %v5715_v39  ;;  %v5771_v34 = vmul.f32 %v5715_v39, %v5307_v62 }
 0x198   :  { %v865_v45 = vadd.f32 %v5743_v33, %v795_v7  ;;  %v5776_v46 = vmul.f32 %v5302_v58, %v5715_v39  ;;  %v5780_v42 = vmul.f32 %v5715_v39, %v5317_v6  ;;  %v5784_v54 = vmul.f32 %v5312_v2, %v5715_v39 }
 0x199   :  { %v5788_v50 = vmul.f32 %v5715_v39, %v5327_v14  ;;  %v5792_v62 = vmul.f32 %v5322_v10, %v5715_v39  ;;  %v5796_v58 = vmul.f32 %v5715_v39, %v5337_v27  ;;  %v5800_v6 = vmul.f32 %v5332_v21, %v5715_v39 }
 0x19a   :  { %v929_v60 = vmax.f32 %v865_v45, 0.0  ;;  %v5804_v2 = vmul.f32 %v5715_v39, %v5347_v37  ;;  %v5808_v14 = vmul.f32 %v5342_v32, %v5715_v39  ;;  %v5812_v10 = vmul.f32 %v5715_v39, %v5357_v48  ;;  %v7628_v45 = vld [vmem:[#allocation19_spill] sm:$0xff] }
 0x19b   :  { %v5816_v27 = vmul.f32 %v5352_v43, %v5715_v39  ;;  %v5820_v21 = vmul.f32 %v5715_v39, %v5367_v59  ;;  %v5824_v37 = vmul.f32 %v5362_v53, %v5715_v39  ;;  %v5828_v32 = vmul.f32 %v5715_v39, %v5377_v5 }
 0x19c   :  { %1080 = vst [vmem:[#allocation2 + $0x101] sm:$0xff] %v929_v60  ;;  %v5832_v48 = vmul.f32 %v5372_v0, %v5715_v39  ;;  %v5836_v43 = vmul.f32 %v5715_v39, %v5387_v18  ;;  %v5840_v59 = vmul.f32 %v5382_v11, %v5715_v39  ;;  %v5844_v53 = vmul.f32 %v5715_v39, %v5403_v36 }
 0x19d   :  { %v5848_v5 = vmul.f32 %v5392_v25, %v5715_v39  ;;  %v5852_v0 = vmul.f32 %v5715_v39, %v5425_v57  ;;  %v5856_v18 = vmul.f32 %v5414_v47, %v5715_v39  ;;  %v5860_v11 = vmul.f32 %v5715_v39, %v5447_v15 }
 0x19e   :  { %v5864_v36 = vmul.f32 %v5436_v4, %v5715_v39  ;;  %v5868_v25 = vmul.f32 %v5715_v39, %v5469_v44  ;;  %v5872_v57 = vmul.f32 %v5458_v31, %v5715_v39  ;;  %v5876_v47 = vmul.f32 %v5715_v39, %v7618_v35  ;;  %v7629_v35 = vld [vmem:[#allocation18_spill] sm:$0xff] }
 0x19f   :  { %v5880_v15 = vmul.f32 %v7619_v55, %v5715_v39  ;;  %v5884_v4 = vmul.f32 %v5715_v39, %v7620_v49  ;;  %v5888_v44 = vmul.f32 %v7621_v8, %v5715_v39  ;;  %v5892_v31 = vmul.f32 %v5715_v39, %v7622_v9  ;;  %v7630_v49 = vld [vmem:[#allocation21_spill] sm:$0xff]  ;;  %v7632_v9 = vld [vmem:[#allocation20_spill] sm:$0xff] }
 0x1a0   :  { %v5896_v61 = vmul.f32 %v7623_v29, %v5715_v39  ;;  %v5900_v24 = vmul.f32 %v5715_v39, %v7624_v20  ;;  %v5904_v52 = vmul.f32 %v7625_v12, %v5715_v39  ;;  %v5908_v23 = vmul.f32 %v5715_v39, %v7626_v3  ;;  %v7634_v20 = vld [vmem:[#allocation23_spill] sm:$0xff]  ;;  %v7636_v3 = vld [vmem:[#allocation22_spill] sm:$0xff] }
 0x1a1   :  { %v5912_v7 = vmul.f32 %v7627_v56, %v5715_v39  ;;  %v5916_v60 = vmul.f32 %v5715_v39, %v7628_v45  ;;  %v5920_v55 = vmul.f32 %v7629_v35, %v5715_v39  ;;  %v5924_v8 = vmul.f32 %v5715_v39, %v7630_v49  ;;  %v7638_v45 = vld [vmem:[#allocation25_spill] sm:$0xff] }
 0x1a2   :  { %v5928_v29 = vmul.f32 %v7632_v9, %v5715_v39  ;;  %v5932_v12 = vmul.f32 %v5715_v39, %v7634_v20  ;;  %v5936_v56 = vmul.f32 %v7636_v3, %v5715_v39  ;;  %v5940_v35 = vmul.f32 %v5715_v39, %v7638_v45 }
 0x1a3   :  { %7631 = vst [vmem:[#allocation7_spill] sm:$0xff] %v5924_v8  ;;  %v5944_v49 = vmul.f32 %v7640_v41, %v5715_v39  ;;  %v7642_v8 = vld [vmem:[#allocation27_spill] sm:$0xff] }
 0x1a4   :  { %7633 = vst [vmem:[#allocation6_spill] sm:$0xff] %v5928_v29  ;;  %7635 = vst [vmem:[#allocation9_spill] sm:$0xff] %v5932_v12  ;;  %v5948_v9 = vmul.f32 %v5715_v39, %v7642_v8  ;;  %v7643_v29 = vld [vmem:[#allocation26_spill] sm:$0xff]  ;;  %v7644_v12 = vld [vmem:[#allocation29_spill] sm:$0xff] }
 0x1a5   :  { %7637 = vst [vmem:[#allocation8_spill] sm:$0xff] %v5936_v56  ;;  %7639 = vst [vmem:[#allocation11_spill] sm:$0xff] %v5940_v35  ;;  %v5952_v20 = vmul.f32 %v7643_v29, %v5715_v39  ;;  %v5956_v3 = vmul.f32 %v5715_v39, %v7644_v12  ;;  %v7645_v56 = vld [vmem:[#allocation28_spill] sm:$0xff]  ;;  %v7646_v35 = vld [vmem:[#allocation31_spill] sm:$0xff]  ;;  %v5972_v29 = vmul.f32 %v5698_v13, %v5715_v39 }
 0x1a6   :  { %7641 = vst [vmem:[#allocation10_spill] sm:$0xff] %v5944_v49  ;;  %v5960_v45 = vmul.f32 %v7645_v56, %v5715_v39  ;;  %v5964_v41 = vmul.f32 %v5715_v39, %v7646_v35  ;;  %v7647_v49 = vld [vmem:[#allocation30_spill] sm:$0xff]  ;;  %v5976_v12 = vadd.f32 %v5743_v33, %v5720_v1  ;;  %v5980_v56 = vadd.f32 %v5743_v33, %v5724_v51 }
 0x1a7   :  { %v5968_v8 = vmul.f32 %v7647_v49, %v5715_v39  ;;  %v5984_v35 = vadd.f32 %v5743_v33, %v5728_v28  ;;  %v5988_v49 = vadd.f32 %v5743_v33, %v5732_v63  ;;  %v5992_v13 = vadd.f32 %v5743_v33, %v5736_v40 }
 0x1a8   :  { %v5996_v39 = vadd.f32 %v5743_v33, %v5740_v17  ;;  %v6000_v1 = vadd.f32 %v5743_v33, %v5747_v16  ;;  %v6004_v51 = vadd.f32 %v5743_v33, %v5751_v22  ;;  %v6008_v28 = vadd.f32 %v5743_v33, %v5755_v19 }
 0x1a9   :  { %v6012_v63 = vadd.f32 %v5743_v33, %v5759_v30  ;;  %v6016_v40 = vadd.f32 %v5743_v33, %v5763_v26  ;;  %v6020_v17 = vadd.f32 %v5743_v33, %v5767_v38  ;;  %v6024_v16 = vadd.f32 %v5743_v33, %v5771_v34 }
 0x1aa   :  { %v6028_v22 = vadd.f32 %v5743_v33, %v5776_v46  ;;  %v6032_v19 = vadd.f32 %v5743_v33, %v5780_v42  ;;  %v6036_v30 = vadd.f32 %v5743_v33, %v5784_v54  ;;  %v6040_v26 = vadd.f32 %v5743_v33, %v5788_v50 }
 0x1ab   :  { %v6044_v38 = vadd.f32 %v5743_v33, %v5792_v62  ;;  %v6048_v34 = vadd.f32 %v5743_v33, %v5796_v58  ;;  %v6052_v46 = vadd.f32 %v5743_v33, %v5800_v6  ;;  %v6056_v42 = vadd.f32 %v5743_v33, %v5804_v2 }
 0x1ac   :  { %v6060_v54 = vadd.f32 %v5743_v33, %v5808_v14  ;;  %v6064_v50 = vadd.f32 %v5743_v33, %v5812_v10  ;;  %v6068_v62 = vadd.f32 %v5743_v33, %v5816_v27  ;;  %v6072_v58 = vadd.f32 %v5743_v33, %v5820_v21 }
 0x1ad   :  { %v6076_v6 = vadd.f32 %v5743_v33, %v5824_v37  ;;  %v6080_v2 = vadd.f32 %v5743_v33, %v5828_v32  ;;  %v6084_v14 = vadd.f32 %v5743_v33, %v5832_v48  ;;  %v6088_v10 = vadd.f32 %v5743_v33, %v5836_v43 }
 0x1ae   :  { %v6092_v27 = vadd.f32 %v5743_v33, %v5840_v59  ;;  %v6096_v21 = vadd.f32 %v5743_v33, %v5844_v53  ;;  %v6100_v37 = vadd.f32 %v5743_v33, %v5848_v5  ;;  %v6104_v32 = vadd.f32 %v5743_v33, %v5852_v0 }
 0x1af   :  { %v6108_v48 = vadd.f32 %v5743_v33, %v5856_v18  ;;  %v6112_v43 = vadd.f32 %v5743_v33, %v5860_v11  ;;  %v6116_v59 = vadd.f32 %v5743_v33, %v5864_v36  ;;  %v6120_v53 = vadd.f32 %v5743_v33, %v5868_v25 }
 0x1b0   :  { %v6124_v5 = vadd.f32 %v5743_v33, %v5872_v57  ;;  %v6128_v0 = vadd.f32 %v5743_v33, %v5876_v47  ;;  %v6132_v18 = vadd.f32 %v5743_v33, %v5880_v15  ;;  %v6136_v11 = vadd.f32 %v5743_v33, %v5884_v4 }
 0x1b1   :  { %v6140_v36 = vadd.f32 %v5743_v33, %v5888_v44  ;;  %v6144_v25 = vadd.f32 %v5743_v33, %v5892_v31  ;;  %v6148_v57 = vadd.f32 %v5743_v33, %v5896_v61  ;;  %v6152_v47 = vadd.f32 %v5743_v33, %v5900_v24  ;;  %v7653_v24 = vld [vmem:[#allocation7_spill] sm:$0xff] }
 0x1b2   :  { %v6156_v15 = vadd.f32 %v5743_v33, %v5904_v52  ;;  %v6160_v4 = vadd.f32 %v5743_v33, %v5908_v23  ;;  %v6164_v44 = vadd.f32 %v5743_v33, %v5912_v7  ;;  %v6168_v31 = vadd.f32 %v5743_v33, %v5916_v60 }
 0x1b3   :  { %v6172_v61 = vadd.f32 %v5743_v33, %v5920_v55  ;;  %v6176_v52 = vadd.f32 %v5743_v33, %v7653_v24 }
 0x1b4   :  { %7648 = vst [vmem:[#allocation13_spill] sm:$0xff] %v6156_v15  ;;  %7649 = vst [vmem:[#allocation12_spill] sm:$0xff] %v6160_v4  ;;  %v7654_v15 = vld [vmem:[#allocation6_spill] sm:$0xff]  ;;  %v7655_v4 = vld [vmem:[#allocation9_spill] sm:$0xff] }
 0x1b5   :  { %7650 = vst [vmem:[#allocation17_spill] sm:$0xff] %v6164_v44  ;;  %7651 = vst [vmem:[#allocation14_spill] sm:$0xff] %v6168_v31  ;;  %v6180_v23 = vadd.f32 %v5743_v33, %v7654_v15  ;;  %v6184_v7 = vadd.f32 %v5743_v33, %v7655_v4  ;;  %v7656_v44 = vld [vmem:[#allocation8_spill] sm:$0xff]  ;;  %v7657_v31 = vld [vmem:[#allocation11_spill] sm:$0xff]  ;;  %v6200_v15 = vadd.f32 %v5743_v33, %v5948_v9 }
 0x1b6   :  { %7652 = vst [vmem:[#allocation19_spill] sm:$0xff] %v6172_v61  ;;  %v6188_v60 = vadd.f32 %v5743_v33, %v7656_v44  ;;  %v6192_v55 = vadd.f32 %v5743_v33, %v7657_v31  ;;  %v7658_v61 = vld [vmem:[#allocation10_spill] sm:$0xff]  ;;  %v6204_v4 = vadd.f32 %v5743_v33, %v5952_v20  ;;  %v6208_v44 = vadd.f32 %v5743_v33, %v5956_v3 }
 0x1b7   :  { %v6196_v24 = vadd.f32 %v5743_v33, %v7658_v61  ;;  %v6212_v31 = vadd.f32 %v5743_v33, %v5960_v45  ;;  %v6216_v61 = vadd.f32 %v5743_v33, %v5964_v41  ;;  %v6220_v9 = vadd.f32 %v5743_v33, %v5968_v8  ;;  %v7664_v8 = vld [vmem:[#allocation16_spill] sm:$0xff] }
 0x1b8   :  { %7659 = vst [vmem:[#allocation18_spill] sm:$0xff] %v6204_v4  ;;  %7660 = vst [vmem:[#allocation21_spill] sm:$0xff] %v6208_v44  ;;  %v6224_v20 = vadd.f32 %v5743_v33, %v5972_v29  ;;  %v867_v4 = vmax.f32 %v5976_v12, 0.0  ;;  %v868_v3 = vmax.f32 %v5980_v56, 0.0  ;;  %v869_v44 = vmax.f32 %v5984_v35, 0.0  ;;  %v3649_v33 = vld [vmem:[%s7518_s5 + $0x370] sm:$0xff] }
 0x1b9   :  { %7661 = vst [vmem:[#allocation20_spill] sm:$0xff] %v6212_v31  ;;  %7662 = vst [vmem:[#allocation23_spill] sm:$0xff] %v6216_v61  ;;  %v870_v45 = vmax.f32 %v5988_v49, 0.0  ;;  %v871_v31 = vmax.f32 %v5992_v13, 0.0  ;;  %v872_v41 = vmax.f32 %v5996_v39, 0.0  ;;  %v873_v61 = vmax.f32 %v6000_v1, 0.0 }
 0x1ba   :  { %7663 = vst [vmem:[#allocation22_spill] sm:$0xff] %v6220_v9  ;;  %4499 = vmatprep.mubr.f32.mxu0 %v867_v4  ;;  %v876_v29 = vmax.f32 %v6012_v63, 0.0  ;;  %v881_v13 = vmax.f32 %v6032_v19, 0.0  ;;  %v883_v4 = vmax.f32 %v6040_v26, 0.0  ;;  %v3648_v12 = vld [vmem:[%s7518_s5 + $0x368] sm:$0xff]  ;;  %v884_v56 = vmax.f32 %v6044_v38, 0.0 }
 0x1bb   :  { %4500 = vmatmul.mubr.f32.vlgmr.msra.gmra.mxu0 %v868_v3  ;;  %v885_v35 = vmax.f32 %v6048_v34, 0.0  ;;  %v886_v3 = vmax.f32 %v6052_v46, 0.0  ;;  %v887_v49 = vmax.f32 %v6056_v42, 0.0  ;;  %v888_v9 = vmax.f32 %v6060_v54, 0.0  ;;  %v3647_v38 = vld [vmem:[%s7518_s5 + $0x360] sm:$0xff]  ;;  %v1107_v1 = vld [vmem:[%s7518_s5 + $0x48] sm:$0xff] }
 0x1bc   :  { %4502 = vmatprep.mubr.f32.mxu0 %v869_v44  ;;  %4580 = vmatpush3.msra.mxu0 %v7664_v8  ;;  %v889_v26 = vmax.f32 %v6064_v50, 0.0  ;;  %v890_v44 = vmax.f32 %v6068_v62, 0.0  ;;  %v891_v8 = vmax.f32 %v6072_v58, 0.0  ;;  %991 = vst [vmem:[#allocation2 + $0x241] sm:$0xff] %v883_v4  ;;  %v892_v34 = vmax.f32 %v6076_v6, 0.0  ;;  %992 = vst [vmem:[#allocation2 + $0x251] sm:$0xff] %v884_v56 }
 0x1bd   :  { %4581 = vmatprep.subr.mxu0 %v3649_v33  ;;  %v893_v46 = vmax.f32 %v6080_v2, 0.0  ;;  %v894_v42 = vmax.f32 %v6084_v14, 0.0  ;;  %v895_v54 = vmax.f32 %v6088_v10, 0.0  ;;  %993 = vst [vmem:[#allocation2 + $0x261] sm:$0xff] %v885_v35  ;;  %994 = vst [vmem:[#allocation2 + $0x271] sm:$0xff] %v886_v3  ;;  %v896_v50 = vmax.f32 %v6092_v27, 0.0 }
 0x1be   :  { %4582 = vmatpush3.msra.mxu0 %v3649_v33  ;;  %995 = vst [vmem:[#allocation2 + $0x281] sm:$0xff] %v887_v49  ;;  %v897_v62 = vmax.f32 %v6096_v21, 0.0  ;;  %v898_v58 = vmax.f32 %v6100_v37, 0.0  ;;  %v899_v6 = vmax.f32 %v6104_v32, 0.0  ;;  %996 = vst [vmem:[#allocation2 + $0x291] sm:$0xff] %v888_v9  ;;  %v900_v2 = vmax.f32 %v6108_v48, 0.0 }
 0x1bf   :  { %4503 = vmatmul.mubr.f32.gmra.mxu0 %v870_v45  ;;  %4583 = vmatprep.subr.mxu0 %v3648_v12  ;;  %997 = vst [vmem:[#allocation2 + $0x2a1] sm:$0xff] %v889_v26  ;;  %998 = vst [vmem:[#allocation2 + $0x2b1] sm:$0xff] %v890_v44  ;;  %v901_v14 = vmax.f32 %v6112_v43, 0.0  ;;  %v902_v10 = vmax.f32 %v6116_v59, 0.0  ;;  %v903_v27 = vmax.f32 %v6120_v53, 0.0  ;;  %v1112_v21 = vld [vmem:[%s7518_s5 + $0x70] sm:$0xff] }
 0x1c0   :  { %999 = vst [vmem:[#allocation2 + $0x2d1] sm:$0xff] %v891_v8  ;;  %4505 = vmatprep.mubr.f32.mxu0 %v871_v31  ;;  %4584 = vmatpush3.msra.mxu0 %v3648_v12  ;;  %1000 = vst [vmem:[#allocation2 + $0x2e1] sm:$0xff] %v892_v34  ;;  %v904_v37 = vmax.f32 %v6124_v5, 0.0  ;;  %v905_v32 = vmax.f32 %v6128_v0, 0.0  ;;  %v906_v48 = vmax.f32 %v6132_v18, 0.0  ;;  %v907_v43 = vmax.f32 %v6136_v11, 0.0 }
 0x1c1   :  { %1001 = vst [vmem:[#allocation2 + $0x2f1] sm:$0xff] %v893_v46  ;;  %1002 = vst [vmem:[#allocation2 + $0x301] sm:$0xff] %v894_v42  ;;  %4585 = vmatprep.subr.mxu0 %v3647_v38  ;;  %4276 = vmatmul.mubr.f32.vlgmr.msra.gmra.mxu1 %v899_v6  ;;  %v6283_v31 = vld [vmem:[%s7518_s5 + $0x358] sm:$0xff]  ;;  %v908_v9 = vmax.f32 %v6140_v36, 0.0  ;;  %v909_v45 = vmax.f32 %v6144_v25, 0.0  ;;  %v910_v33 = vmax.f32 %v6148_v57, 0.0 }
 0x1c2   :  { %1003 = vst [vmem:[#allocation2 + $0x311] sm:$0xff] %v895_v54  ;;  %1004 = vst [vmem:[#allocation2 + $0x321] sm:$0xff] %v896_v50  ;;  %4586 = vmatpush3.msra.mxu0 %v3647_v38  ;;  %v911_v18 = vmax.f32 %v6152_v47, 0.0  ;;  %v7665_v12 = vld [vmem:[#allocation15_spill] sm:$0xff]  ;;  %4278 = vmatprep.mubr.f32.mxu1 %v900_v2  ;;  %v7666_v35 = vld [vmem:[#allocation13_spill] sm:$0xff]  ;;  %v917_v42 = vmax.f32 %v6176_v52, 0.0 }
 0x1c3   :  { %1005 = vst [vmem:[#allocation2 + $0x331] sm:$0xff] %v897_v62  ;;  %1006 = vst [vmem:[#allocation2 + $0x341] sm:$0xff] %v898_v58  ;;  %4300 = vmatpush3.msra.mxu1 %v7665_v12  ;;  %v1111_v56 = vld [vmem:[%s7518_s5 + $0x68] sm:$0xff]  ;;  %v912_v49 = vmax.f32 %v7666_v35, 0.0  ;;  %v7667_v4 = vld [vmem:[#allocation12_spill] sm:$0xff]  ;;  %4506 = vmatmul.mubr.f32.gmra.mxu0 %v872_v41  ;;  %v918_v54 = vmax.f32 %v6180_v23, 0.0 }
 0x1c4   :  { %1029 = vst [vmem:[#allocation2 + $0x130] sm:$0xff] %v899_v6  ;;  %1030 = vst [vmem:[#allocation2 + $0x140] sm:$0xff] %v900_v2  ;;  %v913_v3 = vmax.f32 %v7667_v4, 0.0  ;;  %v7668_v26 = vld [vmem:[#allocation17_spill] sm:$0xff]  ;;  %v7669_v8 = vld [vmem:[#allocation14_spill] sm:$0xff]  ;;  %4301 = vmatprep.subr.mxu1 %v1112_v21  ;;  %v919_v50 = vmax.f32 %v6184_v7, 0.0  ;;  %4587 = vmatprep.subr.mxu0 %v6283_v31 }
 0x1c5   :  { %1031 = vst [vmem:[#allocation2 + $0x150] sm:$0xff] %v901_v14  ;;  %1032 = vst [vmem:[#allocation2 + $0x160] sm:$0xff] %v902_v10  ;;  %v914_v44 = vmax.f32 %v7668_v26, 0.0  ;;  %v915_v38 = vmax.f32 %v7669_v8, 0.0  ;;  %v7670_v34 = vld [vmem:[#allocation19_spill] sm:$0xff]  ;;  %4302 = vmatpush3.msra.mxu1 %v1112_v21  ;;  %v1110_v39 = vld [vmem:[%s7518_s5 + $0x60] sm:$0xff]  ;;  %4508 = vmatprep.mubr.f32.mxu0 %v873_v61 }
 0x1c6   :  { %1033 = vst [vmem:[#allocation2 + $0x170] sm:$0xff] %v903_v27  ;;  %1034 = vst [vmem:[#allocation2 + $0x180] sm:$0xff] %v904_v37  ;;  %v916_v46 = vmax.f32 %v7670_v34, 0.0  ;;  %v920_v52 = vmax.f32 %v6188_v60, 0.0  ;;  %v921_v23 = vmax.f32 %v6192_v55, 0.0  ;;  %v922_v7 = vmax.f32 %v6196_v24, 0.0  ;;  %4303 = vmatprep.subr.mxu1 %v1111_v56  ;;  %4279 = vmatmul.mubr.f32.gmra.mxu1 %v901_v14 }
 0x1c7   :  { %1035 = vst [vmem:[#allocation2 + $0x190] sm:$0xff] %v905_v32  ;;  %1036 = vst [vmem:[#allocation2 + $0x1a0] sm:$0xff] %v906_v48  ;;  %v923_v41 = vmax.f32 %v6200_v15, 0.0  ;;  %v7671_v62 = vld [vmem:[#allocation18_spill] sm:$0xff]  ;;  %v7672_v58 = vld [vmem:[#allocation21_spill] sm:$0xff]  ;;  %4304 = vmatpush3.msra.mxu1 %v1111_v56  ;;  %4281 = vmatprep.mubr.f32.mxu1 %v902_v10  ;;  %v930_v12 = vmax.f32 %v6224_v20, 0.0 }
 0x1c8   :  { %1037 = vst [vmem:[#allocation2 + $0x1c0] sm:$0xff] %v907_v43  ;;  %1038 = vst [vmem:[#allocation2 + $0x1d0] sm:$0xff] %v908_v9  ;;  %v924_v60 = vmax.f32 %v7671_v62, 0.0  ;;  %v925_v55 = vmax.f32 %v7672_v58, 0.0  ;;  %v7673_v6 = vld [vmem:[#allocation20_spill] sm:$0xff]  ;;  %v7674_v2 = vld [vmem:[#allocation23_spill] sm:$0xff]  ;;  %4305 = vmatprep.subr.mxu1 %v1110_v39  ;;  %4588 = vmatpush3.msra.mxu0 %v6283_v31 }
 0x1c9   :  { %1039 = vst [vmem:[#allocation2 + $0x1e0] sm:$0xff] %v909_v45  ;;  %1040 = vst [vmem:[#allocation2 + $0x1f0] sm:$0xff] %v910_v33  ;;  %v926_v24 = vmax.f32 %v7673_v6, 0.0  ;;  %v927_v15 = vmax.f32 %v7674_v2, 0.0  ;;  %v1109_v14 = vld [vmem:[%s7518_s5 + $0x58] sm:$0xff]  ;;  %v7675_v21 = vld [vmem:[#allocation22_spill] sm:$0xff]  ;;  %4306 = vmatpush3.msra.mxu1 %v1110_v39 }
 0x1ca   :  { %1041 = vst [vmem:[#allocation2 + $0x200] sm:$0xff] %v911_v18  ;;  %1042 = vst [vmem:[#allocation2 + $0x210] sm:$0xff] %v912_v49  ;;  %v928_v48 = vmax.f32 %v7675_v21, 0.0  ;;  %v1108_v59 = vld [vmem:[%s7518_s5 + $0x50] sm:$0xff]  ;;  %4307 = vmatprep.subr.mxu1 %v1109_v14  ;;  %4282 = vmatmul.mubr.f32.gmra.mxu1 %v903_v27  ;;  %v1106_v61 = vld [vmem:[%s7518_s5 + $0x40] sm:$0xff]  ;;  %v7676_v5 = vmax.f32 %v6004_v51, 0.0 }
 0x1cb   :  { %1043 = vst [vmem:[#allocation2 + $0x220] sm:$0xff] %v913_v3  ;;  %1044 = vst [vmem:[#allocation2 + $0x230] sm:$0xff] %v914_v44  ;;  %v3645_v20 = vld [vmem:[%s7518_s5 + $0x350] sm:$0xff]  ;;  %4308 = vmatpush3.msra.mxu1 %v1109_v14  ;;  %4284 = vmatprep.mubr.f32.mxu1 %v904_v37  ;;  %v3644_v53 = vld [vmem:[%s7518_s5 + $0x348] sm:$0xff]  ;;  %v7677_v37 = vmax.f32 %v6008_v28, 0.0  ;;  %v7678_v0 = vmov 0.0  }
 0x1cc   :  { %1066 = vst [vmem:[#allocation2 + $0x11] sm:$0xff] %v915_v38  ;;  %1067 = vst [vmem:[#allocation2 + $0x21] sm:$0xff] %v916_v46  ;;  %4309 = vmatprep.subr.mxu1 %v1108_v59  ;;  %4589 = vmatprep.subr.mxu0 %v3645_v20  ;;  %v1105_v10 = vld [vmem:[%s7518_s5 + $0x38] sm:$0xff]  ;;  %v3643_v27 = vld [vmem:[%s7518_s5 + $0x340] sm:$0xff]  ;;  %v7681_v31 = vmax.f32 %v6024_v16, 0.0  ;;  %v7682_v16 = vmax.f32 %v6028_v22, 0.0 }
 0x1cd   :  { %1068 = vst [vmem:[#allocation2 + $0x31] sm:$0xff] %v917_v42  ;;  %1069 = vst [vmem:[#allocation2 + $0x41] sm:$0xff] %v918_v54  ;;  %4310 = vmatpush3.msra.mxu1 %v1108_v59  ;;  %4590 = vmatpush3.msra.mxu0 %v3645_v20  ;;  %v1104_v51 = vld [vmem:[%s7518_s5 + $0x30] sm:$0xff]  ;;  %v1103_v28 = vld [vmem:[%s7518_s5 + $0x28] sm:$0xff] }
 0x1ce   :  { %1070 = vst [vmem:[#allocation2 + $0x51] sm:$0xff] %v919_v50  ;;  %1071 = vst [vmem:[#allocation2 + $0x61] sm:$0xff] %v920_v52  ;;  %4311 = vmatprep.subr.mxu1 %v1107_v1  ;;  %4285 = vmatmul.mubr.f32.gmra.mxu1 %v905_v32  ;;  %v3642_v32 = vld [vmem:[%s7518_s5 + $0x338] sm:$0xff]  ;;  %v3641_v11 = vld [vmem:[%s7518_s5 + $0x330] sm:$0xff] }
 0x1cf   :  { %1072 = vst [vmem:[#allocation2 + $0x71] sm:$0xff] %v921_v23  ;;  %1073 = vst [vmem:[#allocation2 + $0x81] sm:$0xff] %v922_v7  ;;  %4312 = vmatpush3.msra.mxu1 %v1107_v1  ;;  %4509 = vmatmul.mubr.f32.gmra.mxu0 %v7676_v5  ;;  %v1102_v63 = vld [vmem:[%s7518_s5 + $0x20] sm:$0xff]  ;;  %v3640_v36 = vld [vmem:[%s7518_s5 + $0x328] sm:$0xff] }
 0x1d0   :  { %1074 = vst [vmem:[#allocation2 + $0xa1] sm:$0xff] %v923_v41  ;;  %1075 = vst [vmem:[#allocation2 + $0xb1] sm:$0xff] %v924_v60  ;;  %4313 = vmatprep.subr.mxu1 %v1106_v61  ;;  %4591 = vmatprep.subr.mxu0 %v3644_v53  ;;  %v3639_v25 = vld [vmem:[%s7518_s5 + $0x320] sm:$0xff]  ;;  %v3638_v57 = vld [vmem:[%s7518_s5 + $0x318] sm:$0xff] }
 0x1d1   :  { %1076 = vst [vmem:[#allocation2 + $0xc1] sm:$0xff] %v925_v55  ;;  %1077 = vst [vmem:[#allocation2 + $0xd1] sm:$0xff] %v926_v24  ;;  %4314 = vmatpush3.msra.mxu1 %v1106_v61  ;;  %4511 = vmatprep.mubr.f32.mxu0 %v7677_v37  ;;  %v3637_v47 = vld [vmem:[%s7518_s5 + $0x310] sm:$0xff]  ;;  %v1098_v22 = vld [vmem:[%s7518_s5] sm:$0xff] }
 0x1d2   :  { %1078 = vst [vmem:[#allocation2 + $0xe1] sm:$0xff] %v927_v15  ;;  %1079 = vst [vmem:[#allocation2 + $0xf1] sm:$0xff] %v928_v48  ;;  %4592 = vmatpush3.msra.mxu0 %v3644_v53  ;;  %4287 = vmatprep.mubr.f32.mxu1 %v7678_v0  ;;  %v3586_v19 = vld [vmem:[%s7518_s5 + $0x178] sm:$0xff]  ;;  %v6457_v56 = vld [vmem:[#allocation2 + $0x3e0] sm:$0xff] }
 0x1d3   :  { %1081 = vst [vmem:[#allocation2 + $0x111] sm:$0xff] %v930_v12  ;;  %4315 = vmatprep.subr.mxu1 %v1105_v10  ;;  %4593 = vmatprep.subr.mxu0 %v3643_v27  ;;  %v1084_v35 = vld [vmem:[#allocation2 + $0x20] sm:$0xff]  ;;  %v3584_v4 = vld [vmem:[%s7518_s5 + $0x168] sm:$0xff]  ;;  %v3582_v42 = vld [vmem:[%s7518_s5 + $0x158] sm:$0xff] }
 0x1d4   :  { %4288 = vmatmul.mubr.f32.gmra.mxu1 %v907_v43  ;;  %4594 = vmatpush3.msra.mxu0 %v3643_v27  ;;  %v7679_v43 = vmax.f32 %v6016_v40, 0.0  ;;  %v7680_v40 = vmax.f32 %v6020_v17, 0.0  ;;  %v1100_v17 = vld [vmem:[%s7518_s5 + $0x10] sm:$0xff]  ;;  %v3583_v44 = vld [vmem:[%s7518_s5 + $0x160] sm:$0xff]  ;;  %v3680_v46 = vld [vmem:[%s7518_s5 + $0x468] sm:$0xff] }
 0x1d5   :  { %4316 = vmatpush3.msra.mxu1 %v1105_v10  ;;  %4290 = vmatprep.mubr.f32.mxu1 %v908_v9  ;;  %v1099_v9 = vld [vmem:[%s7518_s5 + $0x8] sm:$0xff]  ;;  %v2215_v26 = vld [vmem:[#allocation2 + $0x30] sm:$0xff]  ;;  %v1086_v34 = vld [vmem:[#allocation2 + $0x40] sm:$0xff] }
 0x1d6   :  { %4317 = vmatprep.subr.mxu1 %v1104_v51  ;;  %4512 = vmatmul.mubr.f32.gmra.mxu0 %v876_v29  ;;  %v1101_v29 = vld [vmem:[%s7518_s5 + $0x18] sm:$0xff]  ;;  %v3679_v54 = vld [vmem:[%s7518_s5 + $0x460] sm:$0xff]  ;;  %v2217_v50 = vld [vmem:[#allocation2 + $0x50] sm:$0xff] }
 0x1d7   :  { %4595 = vmatprep.subr.mxu0 %v3642_v32  ;;  %4318 = vmatpush3.msra.mxu1 %v1104_v51  ;;  %v3581_v39 = vld [vmem:[%s7518_s5 + $0x150] sm:$0xff]  ;;  %v1088_v52 = vld [vmem:[#allocation2 + $0x60] sm:$0xff]  ;;  %v3678_v23 = vld [vmem:[%s7518_s5 + $0x458] sm:$0xff] }
 0x1d8   :  { %4514 = vmatprep.mubr.f32.mxu0 %v7679_v43  ;;  %4596 = vmatpush3.msra.mxu0 %v3642_v32  ;;  %v3580_v7 = vld [vmem:[%s7518_s5 + $0x148] sm:$0xff]  ;;  %v3677_v41 = vld [vmem:[%s7518_s5 + $0x450] sm:$0xff]  ;;  %v3579_v60 = vld [vmem:[%s7518_s5 + $0x140] sm:$0xff] }
 0x1d9   :  { %4319 = vmatprep.subr.mxu1 %v1103_v28  ;;  %4597 = vmatprep.subr.mxu0 %v3641_v11  ;;  %v2219_v62 = vld [vmem:[#allocation2 + $0x70] sm:$0xff]  ;;  %v3676_v58 = vld [vmem:[%s7518_s5 + $0x448] sm:$0xff]  ;;  %v2220_v55 = vld [vmem:[#allocation2 + $0x80] sm:$0xff] }
 0x1da   :  { %4291 = vmatmul.mubr.f32.gmra.mxu1 %v909_v45  ;;  %4598 = vmatpush3.msra.mxu0 %v3641_v11  ;;  %v3636_v45 = vld [vmem:[%s7518_s5 + $0x308] sm:$0xff]  ;;  %v2221_v6 = vld [vmem:[#allocation2 + $0xa0] sm:$0xff]  ;;  %v3578_v24 = vld [vmem:[%s7518_s5 + $0x138] sm:$0xff] }
 0x1db   :  { %4320 = vmatpush3.msra.mxu1 %v1103_v28  ;;  %4293 = vmatprep.mubr.f32.mxu1 %v910_v33  ;;  %v7683_v33 = vmax.f32 %v6036_v30, 0.0  ;;  %v3585_v30 = vld [vmem:[%s7518_s5 + $0x170] sm:$0xff]  ;;  %v3675_v2 = vld [vmem:[%s7518_s5 + $0x440] sm:$0xff]  ;;  %v3674_v21 = vld [vmem:[%s7518_s5 + $0x438] sm:$0xff] }
 0x1dc   :  { %4321 = vmatprep.subr.mxu1 %v1102_v63  ;;  %4515 = vmatmul.mubr.f32.gmra.mxu0 %v7680_v40  ;;  %v3577_v15 = vld [vmem:[%s7518_s5 + $0x130] sm:$0xff]  ;;  %v3576_v48 = vld [vmem:[%s7518_s5 + $0x128] sm:$0xff]  ;;  %v2223_v59 = vld [vmem:[#allocation2 + $0xc0] sm:$0xff] }
 0x1dd   :  { %4599 = vmatprep.subr.mxu0 %v3640_v36  ;;  %4322 = vmatpush3.msra.mxu1 %v1102_v63  ;;  %v1092_v14 = vld [vmem:[#allocation2 + $0xb0] sm:$0xff]  ;;  %v3575_v20 = vld [vmem:[%s7518_s5 + $0x120] sm:$0xff]  ;;  %v3672_v61 = vld [vmem:[%s7518_s5 + $0x428] sm:$0xff] }
 0x1de   :  { %4517 = vmatprep.mubr.f32.mxu0 %v7681_v31  ;;  %4600 = vmatpush3.msra.mxu0 %v3640_v36  ;;  %v3673_v12 = vld [vmem:[%s7518_s5 + $0x430] sm:$0xff]  ;;  %v3574_v53 = vld [vmem:[%s7518_s5 + $0x118] sm:$0xff]  ;;  %v3671_v5 = vld [vmem:[%s7518_s5 + $0x420] sm:$0xff] }
 0x1df   :  { %4323 = vmatprep.subr.mxu1 %v1101_v29  ;;  %4601 = vmatprep.subr.mxu0 %v3639_v25  ;;  %v1094_v1 = vld [vmem:[#allocation2 + $0xd0] sm:$0xff]  ;;  %v2225_v10 = vld [vmem:[#allocation2 + $0xe0] sm:$0xff]  ;;  %v3670_v0 = vld [vmem:[%s7518_s5 + $0x418] sm:$0xff] }
 0x1e0   :  { %4294 = vmatmul.mubr.f32.gmra.mxu1 %v911_v18  ;;  %4602 = vmatpush3.msra.mxu0 %v3639_v25  ;;  %v2213_v18 = vld [vmem:[#allocation2 + $0x10] sm:$0xff]  ;;  %v3572_v51 = vld [vmem:[%s7518_s5 + $0x108] sm:$0xff]  ;;  %v2227_v28 = vld [vmem:[#allocation2 + $0x100] sm:$0xff] }
 0x1e1   :  { %4324 = vmatpush3.msra.mxu1 %v1101_v29  ;;  %4296 = vmatprep.mubr.f32.mxu1 %v912_v49  ;;  %v3682_v49 = vld [vmem:[%s7518_s5 + $0x478] sm:$0xff]  ;;  %v3573_v27 = vld [vmem:[%s7518_s5 + $0x110] sm:$0xff]  ;;  %v3571_v11 = vld [vmem:[%s7518_s5 + $0x100] sm:$0xff] }
 0x1e2   :  { %4325 = vmatprep.subr.mxu1 %v1100_v17  ;;  %4518 = vmatmul.mubr.f32.gmra.mxu0 %v7682_v16  ;;  %v1096_v37 = vld [vmem:[#allocation2 + $0xf0] sm:$0xff]  ;;  %v3668_v43 = vld [vmem:[%s7518_s5 + $0x408] sm:$0xff]  ;;  %v3602_v40 = vld [vmem:[%s7518_s5 + $0x1f8] sm:$0xff] }
 0x1e3   :  { %4603 = vmatprep.subr.mxu0 %v3638_v57  ;;  %4326 = vmatpush3.msra.mxu1 %v1100_v17  ;;  %v3669_v32 = vld [vmem:[%s7518_s5 + $0x410] sm:$0xff]  ;;  %v1437_v36 = vld [vmem:[#allocation2 + $0x1] sm:$0xff] }
 0x1e4   :  { %4520 = vmatprep.mubr.f32.mxu0 %v881_v13  ;;  %4604 = vmatpush3.msra.mxu0 %v3638_v57  ;;  %v3635_v13 = vld [vmem:[%s7518_s5 + $0x300] sm:$0xff]  ;;  %v2228_v63 = vld [vmem:[#allocation2 + $0x110] sm:$0xff]  ;;  %v3600_v57 = vld [vmem:[%s7518_s5 + $0x1e8] sm:$0xff] }
 0x1e5   :  { %4327 = vmatprep.subr.mxu1 %v1099_v9  ;;  %4605 = vmatprep.subr.mxu0 %v3637_v47  ;;  %v3667_v29 = vld [vmem:[%s7518_s5 + $0x400] sm:$0xff]  ;;  %v1438_v25 = vld [vmem:[#allocation2 + $0x11] sm:$0xff] }
 0x1e6   :  { %4297 = vmatmul.mubr.f32.gmra.mxu1 %v913_v3  ;;  %4606 = vmatpush3.msra.mxu0 %v3637_v47  ;;  %v3681_v3 = vld [vmem:[%s7518_s5 + $0x470] sm:$0xff]  ;;  %v1439_v17 = vld [vmem:[#allocation2 + $0x21] sm:$0xff] }
 0x1e7   :  { %4328 = vmatpush3.msra.mxu1 %v1099_v9  ;;  %4521 = vmatmul.mubr.f32.gmra.mxu0 %v7683_v33  ;;  %v3601_v31 = vld [vmem:[%s7518_s5 + $0x1f0] sm:$0xff]  ;;  %v1441_v16 = vld [vmem:[#allocation2 + $0x41] sm:$0xff]  ;;  %v3598_v9 = vld [vmem:[%s7518_s5 + $0x1d8] sm:$0xff] }
 0x1e8   :  { %4329 = vmatprep.subr.mxu1 %v1098_v22  ;;  %4607 = vmatprep.subr.mxu0 %v3636_v45  ;;  %v2603_v8 = vld [vmem:[#allocation2 + $0x31] sm:$0xff]  ;;  %v3596_v33 = vld [vmem:[%s7518_s5 + $0x1c8] sm:$0xff] }
 0x1e9   :  { %4330 = vmatpush3.msra.mxu1 %v1098_v22  ;;  %4608 = vmatpush3.msra.mxu0 %v3636_v45  ;;  %v2605_v47 = vld [vmem:[#allocation2 + $0x51] sm:$0xff]  ;;  %v1443_v45 = vld [vmem:[#allocation2 + $0x61] sm:$0xff] }
 0x1ea   :  { %4611 = vmatprep.mubr.f32.mxu0 %v2213_v18  ;;  %4331 = vmatprep.mubr.f32.mxu1 %v6457_v56  ;;  %v3597_v22 = vld [vmem:[%s7518_s5 + $0x1d0] sm:$0xff] }
 0x1eb   :  { %4355 = vmatprep.subr.mxu1 %v3586_v19  ;;  %4609 = vmatprep.subr.mxu0 %v3635_v13 }
 0x1ec   :  { %4332 = vmatmul.mubr.f32.vlgmr.msra.gmra.mxu1 %v2213_v18  ;;  %4610 = vmatpush3.msra.mxu0 %v3635_v13  ;;  %v1445_v13 = vld [vmem:[#allocation2 + $0x91] sm:$0xff]  ;;  %v3595_v18 = vld [vmem:[%s7518_s5 + $0x1c0] sm:$0xff] }
 0x1ed   :  { %4356 = vmatpush3.msra.mxu1 %v3586_v19  ;;  %4334 = vmatprep.mubr.f32.mxu1 %v1084_v35  ;;  %v2607_v19 = vld [vmem:[#allocation2 + $0x71] sm:$0xff] }
 0x1ee   :  { %4357 = vmatprep.subr.mxu1 %v3585_v30  ;;  %4612 = vmatmul.mubr.f32.vlgmr.msra.gmra.mxu0 %v1084_v35  ;;  %v2609_v35 = vld [vmem:[#allocation2 + $0xa1] sm:$0xff] }
 0x1ef   :  { %4691 = vmatprep.subr.mxu0 %v3682_v49  ;;  %4358 = vmatpush3.msra.mxu1 %v3585_v30  ;;  %v3594_v30 = vld [vmem:[%s7518_s5 + $0x1b8] sm:$0xff] }
 0x1f0   :  { %4614 = vmatprep.mubr.f32.mxu0 %v2215_v26  ;;  %4692 = vmatpush3.msra.mxu0 %v3682_v49  ;;  %v3593_v49 = vld [vmem:[%s7518_s5 + $0x1b0] sm:$0xff] }
 0x1f1   :  { %4359 = vmatprep.subr.mxu1 %v3584_v4  ;;  %4693 = vmatprep.subr.mxu0 %v3681_v3 }
 0x1f2   :  { %4335 = vmatmul.mubr.f32.gmra.mxu1 %v2215_v26  ;;  %4694 = vmatpush3.msra.mxu0 %v3681_v3  ;;  %v3592_v3 = vld [vmem:[%s7518_s5 + $0x1a8] sm:$0xff] }
 0x1f3   :  { %4360 = vmatpush3.msra.mxu1 %v3584_v4  ;;  %4337 = vmatprep.mubr.f32.mxu1 %v1086_v34  ;;  %v1447_v4 = vld [vmem:[#allocation2 + $0xb1] sm:$0xff]  ;;  %v2611_v26 = vld [vmem:[#allocation2 + $0xc1] sm:$0xff] }
 0x1f4   :  { %4361 = vmatprep.subr.mxu1 %v3583_v44  ;;  %4615 = vmatmul.mubr.f32.gmra.mxu0 %v1086_v34  ;;  %v1449_v34 = vld [vmem:[#allocation2 + $0xd1] sm:$0xff] }
 0x1f5   :  { %4695 = vmatprep.subr.mxu0 %v3680_v46  ;;  %4362 = vmatpush3.msra.mxu1 %v3583_v44  ;;  %v3591_v44 = vld [vmem:[%s7518_s5 + $0x1a0] sm:$0xff] }
 0x1f6   :  { %4617 = vmatprep.mubr.f32.mxu0 %v2217_v50  ;;  %4696 = vmatpush3.msra.mxu0 %v3680_v46  ;;  %v3590_v46 = vld [vmem:[%s7518_s5 + $0x198] sm:$0xff] }
 0x1f7   :  { %4363 = vmatprep.subr.mxu1 %v3582_v42  ;;  %4697 = vmatprep.subr.mxu0 %v3679_v54 }
 0x1f8   :  { %4338 = vmatmul.mubr.f32.gmra.mxu1 %v2217_v50  ;;  %4698 = vmatpush3.msra.mxu0 %v3679_v54  ;;  %v3589_v54 = vld [vmem:[%s7518_s5 + $0x190] sm:$0xff] }
 0x1f9   :  { %4364 = vmatpush3.msra.mxu1 %v3582_v42  ;;  %4340 = vmatprep.mubr.f32.mxu1 %v1088_v52  ;;  %v2613_v42 = vld [vmem:[#allocation2 + $0xe1] sm:$0xff]  ;;  %v1451_v50 = vld [vmem:[#allocation2 + $0xf1] sm:$0xff] }
 0x1fa   :  { %4365 = vmatprep.subr.mxu1 %v3581_v39  ;;  %4618 = vmatmul.mubr.f32.gmra.mxu0 %v1088_v52  ;;  %v2615_v52 = vld [vmem:[#allocation2 + $0x101] sm:$0xff] }
 0x1fb   :  { %4699 = vmatprep.subr.mxu0 %v3678_v23  ;;  %4366 = vmatpush3.msra.mxu1 %v3581_v39  ;;  %v3588_v39 = vld [vmem:[%s7518_s5 + $0x188] sm:$0xff] }
 0x1fc   :  { %4620 = vmatprep.mubr.f32.mxu0 %v2219_v62  ;;  %4700 = vmatpush3.msra.mxu0 %v3678_v23  ;;  %v3587_v23 = vld [vmem:[%s7518_s5 + $0x180] sm:$0xff] }
 0x1fd   :  { %4367 = vmatprep.subr.mxu1 %v3580_v7  ;;  %4701 = vmatprep.subr.mxu0 %v3677_v41 }
 0x1fe   :  { %4341 = vmatmul.mubr.f32.gmra.mxu1 %v2219_v62  ;;  %4702 = vmatpush3.msra.mxu0 %v3677_v41  ;;  %v2616_v41 = vld [vmem:[#allocation2 + $0x111] sm:$0xff] }
 0x1ff   :  { %4368 = vmatpush3.msra.mxu1 %v3580_v7  ;;  %4621 = vmatmul.mubr.f32.gmra.mxu0 %v2220_v55  ;;  %v1631_v7 = vld [vmem:[#allocation2 + $0x240] sm:$0xff]  ;;  %v3634_v62 = vld [vmem:[%s7518_s5 + $0x2f8] sm:$0xff] }
 0x200   :  { %4369 = vmatprep.subr.mxu1 %v3579_v60  ;;  %4703 = vmatprep.subr.mxu0 %v3676_v58  ;;  %v1633_v55 = vld [vmem:[#allocation2 + $0x260] sm:$0xff] }
 0x201   :  { %4370 = vmatpush3.msra.mxu1 %v3579_v60  ;;  %4623 = vmatprep.mubr.f32.mxu0 %v2221_v6  ;;  %v1632_v60 = vld [vmem:[#allocation2 + $0x250] sm:$0xff] }
 0x202   :  { %4704 = vmatpush3.msra.mxu0 %v3676_v58  ;;  %4343 = vmatprep.mubr.f32.mxu1 %v6457_v56  ;;  %v2608_v56 = vld [vmem:[#allocation2 + $0x81] sm:$0xff]  ;;  %v3633_v58 = vld [vmem:[%s7518_s5 + $0x2f0] sm:$0xff] }
 0x203   :  { %4371 = vmatprep.subr.mxu1 %v3578_v24  ;;  %4705 = vmatprep.subr.mxu0 %v3675_v2 }
 0x204   :  { %4344 = vmatmul.mubr.f32.gmra.mxu1 %v2221_v6  ;;  %4706 = vmatpush3.msra.mxu0 %v3675_v2  ;;  %v3632_v6 = vld [vmem:[%s7518_s5 + $0x2e8] sm:$0xff]  ;;  %v3631_v2 = vld [vmem:[%s7518_s5 + $0x2e0] sm:$0xff] }
 0x205   :  { %4372 = vmatpush3.msra.mxu1 %v3578_v24  ;;  %4346 = vmatprep.mubr.f32.mxu1 %v1092_v14  ;;  %v1634_v24 = vld [vmem:[#allocation2 + $0x270] sm:$0xff] }
 0x206   :  { %4373 = vmatprep.subr.mxu1 %v3577_v15  ;;  %4624 = vmatmul.mubr.f32.gmra.mxu0 %v1092_v14  ;;  %v3630_v14 = vld [vmem:[%s7518_s5 + $0x2d8] sm:$0xff] }
 0x207   :  { %4707 = vmatprep.subr.mxu0 %v3674_v21  ;;  %4374 = vmatpush3.msra.mxu1 %v3577_v15  ;;  %v1635_v15 = vld [vmem:[#allocation2 + $0x280] sm:$0xff] }
 0x208   :  { %4626 = vmatprep.mubr.f32.mxu0 %v2223_v59  ;;  %4708 = vmatpush3.msra.mxu0 %v3674_v21  ;;  %v1636_v21 = vld [vmem:[#allocation2 + $0x290] sm:$0xff] }
 0x209   :  { %4375 = vmatprep.subr.mxu1 %v3576_v48  ;;  %4709 = vmatprep.subr.mxu0 %v3673_v12 }
 0x20a   :  { %4347 = vmatmul.mubr.f32.gmra.mxu1 %v2223_v59  ;;  %4710 = vmatpush3.msra.mxu0 %v3673_v12  ;;  %v1637_v12 = vld [vmem:[#allocation2 + $0x2a0] sm:$0xff]  ;;  %v3628_v59 = vld [vmem:[%s7518_s5 + $0x2c8] sm:$0xff] }
 0x20b   :  { %4376 = vmatpush3.msra.mxu1 %v3576_v48  ;;  %4349 = vmatprep.mubr.f32.mxu1 %v1094_v1  ;;  %v3629_v48 = vld [vmem:[%s7518_s5 + $0x2d0] sm:$0xff] }
 0x20c   :  { %4377 = vmatprep.subr.mxu1 %v3575_v20  ;;  %4627 = vmatmul.mubr.f32.gmra.mxu0 %v1094_v1  ;;  %v3627_v1 = vld [vmem:[%s7518_s5 + $0x2c0] sm:$0xff] }
 0x20d   :  { %4711 = vmatprep.subr.mxu0 %v3672_v61  ;;  %4378 = vmatpush3.msra.mxu1 %v3575_v20  ;;  %v1638_v20 = vld [vmem:[#allocation2 + $0x2b0] sm:$0xff] }
 0x20e   :  { %4629 = vmatprep.mubr.f32.mxu0 %v2225_v10  ;;  %4712 = vmatpush3.msra.mxu0 %v3672_v61  ;;  %v1639_v61 = vld [vmem:[#allocation2 + $0x2d0] sm:$0xff] }
 0x20f   :  { %4379 = vmatprep.subr.mxu1 %v3574_v53  ;;  %4713 = vmatprep.subr.mxu0 %v3671_v5 }
 0x210   :  { %4350 = vmatmul.mubr.f32.gmra.mxu1 %v2225_v10  ;;  %4714 = vmatpush3.msra.mxu0 %v3671_v5  ;;  %v1640_v5 = vld [vmem:[#allocation2 + $0x2e0] sm:$0xff]  ;;  %v3625_v10 = vld [vmem:[%s7518_s5 + $0x2b0] sm:$0xff] }
 0x211   :  { %4380 = vmatpush3.msra.mxu1 %v3574_v53  ;;  %4352 = vmatprep.mubr.f32.mxu1 %v1096_v37  ;;  %v3626_v53 = vld [vmem:[%s7518_s5 + $0x2b8] sm:$0xff] }
 0x212   :  { %4381 = vmatprep.subr.mxu1 %v3573_v27  ;;  %4630 = vmatmul.mubr.f32.gmra.mxu0 %v1096_v37  ;;  %v3624_v37 = vld [vmem:[%s7518_s5 + $0x2a8] sm:$0xff] }
 0x213   :  { %4715 = vmatprep.subr.mxu0 %v3670_v0  ;;  %4382 = vmatpush3.msra.mxu1 %v3573_v27  ;;  %v1641_v27 = vld [vmem:[#allocation2 + $0x2f0] sm:$0xff] }
 0x214   :  { %4632 = vmatprep.mubr.f32.mxu0 %v2227_v28  ;;  %4716 = vmatpush3.msra.mxu0 %v3670_v0  ;;  %v1642_v0 = vld [vmem:[#allocation2 + $0x300] sm:$0xff] }
 0x215   :  { %4383 = vmatprep.subr.mxu1 %v3572_v51  ;;  %4717 = vmatprep.subr.mxu0 %v3669_v32 }
 0x216   :  { %4353 = vmatmul.mubr.f32.gmra.mxu1 %v2227_v28  ;;  %4718 = vmatpush3.msra.mxu0 %v3669_v32  ;;  %v1643_v32 = vld [vmem:[#allocation2 + $0x310] sm:$0xff]  ;;  %v3622_v28 = vld [vmem:[%s7518_s5 + $0x298] sm:$0xff] }
 0x217   :  { %4384 = vmatpush3.msra.mxu1 %v3572_v51  ;;  %4633 = vmatmul.mubr.f32.gmra.mxu0 %v2228_v63  ;;  %v3623_v51 = vld [vmem:[%s7518_s5 + $0x2a0] sm:$0xff]  ;;  %v1645_v63 = vld [vmem:[#allocation2 + $0x330] sm:$0xff] }
 0x218   :  { %4385 = vmatprep.subr.mxu1 %v3571_v11  ;;  %4719 = vmatprep.subr.mxu0 %v3668_v43 }
 0x219   :  { %4386 = vmatpush3.msra.mxu1 %v3571_v11  ;;  %4720 = vmatpush3.msra.mxu0 %v3668_v43  ;;  %v1644_v11 = vld [vmem:[#allocation2 + $0x320] sm:$0xff]  ;;  %v3621_v43 = vld [vmem:[%s7518_s5 + $0x290] sm:$0xff] }
 0x21a   :  { %4723 = vmatprep.mubr.f32.mxu0 %v915_v38  ;;  %4387 = vmatprep.mubr.f32.mxu1 %v1437_v36  ;;  %v3599_v38 = vld [vmem:[%s7518_s5 + $0x1e0] sm:$0xff]  ;;  %v3620_v36 = vld [vmem:[%s7518_s5 + $0x288] sm:$0xff] }
 0x21b   :  { %4411 = vmatprep.subr.mxu1 %v3602_v40  ;;  %4721 = vmatprep.subr.mxu0 %v3667_v29 }
 0x21c   :  { %4388 = vmatmul.mubr.f32.vlgmr.msra.gmra.mxu1 %v1438_v25  ;;  %4722 = vmatpush3.msra.mxu0 %v3667_v29  ;;  %v3619_v29 = vld [vmem:[%s7518_s5 + $0x280] sm:$0xff] }
 0x21d   :  { %4412 = vmatpush3.msra.mxu1 %v3602_v40  ;;  %4390 = vmatprep.mubr.f32.mxu1 %v1439_v17  ;;  %v1646_v40 = vld [vmem:[#allocation2 + $0x340] sm:$0xff] }
 0x21e   :  { %4413 = vmatprep.subr.mxu1 %v3601_v31  ;;  %4724 = vmatmul.mubr.f32.vlgmr.msra.gmra.mxu0 %v1439_v17  ;;  %v2019_v25 = vld [vmem:[#allocation2 + $0x241] sm:$0xff]  ;;  %v2020_v17 = vld [vmem:[#allocation2 + $0x251] sm:$0xff] }
 0x21f   :  { %4414 = vmatpush3.msra.mxu1 %v3601_v31  ;;  %4726 = vmatprep.mubr.f32.mxu0 %v2603_v8  ;;  %v3666_v31 = vld [vmem:[%s7518_s5 + $0x3f8] sm:$0xff] }
 0x220   :  { %4415 = vmatprep.subr.mxu1 %v3600_v57  ;;  %4391 = vmatmul.mubr.f32.gmra.mxu1 %v2603_v8  ;;  %v2021_v8 = vld [vmem:[#allocation2 + $0x261] sm:$0xff] }
 0x221   :  { %4416 = vmatpush3.msra.mxu1 %v3600_v57  ;;  %4393 = vmatprep.mubr.f32.mxu1 %v1441_v16  ;;  %v3665_v57 = vld [vmem:[%s7518_s5 + $0x3f0] sm:$0xff] }
 0x222   :  { %4417 = vmatprep.subr.mxu1 %v3599_v38  ;;  %4727 = vmatmul.mubr.f32.gmra.mxu0 %v1441_v16  ;;  %v2022_v16 = vld [vmem:[#allocation2 + $0x271] sm:$0xff] }
 0x223   :  { %4418 = vmatpush3.msra.mxu1 %v3599_v38  ;;  %4729 = vmatprep.mubr.f32.mxu0 %v2605_v47  ;;  %v3664_v38 = vld [vmem:[%s7518_s5 + $0x3e8] sm:$0xff] }
 0x224   :  { %4419 = vmatprep.subr.mxu1 %v3598_v9  ;;  %4394 = vmatmul.mubr.f32.gmra.mxu1 %v2605_v47  ;;  %v2023_v47 = vld [vmem:[#allocation2 + $0x281] sm:$0xff] }
 0x225   :  { %4420 = vmatpush3.msra.mxu1 %v3598_v9  ;;  %4396 = vmatprep.mubr.f32.mxu1 %v1443_v45  ;;  %v3663_v9 = vld [vmem:[%s7518_s5 + $0x3e0] sm:$0xff] }
 0x226   :  { %4421 = vmatprep.subr.mxu1 %v3597_v22  ;;  %4730 = vmatmul.mubr.f32.gmra.mxu0 %v1443_v45  ;;  %v2024_v45 = vld [vmem:[#allocation2 + $0x291] sm:$0xff] }
 0x227   :  { %4422 = vmatpush3.msra.mxu1 %v3597_v22  ;;  %4732 = vmatprep.mubr.f32.mxu0 %v2607_v19  ;;  %v3662_v22 = vld [vmem:[%s7518_s5 + $0x3d8] sm:$0xff] }
 0x228   :  { %4423 = vmatprep.subr.mxu1 %v3596_v33  ;;  %4397 = vmatmul.mubr.f32.gmra.mxu1 %v2607_v19  ;;  %v2025_v19 = vld [vmem:[#allocation2 + $0x2a1] sm:$0xff] }
 0x229   :  { %4424 = vmatpush3.msra.mxu1 %v3596_v33  ;;  %4399 = vmatprep.mubr.f32.mxu1 %v1445_v13  ;;  %v3661_v33 = vld [vmem:[%s7518_s5 + $0x3d0] sm:$0xff]  ;;  %v3660_v13 = vld [vmem:[%s7518_s5 + $0x3c8] sm:$0xff] }
 0x22a   :  { %4425 = vmatprep.subr.mxu1 %v3595_v18  ;;  %4733 = vmatmul.mubr.f32.gmra.mxu0 %v2608_v56  ;;  %v3659_v56 = vld [vmem:[%s7518_s5 + $0x3c0] sm:$0xff] }
 0x22b   :  { %4426 = vmatpush3.msra.mxu1 %v3595_v18  ;;  %4735 = vmatprep.mubr.f32.mxu0 %v2609_v35  ;;  %v2026_v18 = vld [vmem:[#allocation2 + $0x2b1] sm:$0xff] }
 0x22c   :  { %4427 = vmatprep.subr.mxu1 %v3594_v30  ;;  %4400 = vmatmul.mubr.f32.gmra.mxu1 %v2609_v35  ;;  %v3658_v35 = vld [vmem:[%s7518_s5 + $0x3b8] sm:$0xff] }
 0x22d   :  { %4428 = vmatpush3.msra.mxu1 %v3594_v30  ;;  %4402 = vmatprep.mubr.f32.mxu1 %v1447_v4  ;;  %v2027_v30 = vld [vmem:[#allocation2 + $0x2d1] sm:$0xff] }
 0x22e   :  { %4429 = vmatprep.subr.mxu1 %v3593_v49  ;;  %4736 = vmatmul.mubr.f32.gmra.mxu0 %v1447_v4  ;;  %v3657_v4 = vld [vmem:[%s7518_s5 + $0x3b0] sm:$0xff] }
 0x22f   :  { %4430 = vmatpush3.msra.mxu1 %v3593_v49  ;;  %4738 = vmatprep.mubr.f32.mxu0 %v2611_v26  ;;  %v2028_v49 = vld [vmem:[#allocation2 + $0x2e1] sm:$0xff] }
 0x230   :  { %4431 = vmatprep.subr.mxu1 %v3592_v3  ;;  %4403 = vmatmul.mubr.f32.gmra.mxu1 %v2611_v26  ;;  %v3656_v26 = vld [vmem:[%s7518_s5 + $0x3a8] sm:$0xff] }
 0x231   :  { %4432 = vmatpush3.msra.mxu1 %v3592_v3  ;;  %4405 = vmatprep.mubr.f32.mxu1 %v1449_v34  ;;  %v2029_v3 = vld [vmem:[#allocation2 + $0x2f1] sm:$0xff] }
 0x232   :  { %4433 = vmatprep.subr.mxu1 %v3591_v44  ;;  %4739 = vmatmul.mubr.f32.gmra.mxu0 %v1449_v34  ;;  %v3655_v34 = vld [vmem:[%s7518_s5 + $0x3a0] sm:$0xff] }
 0x233   :  { %4434 = vmatpush3.msra.mxu1 %v3591_v44  ;;  %4741 = vmatprep.mubr.f32.mxu0 %v2613_v42  ;;  %v2030_v44 = vld [vmem:[#allocation2 + $0x301] sm:$0xff] }
 0x234   :  { %4435 = vmatprep.subr.mxu1 %v3590_v46  ;;  %4406 = vmatmul.mubr.f32.gmra.mxu1 %v2613_v42  ;;  %v3654_v42 = vld [vmem:[%s7518_s5 + $0x398] sm:$0xff] }
 0x235   :  { %4436 = vmatpush3.msra.mxu1 %v3590_v46  ;;  %4408 = vmatprep.mubr.f32.mxu1 %v1451_v50  ;;  %v2031_v46 = vld [vmem:[#allocation2 + $0x311] sm:$0xff] }
 0x236   :  { %4437 = vmatprep.subr.mxu1 %v3589_v54  ;;  %4742 = vmatmul.mubr.f32.gmra.mxu0 %v1451_v50  ;;  %v3653_v50 = vld [vmem:[%s7518_s5 + $0x390] sm:$0xff] }
 0x237   :  { %4438 = vmatpush3.msra.mxu1 %v3589_v54  ;;  %4744 = vmatprep.mubr.f32.mxu0 %v2615_v52  ;;  %v2032_v54 = vld [vmem:[#allocation2 + $0x321] sm:$0xff] }
 0x238   :  { %4439 = vmatprep.subr.mxu1 %v3588_v39  ;;  %4409 = vmatmul.mubr.f32.gmra.mxu1 %v2615_v52  ;;  %v3652_v52 = vld [vmem:[%s7518_s5 + $0x388] sm:$0xff] }
 0x239   :  { %4440 = vmatpush3.msra.mxu1 %v3588_v39  ;;  %4443 = vmatprep.mubr.f32.mxu1 %v1631_v7  ;;  %v2033_v39 = vld [vmem:[#allocation2 + $0x331] sm:$0xff]  ;;  %v3651_v7 = vld [vmem:[%s7518_s5 + $0x380] sm:$0xff] }
 0x23a   :  { %4441 = vmatprep.subr.mxu1 %v3587_v23  ;;  %4745 = vmatmul.mubr.f32.gmra.mxu0 %v2616_v41  ;;  %v2407_v41 = vld [vmem:[#allocation2 + $0x130] sm:$0xff] }
 0x23b   :  { %4442 = vmatpush3.msra.mxu1 %v3587_v23  ;;  %v2034_v23 = vld [vmem:[#allocation2 + $0x341] sm:$0xff] }
 0x23c   :  { %4523 = vmatprep.subr.mxu1 %v3634_v62  ;;  %4444 = vmatmul.mubr.f32.vlgmr.msra.gmra.mxu1 %v1632_v60  ;;  %v2409_v60 = vld [vmem:[#allocation2 + $0x150] sm:$0xff] }
 0x23d   :  { %4524 = vmatpush3.msra.mxu1 %v3634_v62  ;;  %4446 = vmatprep.mubr.f32.mxu1 %v1633_v55  ;;  %v2408_v62 = vld [vmem:[#allocation2 + $0x140] sm:$0xff]  ;;  %v2411_v55 = vld [vmem:[#allocation2 + $0x170] sm:$0xff] }
 0x23e   :  { %4525 = vmatprep.subr.mxu1 %v3633_v58 }
 0x23f   :  { %4526 = vmatpush3.msra.mxu1 %v3633_v58  ;;  %v2410_v58 = vld [vmem:[#allocation2 + $0x160] sm:$0xff] }
 0x240   :  { %4527 = vmatprep.subr.mxu1 %v3632_v6  ;;  %4447 = vmatmul.mubr.f32.gmra.mxu1 %v1634_v24  ;;  %v2412_v24 = vld [vmem:[#allocation2 + $0x180] sm:$0xff] }
 0x241   :  { %4528 = vmatpush3.msra.mxu1 %v3632_v6  ;;  %4449 = vmatprep.mubr.f32.mxu1 %v1635_v15 }
 0x242   :  { %4529 = vmatprep.subr.mxu1 %v3631_v2 }
 0x243   :  { %4530 = vmatpush3.msra.mxu1 %v3631_v2  ;;  %v2413_v2 = vld [vmem:[#allocation2 + $0x190] sm:$0xff] }
 0x244   :  { %4531 = vmatprep.subr.mxu1 %v3630_v14  ;;  %4450 = vmatmul.mubr.f32.gmra.mxu1 %v1636_v21  ;;  %v2414_v21 = vld [vmem:[#allocation2 + $0x1a0] sm:$0xff] }
 0x245   :  { %4532 = vmatpush3.msra.mxu1 %v3630_v14  ;;  %4452 = vmatprep.mubr.f32.mxu1 %v1637_v12 }
 0x246   :  { %4533 = vmatprep.subr.mxu1 %v3629_v48 }
 0x247   :  { %4534 = vmatpush3.msra.mxu1 %v3629_v48  ;;  %v2415_v48 = vld [vmem:[#allocation2 + $0x1c0] sm:$0xff] }
 0x248   :  { %4535 = vmatprep.subr.mxu1 %v3628_v59  ;;  %4453 = vmatmul.mubr.f32.gmra.mxu1 %v1638_v20  ;;  %v2416_v20 = vld [vmem:[#allocation2 + $0x1d0] sm:$0xff] }
 0x249   :  { %4536 = vmatpush3.msra.mxu1 %v3628_v59  ;;  %4455 = vmatprep.mubr.f32.mxu1 %v1639_v61 }
 0x24a   :  { %4537 = vmatprep.subr.mxu1 %v3627_v1 }
 0x24b   :  { %4538 = vmatpush3.msra.mxu1 %v3627_v1  ;;  %v2417_v1 = vld [vmem:[#allocation2 + $0x1e0] sm:$0xff] }
 0x24c   :  { %4539 = vmatprep.subr.mxu1 %v3626_v53  ;;  %4456 = vmatmul.mubr.f32.gmra.mxu1 %v1640_v5  ;;  %v2418_v5 = vld [vmem:[#allocation2 + $0x1f0] sm:$0xff] }
 0x24d   :  { %4540 = vmatpush3.msra.mxu1 %v3626_v53  ;;  %4458 = vmatprep.mubr.f32.mxu1 %v1641_v27 }
 0x24e   :  { %4541 = vmatprep.subr.mxu1 %v3625_v10 }
 0x24f   :  { %4542 = vmatpush3.msra.mxu1 %v3625_v10  ;;  %v2419_v10 = vld [vmem:[#allocation2 + $0x200] sm:$0xff] }
 0x250   :  { %4543 = vmatprep.subr.mxu1 %v3624_v37  ;;  %4459 = vmatmul.mubr.f32.gmra.mxu1 %v1642_v0  ;;  %v2421_v0 = vld [vmem:[#allocation2 + $0x220] sm:$0xff] }
 0x251   :  { %4544 = vmatpush3.msra.mxu1 %v3624_v37  ;;  %4461 = vmatprep.mubr.f32.mxu1 %v1643_v32  ;;  %v2420_v37 = vld [vmem:[#allocation2 + $0x210] sm:$0xff] }
 0x252   :  { %4545 = vmatprep.subr.mxu1 %v3623_v51 }
 0x253   :  { %4546 = vmatpush3.msra.mxu1 %v3623_v51 }
 0x254   :  { %4547 = vmatprep.subr.mxu1 %v3622_v28  ;;  %4462 = vmatmul.mubr.f32.gmra.mxu1 %v1644_v11 }
 0x255   :  { %4548 = vmatpush3.msra.mxu1 %v3622_v28  ;;  %4464 = vmatprep.mubr.f32.mxu1 %v1645_v63  ;;  %v2422_v28 = vld [vmem:[#allocation2 + $0x230] sm:$0xff] }
 0x256   :  { %4549 = vmatprep.subr.mxu1 %v3621_v43 }
 0x257   :  { %4550 = vmatpush3.msra.mxu1 %v3621_v43 }
 0x258   :  { %4551 = vmatprep.subr.mxu1 %v3620_v36  ;;  %4465 = vmatmul.mubr.f32.gmra.mxu1 %v1646_v40 }
 0x259   :  { %4552 = vmatpush3.msra.mxu1 %v3620_v36  ;;  %4555 = vmatprep.mubr.f32.mxu1 %v2019_v25 }
 0x25a   :  { %4553 = vmatprep.subr.mxu1 %v3619_v29 }
 0x25b   :  { %4554 = vmatpush3.msra.mxu1 %v3619_v29 }
 0x25c   :  { %4635 = vmatprep.subr.mxu1 %v3666_v31  ;;  %4556 = vmatmul.mubr.f32.vlgmr.msra.gmra.mxu1 %v2020_v17 }
 0x25d   :  { %4636 = vmatpush3.msra.mxu1 %v3666_v31  ;;  %4558 = vmatprep.mubr.f32.mxu1 %v2021_v8 }
 0x25e   :  { %4637 = vmatprep.subr.mxu1 %v3665_v57 }
 0x25f   :  { %4638 = vmatpush3.msra.mxu1 %v3665_v57 }
 0x260   :  { %4639 = vmatprep.subr.mxu1 %v3664_v38  ;;  %4559 = vmatmul.mubr.f32.gmra.mxu1 %v2022_v16 }
 0x261   :  { %4640 = vmatpush3.msra.mxu1 %v3664_v38  ;;  %4561 = vmatprep.mubr.f32.mxu1 %v2023_v47 }
 0x262   :  { %4641 = vmatprep.subr.mxu1 %v3663_v9 }
 0x263   :  { %4642 = vmatpush3.msra.mxu1 %v3663_v9 }
 0x264   :  { %4643 = vmatprep.subr.mxu1 %v3662_v22  ;;  %4562 = vmatmul.mubr.f32.gmra.mxu1 %v2024_v45 }
 0x265   :  { %4644 = vmatpush3.msra.mxu1 %v3662_v22  ;;  %4564 = vmatprep.mubr.f32.mxu1 %v2025_v19 }
 0x266   :  { %4645 = vmatprep.subr.mxu1 %v3661_v33 }
 0x267   :  { %4646 = vmatpush3.msra.mxu1 %v3661_v33 }
 0x268   :  { %4647 = vmatprep.subr.mxu1 %v3660_v13  ;;  %4565 = vmatmul.mubr.f32.gmra.mxu1 %v2026_v18 }
 0x269   :  { %4648 = vmatpush3.msra.mxu1 %v3660_v13  ;;  %4567 = vmatprep.mubr.f32.mxu1 %v2027_v30 }
 0x26a   :  { %4649 = vmatprep.subr.mxu1 %v3659_v56 }
 0x26b   :  { %4650 = vmatpush3.msra.mxu1 %v3659_v56 }
 0x26c   :  { %4651 = vmatprep.subr.mxu1 %v3658_v35  ;;  %4568 = vmatmul.mubr.f32.gmra.mxu1 %v2028_v49 }
 0x26d   :  { %4652 = vmatpush3.msra.mxu1 %v3658_v35  ;;  %4570 = vmatprep.mubr.f32.mxu1 %v2029_v3 }
 0x26e   :  { %4653 = vmatprep.subr.mxu1 %v3657_v4 }
 0x26f   :  { %4654 = vmatpush3.msra.mxu1 %v3657_v4 }
 0x270   :  { %4655 = vmatprep.subr.mxu1 %v3656_v26  ;;  %4571 = vmatmul.mubr.f32.gmra.mxu1 %v2030_v44 }
 0x271   :  { %4656 = vmatpush3.msra.mxu1 %v3656_v26  ;;  %4573 = vmatprep.mubr.f32.mxu1 %v2031_v46 }
 0x272   :  { %4657 = vmatprep.subr.mxu1 %v3655_v34 }
 0x273   :  { %4658 = vmatpush3.msra.mxu1 %v3655_v34 }
 0x274   :  { %4659 = vmatprep.subr.mxu1 %v3654_v42  ;;  %4574 = vmatmul.mubr.f32.gmra.mxu1 %v2032_v54 }
 0x275   :  { %4660 = vmatpush3.msra.mxu1 %v3654_v42  ;;  %4576 = vmatprep.mubr.f32.mxu1 %v2033_v39 }
 0x276   :  { %4661 = vmatprep.subr.mxu1 %v3653_v50 }
 0x277   :  { %4662 = vmatpush3.msra.mxu1 %v3653_v50 }
 0x278   :  { %4663 = vmatprep.subr.mxu1 %v3652_v52  ;;  %4577 = vmatmul.mubr.f32.gmra.mxu1 %v2034_v23 }
 0x279   :  { %4664 = vmatpush3.msra.mxu1 %v3652_v52  ;;  %4667 = vmatprep.mubr.f32.mxu1 %v2407_v41 }
 0x27a   :  { %4665 = vmatprep.subr.mxu1 %v3651_v7 }
 0x27b   :  { %4666 = vmatpush3.msra.mxu1 %v3651_v7  ;;  %v6708_v63 = vpop.f32.mrf.mxu0 }
 0x27c   :  { %4668 = vmatmul.mubr.f32.vlgmr.msra.gmra.mxu1 %v2408_v62 }
 0x27d   :  { %4670 = vmatprep.mubr.f32.mxu1 %v2409_v60  ;;  %v6710_v29 = vpop.f32.mrf.mxu0 }
 0x27f   :  { %v6712_v31 = vpop.f32.mrf.mxu0 }
 0x280   :  { %4671 = vmatmul.mubr.f32.gmra.mxu1 %v2410_v58 }
 0x281   :  { %4673 = vmatprep.mubr.f32.mxu1 %v2411_v55  ;;  %v4277_v6 = vpop.f32.mrf.mxu1  ;;  %v6714_v57 = vpop.f32.mrf.mxu0 }
 0x283   :  { %v6700_v15 = vpop.f32.mrf.mxu1  ;;  %v6716_v9 = vpop.f32.mrf.mxu0 }
 0x284   :  { %4674 = vmatmul.mubr.f32.gmra.mxu1 %v2412_v24 }
 0x285   :  { %4676 = vmatprep.mubr.f32.mxu1 %v2413_v2  ;;  %v6718_v45 = vpop.f32.mrf.mxu0 }
 0x286   :  { %v4280_v14 = vpop.f32.mrf.mxu1 }
 0x288   :  { %4677 = vmatmul.mubr.f32.gmra.mxu1 %v2414_v21  ;;  %v6702_v12 = vpop.f32.mrf.mxu1 }
 0x289   :  { %4679 = vmatprep.mubr.f32.mxu1 %v2415_v48 }
 0x28a   :  { %v4283_v59 = vpop.f32.mrf.mxu1 }
 0x28c   :  { %4680 = vmatmul.mubr.f32.gmra.mxu1 %v2416_v20  ;;  %v6704_v61 = vpop.f32.mrf.mxu1 }
 0x28d   :  { %4682 = vmatprep.mubr.f32.mxu1 %v2417_v1 }
 0x28e   :  { %v4286_v53 = vpop.f32.mrf.mxu1 }
 0x28f   :  { %v6720_v19 = vpop.f32.mrf.mxu0 }
 0x290   :  { %4683 = vmatmul.mubr.f32.gmra.mxu1 %v2418_v5  ;;  %v6706_v27 = vpop.f32.mrf.mxu1 }
 0x291   :  { %4685 = vmatprep.mubr.f32.mxu1 %v2419_v10  ;;  %v6722_v30 = vpop.f32.mrf.mxu0 }
 0x294   :  { %4686 = vmatmul.mubr.f32.gmra.mxu1 %v2420_v37  ;;  %v4289_v51 = vpop.f32.mrf.mxu1 }
 0x295   :  { %4688 = vmatprep.mubr.f32.mxu1 %v2421_v0 }
 0x296   :  { %v1253_v32 = vpop.f32.mrf.mxu1  ;;  %v6724_v4 = vpop.f32.mrf.mxu0 }
 0x298   :  { %4689 = vmatmul.mubr.f32.gmra.mxu1 %v2422_v28  ;;  %v6726_v26 = vpop.f32.mrf.mxu0 }
 0x29a   :  { %v4292_v11 = vpop.f32.mrf.mxu1 }
 0x29c   :  { %v1263_v43 = vpop.f32.mrf.mxu1  ;;  %v6728_v54 = vpop.f32.mrf.mxu0 }
 0x29d   :  { %7684 = vst [vmem:[#allocation25_spill] sm:$0xff] %v6728_v54 }
 0x29e   :  { %v6730_v52 = vpop.f32.mrf.mxu0 }
 0x29f   :  { %7685 = vst [vmem:[#allocation24_spill] sm:$0xff] %v6730_v52 }
 0x2a0   :  { %v4295_v36 = vpop.f32.mrf.mxu1 }
 0x2a2   :  { %v1273_v40 = vpop.f32.mrf.mxu1  ;;  %v6732_v41 = vpop.f32.mrf.mxu0 }
 0x2a3   :  { %7686 = vst [vmem:[#allocation27_spill] sm:$0xff] %v6732_v41 }
 0x2a6   :  { %v4298_v25 = vpop.f32.mrf.mxu1 }
 0x2a8   :  { %v1283_v17 = vpop.f32.mrf.mxu1 }
 0x2ac   :  { %v4333_v8 = vpop.f32.mrf.mxu1 }
 0x2ad   :  { %v1364_v38 = vadd.f32 %v4333_v8, %v4277_v6  ;;  %v6734_v6 = vpop.f32.mrf.mxu0 }
 0x2ae   :  { %v1358_v16 = vpop.f32.mrf.mxu1  ;;  %7687 = vst [vmem:[#allocation26_spill] sm:$0xff] %v6734_v6 }
 0x2af   :  { %v1359_v1 = vadd.f32 %v1358_v16, %v6700_v15 }
 0x2b2   :  { %v4336_v47 = vpop.f32.mrf.mxu1 }
 0x2b3   :  { %v1374_v22 = vadd.f32 %v4336_v47, %v4280_v14  ;;  %v6736_v14 = vpop.f32.mrf.mxu0 }
 0x2b4   :  { %v1368_v33 = vpop.f32.mrf.mxu1  ;;  %7688 = vst [vmem:[#allocation29_spill] sm:$0xff] %v6736_v14 }
 0x2b8   :  { %v4339_v13 = vpop.f32.mrf.mxu1 }
 0x2b9   :  { %v1384_v18 = vadd.f32 %v4339_v13, %v4283_v59  ;;  %v6738_v59 = vpop.f32.mrf.mxu0 }
 0x2ba   :  { %v1378_v56 = vpop.f32.mrf.mxu1  ;;  %7689 = vst [vmem:[#allocation28_spill] sm:$0xff] %v6738_v59 }
 0x2bb   :  { %v6745_v37 = vpop.f32.mrf.mxu0  ;;  %v1379_v15 = vadd.f32 %v1378_v56, %v6704_v61 }
 0x2be   :  { %v4342_v35 = vpop.f32.mrf.mxu1 }
 0x2bf   :  { %v1394_v49 = vadd.f32 %v4342_v35, %v4286_v53 }
 0x2c0   :  { %v1388_v3 = vpop.f32.mrf.mxu1 }
 0x2c4   :  { %v4345_v44 = vpop.f32.mrf.mxu1 }
 0x2c5   :  { %v1404_v34 = vadd.f32 %v4345_v44, %v4289_v51  ;;  %v1369_v51 = vadd.f32 %v1368_v33, %v6702_v12  ;;  %v1389_v12 = vadd.f32 %v1388_v3, %v6706_v27 }
 0x2c6   :  { %v1398_v46 = vpop.f32.mrf.mxu1 }
 0x2c7   :  { %v1399_v42 = vadd.f32 %v1398_v46, %v1253_v32 }
 0x2ca   :  { %v4348_v50 = vpop.f32.mrf.mxu1 }
 0x2cb   :  { %v1414_v39 = vadd.f32 %v4348_v50, %v4292_v11 }
 0x2cc   :  { %v1408_v23 = vpop.f32.mrf.mxu1 }
 0x2cd   :  { %v1409_v7 = vadd.f32 %v1408_v23, %v1263_v43  ;;  %v6752_v43 = vpop.f32.mrf.mxu0 }
 0x2cf   :  { %v6759_v8 = vpop.f32.mrf.mxu0 }
 0x2d0   :  { %v4351_v62 = vpop.f32.mrf.mxu1 }
 0x2d1   :  { %v1424_v60 = vadd.f32 %v4351_v62, %v4295_v36  ;;  %v6766_v33 = vpop.f32.mrf.mxu0 }
 0x2d2   :  { %v1418_v58 = vpop.f32.mrf.mxu1 }
 0x2d3   :  { %v1419_v55 = vadd.f32 %v1418_v58, %v1273_v40  ;;  %v6772_v56 = vpop.f32.mrf.mxu0 }
 0x2d6   :  { %v4354_v24 = vpop.f32.mrf.mxu1 }
 0x2d7   :  { %v1434_v2 = vadd.f32 %v4354_v24, %v4298_v25 }
 0x2d8   :  { %v1428_v21 = vpop.f32.mrf.mxu1 }
 0x2d9   :  { %v1429_v48 = vadd.f32 %v1428_v21, %v1283_v17 }
 0x2dc   :  { %v4389_v20 = vpop.f32.mrf.mxu1 }
 0x2dd   :  { %v6741_v53 = vadd.f32 %v4389_v20, %v1364_v38  ;;  %v2937_v20 = vld [vmem:[%s7521_s8 + $0x60] sm:$0xff] }
 0x2de   :  { %v1536_v5 = vpop.f32.mrf.mxu1 }
 0x2df   :  { %v6743_v10 = vadd.f32 %v1536_v5, %v1359_v1 }
 0x2e0   :  { %v4392_v0 = vpop.f32.mrf.mxu1 }
 0x2e1   :  { %v6748_v32 = vadd.f32 %v4392_v0, %v1374_v22 }
 0x2e2   :  { %v1546_v28 = vpop.f32.mrf.mxu1 }
 0x2e3   :  { %v6750_v11 = vadd.f32 %v1546_v28, %v1369_v51 }
 0x2e4   :  { %v4395_v36 = vpop.f32.mrf.mxu1 }
 0x2e5   :  { %v6755_v40 = vadd.f32 %v4395_v36, %v1384_v18  ;;  %v2934_v36 = vld [vmem:[%s7521_s8 + $0x48] sm:$0xff] }
 0x2e6   :  { %v1556_v25 = vpop.f32.mrf.mxu1 }
 0x2e7   :  { %v6757_v17 = vadd.f32 %v1556_v25, %v1379_v15  ;;  %v6824_v15 = vld [vmem:[%s7524_s11 + $0x78] sm:$0xff] }
 0x2e8   :  { %v4398_v38 = vpop.f32.mrf.mxu1  ;;  %7695 = vst [vmem:[#allocation8_spill] sm:$0xff] %v6824_v15  ;;  %4803 = vmatprep.subr.mxu0 %v6824_v15 }
 0x2e9   :  { %v6762_v16 = vadd.f32 %v4398_v38, %v1394_v49  ;;  %v6778_v49 = vpop.f32.mrf.mxu0  ;;  %v2933_v38 = vld [vmem:[%s7521_s8 + $0x40] sm:$0xff]  ;;  %4804 = vmatpush3.msra.mxu0 %v6824_v15 }
 0x2ea   :  { %v1566_v47 = vpop.f32.mrf.mxu1 }
 0x2eb   :  { %v6764_v22 = vadd.f32 %v1566_v47, %v1389_v12  ;;  %v6836_v12 = vld [vmem:[%s7524_s11 + $0x70] sm:$0xff] }
 0x2ec   :  { %v4401_v13 = vpop.f32.mrf.mxu1  ;;  %7696 = vst [vmem:[#allocation11_spill] sm:$0xff] %v6836_v12  ;;  %4805 = vmatprep.subr.mxu0 %v6836_v12 }
 0x2ed   :  { %v6768_v35 = vadd.f32 %v4401_v13, %v1404_v34  ;;  %v2940_v34 = vld [vmem:[%s7521_s8 + $0x78] sm:$0xff]  ;;  %4806 = vmatpush3.msra.mxu0 %v6836_v12 }
 0x2ee   :  { %v1576_v61 = vpop.f32.mrf.mxu1  ;;  %4747 = vmatprep.subr.mxu1 %v2940_v34 }
 0x2ef   :  { %v6770_v18 = vadd.f32 %v1576_v61, %v1399_v42  ;;  %4748 = vmatpush3.msra.mxu1 %v2940_v34  ;;  %v2932_v61 = vld [vmem:[%s7521_s8 + $0x38] sm:$0xff]  ;;  %v6862_v34 = vld [vmem:[%s7524_s11 + $0x60] sm:$0xff] }
 0x2f0   :  { %v4404_v44 = vpop.f32.mrf.mxu1  ;;  %7699 = vst [vmem:[#allocation15_spill] sm:$0xff] %v6862_v34 }
 0x2f1   :  { %v6774_v46 = vadd.f32 %v4404_v44, %v1414_v39  ;;  %v2939_v39 = vld [vmem:[%s7521_s8 + $0x70] sm:$0xff]  ;;  %v6850_v44 = vld [vmem:[%s7524_s11 + $0x68] sm:$0xff] }
 0x2f2   :  { %v1586_v50 = vpop.f32.mrf.mxu1  ;;  %4749 = vmatprep.subr.mxu1 %v2939_v39  ;;  %7698 = vst [vmem:[#allocation16_spill] sm:$0xff] %v6850_v44  ;;  %4807 = vmatprep.subr.mxu0 %v6850_v44 }
 0x2f3   :  { %v6776_v27 = vadd.f32 %v1586_v50, %v1409_v7  ;;  %v6790_v7 = vpop.f32.mrf.mxu0  ;;  %4750 = vmatpush3.msra.mxu1 %v2939_v39  ;;  %4808 = vmatpush3.msra.mxu0 %v6850_v44 }
 0x2f4   :  { %v4407_v3 = vpop.f32.mrf.mxu1  ;;  %7690 = vst [vmem:[#allocation31_spill] sm:$0xff] %v6790_v7  ;;  %4809 = vmatprep.subr.mxu0 %v6862_v34 }
 0x2f5   :  { %v6780_v23 = vadd.f32 %v4407_v3, %v1424_v60  ;;  %v2938_v60 = vld [vmem:[%s7521_s8 + $0x68] sm:$0xff]  ;;  %v6802_v1 = vpop.f32.mrf.mxu0  ;;  %v2931_v3 = vld [vmem:[%s7521_s8 + $0x30] sm:$0xff]  ;;  %4810 = vmatpush3.msra.mxu0 %v6862_v34 }
 0x2f6   :  { %v1596_v62 = vpop.f32.mrf.mxu1  ;;  %4751 = vmatprep.subr.mxu1 %v2938_v60  ;;  %7693 = vst [vmem:[#allocation6_spill] sm:$0xff] %v6802_v1 }
 0x2f7   :  { %v6785_v42 = vadd.f32 %v1596_v62, %v1419_v55  ;;  %4752 = vmatpush3.msra.mxu1 %v2938_v60  ;;  %v6814_v51 = vpop.f32.mrf.mxu0  ;;  %v6876_v60 = vld [vmem:[%s7524_s11 + $0x58] sm:$0xff] }
 0x2f8   :  { %v4410_v58 = vpop.f32.mrf.mxu1  ;;  %4753 = vmatprep.subr.mxu1 %v2937_v20  ;;  %7694 = vst [vmem:[#allocation9_spill] sm:$0xff] %v6814_v51  ;;  %7701 = vst [vmem:[#allocation12_spill] sm:$0xff] %v6876_v60  ;;  %4811 = vmatprep.subr.mxu0 %v6876_v60 }
 0x2f9   :  { %v6792_v24 = vadd.f32 %v4410_v58, %v1434_v2  ;;  %4754 = vmatpush3.msra.mxu1 %v2937_v20  ;;  %v2936_v2 = vld [vmem:[%s7521_s8 + $0x58] sm:$0xff]  ;;  %v6838_v47 = vpop.f32.mrf.mxu0  ;;  %v2930_v58 = vld [vmem:[%s7521_s8 + $0x28] sm:$0xff]  ;;  %v2929_v20 = vld [vmem:[%s7521_s8 + $0x20] sm:$0xff]  ;;  %4812 = vmatpush3.msra.mxu0 %v6876_v60 }
 0x2fa   :  { %v1606_v21 = vpop.f32.mrf.mxu1  ;;  %4755 = vmatprep.subr.mxu1 %v2936_v2  ;;  %7697 = vst [vmem:[#allocation10_spill] sm:$0xff] %v6838_v47  ;;  %v6922_v60 = vld [vmem:[%s7524_s11 + $0x38] sm:$0xff] }
 0x2fb   :  { %7691 = vst [vmem:[#allocation30_spill] sm:$0xff] %v6792_v24  ;;  %v6797_v55 = vadd.f32 %v1606_v21, %v1429_v48  ;;  %4756 = vmatpush3.msra.mxu1 %v2936_v2  ;;  %v2935_v48 = vld [vmem:[%s7521_s8 + $0x50] sm:$0xff]  ;;  %v6864_v62 = vpop.f32.mrf.mxu0  ;;  %7706 = vst [vmem:[#allocation21_spill] sm:$0xff] %v6922_v60 }
 0x2fc   :  { %v6804_v5 = vpop.f32.mrf.mxu1  ;;  %4757 = vmatprep.subr.mxu1 %v2935_v48  ;;  %7700 = vst [vmem:[#allocation13_spill] sm:$0xff] %v6864_v62  ;;  %v6888_v2 = vld [vmem:[%s7524_s11 + $0x50] sm:$0xff] }
 0x2fd   :  { %7692 = vst [vmem:[#allocation7_spill] sm:$0xff] %v6797_v55  ;;  %4758 = vmatpush3.msra.mxu1 %v2935_v48  ;;  %7702 = vst [vmem:[#allocation17_spill] sm:$0xff] %v6888_v2  ;;  %v6890_v48 = vpop.f32.mrf.mxu0  ;;  %4813 = vmatprep.subr.mxu0 %v6888_v2 }
 0x2fe   :  { %v6809_v0 = vpop.f32.mrf.mxu1  ;;  %4759 = vmatprep.subr.mxu1 %v2934_v36  ;;  %7703 = vst [vmem:[#allocation14_spill] sm:$0xff] %v6890_v48  ;;  %4814 = vmatpush3.msra.mxu0 %v6888_v2  ;;  %v2926_v2 = vld [vmem:[%s7521_s8 + $0x8] sm:$0xff] }
 0x2ff   :  { %4760 = vmatpush3.msra.mxu1 %v2934_v36  ;;  %v6924_v34 = vpop.f32.mrf.mxu0  ;;  %v1809_v54 = vadd.f32 %v6809_v0, %v6743_v10 }
 0x300   :  { %v6816_v28 = vpop.f32.mrf.mxu1  ;;  %4761 = vmatprep.subr.mxu1 %v2933_v38  ;;  %7707 = vst [vmem:[#allocation20_spill] sm:$0xff] %v6924_v34  ;;  %v6951_v34 = vld [vmem:[%s7524_s11 + $0x28] sm:$0xff] }
 0x301   :  { %4762 = vmatpush3.msra.mxu1 %v2933_v38  ;;  %v2928_v38 = vld [vmem:[%s7521_s8 + $0x18] sm:$0xff]  ;;  %7710 = vst [vmem:[#allocation33_spill] sm:$0xff] %v6951_v34 }
 0x302   :  { %v6826_v25 = vpop.f32.mrf.mxu1  ;;  %4763 = vmatprep.subr.mxu1 %v2932_v61 }
 0x303   :  { %4764 = vmatpush3.msra.mxu1 %v2932_v61  ;;  %v6902_v61 = vld [vmem:[%s7524_s11 + $0x48] sm:$0xff] }
 0x304   :  { %v6840_v13 = vpop.f32.mrf.mxu1  ;;  %4765 = vmatprep.subr.mxu1 %v2931_v3  ;;  %7704 = vst [vmem:[#allocation19_spill] sm:$0xff] %v6902_v61  ;;  %4815 = vmatprep.subr.mxu0 %v6902_v61 }
 0x305   :  { %4766 = vmatpush3.msra.mxu1 %v2931_v3  ;;  %4816 = vmatpush3.msra.mxu0 %v6902_v61  ;;  %v6936_v61 = vld [vmem:[%s7524_s11 + $0x30] sm:$0xff]  ;;  %v1814_v10 = vadd.f32 %v6840_v13, %v6755_v40 }
 0x306   :  { %v6852_v50 = vpop.f32.mrf.mxu1  ;;  %4767 = vmatprep.subr.mxu1 %v2930_v58  ;;  %7708 = vst [vmem:[#allocation23_spill] sm:$0xff] %v6936_v61 }
 0x307   :  { %4768 = vmatpush3.msra.mxu1 %v2930_v58  ;;  %v2927_v58 = vld [vmem:[%s7521_s8 + $0x10] sm:$0xff] }
 0x308   :  { %v6866_v39 = vpop.f32.mrf.mxu1  ;;  %4769 = vmatprep.subr.mxu1 %v2929_v20 }
 0x309   :  { %4770 = vmatpush3.msra.mxu1 %v2929_v20  ;;  %v6913_v20 = vld [vmem:[%s7524_s11 + $0x40] sm:$0xff] }
 0x30a   :  { %v6878_v21 = vpop.f32.mrf.mxu1  ;;  %4771 = vmatprep.subr.mxu1 %v2928_v38  ;;  %7705 = vst [vmem:[#allocation18_spill] sm:$0xff] %v6913_v20  ;;  %4817 = vmatprep.subr.mxu0 %v6913_v20 }
 0x30b   :  { %4772 = vmatpush3.msra.mxu1 %v2928_v38  ;;  %4818 = vmatpush3.msra.mxu0 %v6913_v20  ;;  %v2925_v38 = vld [vmem:[%s7521_s8] sm:$0xff] }
 0x30c   :  { %v6892_v36 = vpop.f32.mrf.mxu1  ;;  %4773 = vmatprep.subr.mxu1 %v2927_v58  ;;  %4819 = vmatprep.subr.mxu0 %v6922_v60 }
 0x30d   :  { %4774 = vmatpush3.msra.mxu1 %v2927_v58  ;;  %4820 = vmatpush3.msra.mxu0 %v6922_v60  ;;  %v6942_v58 = vpop.f32.mrf.mxu0  ;;  %v6972_v60 = vld [vmem:[%s7524_s11 + $0x18] sm:$0xff] }
 0x30e   :  { %v6904_v3 = vpop.f32.mrf.mxu1  ;;  %4775 = vmatprep.subr.mxu1 %v2926_v2  ;;  %7709 = vst [vmem:[#allocation22_spill] sm:$0xff] %v6942_v58  ;;  %4821 = vmatprep.subr.mxu0 %v6936_v61  ;;  %7715 = vst [vmem:[#allocation38_spill] sm:$0xff] %v6972_v60 }
 0x30f   :  { %4776 = vmatpush3.msra.mxu1 %v2926_v2  ;;  %4822 = vmatpush3.msra.mxu0 %v6936_v61  ;;  %v6961_v2 = vld [vmem:[%s7524_s11 + $0x20] sm:$0xff] }
 0x310   :  { %v6926_v44 = vpop.f32.mrf.mxu1  ;;  %4777 = vmatprep.subr.mxu1 %v2925_v38  ;;  %4823 = vmatprep.subr.mxu0 %v6951_v34  ;;  %7712 = vst [vmem:[#allocation35_spill] sm:$0xff] %v6961_v2 }
 0x311   :  { %4778 = vmatpush3.msra.mxu1 %v2925_v38  ;;  %4824 = vmatpush3.msra.mxu0 %v6951_v34  ;;  %v6963_v38 = vpop.f32.mrf.mxu0  ;;  %v6981_v34 = vld [vmem:[%s7524_s11 + $0x10] sm:$0xff] }
 0x312   :  { %v6938_v12 = vpop.f32.mrf.mxu1  ;;  %4859 = vmatprep.subr.mxu1 %v6824_v15  ;;  %7713 = vst [vmem:[#allocation36_spill] sm:$0xff] %v6963_v38  ;;  %4825 = vmatprep.subr.mxu0 %v6961_v2  ;;  %7717 = vst [vmem:[#allocation40_spill] sm:$0xff] %v6981_v34 }
 0x313   :  { %4826 = vmatpush3.msra.mxu0 %v6961_v2  ;;  %v6983_v38 = vpop.f32.mrf.mxu0  ;;  %v6990_v2 = vld [vmem:[%s7524_s11 + $0x8] sm:$0xff] }
 0x314   :  { %v6944_v20 = vpop.f32.mrf.mxu1  ;;  %4827 = vmatprep.subr.mxu0 %v6972_v60  ;;  %7718 = vst [vmem:[#allocation41_spill] sm:$0xff] %v6983_v38  ;;  %7719 = vst [vmem:[#allocation42_spill] sm:$0xff] %v6990_v2 }
 0x315   :  { %4828 = vmatpush3.msra.mxu0 %v6972_v60  ;;  %v6997_v60 = vld [vmem:[%s7524_s11] sm:$0xff]  ;;  %v6999_v38 = vpop.f32.mrf.mxu0 }
 0x316   :  { %v6953_v59 = vpop.f32.mrf.mxu1  ;;  %4829 = vmatprep.subr.mxu0 %v6981_v34  ;;  %7720 = vst [vmem:[#allocation43_spill] sm:$0xff] %v6997_v60 }
 0x317   :  { %7711 = vst [vmem:[#allocation34_spill] sm:$0xff] %v6953_v59  ;;  %4830 = vmatpush3.msra.mxu0 %v6981_v34  ;;  %v3200_v34 = vld [vmem:[%s7514_s1] sm:$0xff]  ;;  %v7009_v47 = vpop.f32.mrf.mxu0 }
 0x318   :  { %v6965_v61 = vpop.f32.mrf.mxu1  ;;  %4831 = vmatprep.subr.mxu0 %v6990_v2  ;;  %4835 = vmatprep.mubr.f32.mxu0 %v3200_v34 }
 0x319   :  { %7714 = vst [vmem:[#allocation37_spill] sm:$0xff] %v6965_v61  ;;  %4832 = vmatpush3.msra.mxu0 %v6990_v2  ;;  %v3201_v2 = vld [vmem:[%s7514_s1 + $0x8] sm:$0xff]  ;;  %v7017_v34 = vpop.f32.mrf.mxu0 }
 0x31a   :  { %v6974_v15 = vpop.f32.mrf.mxu1  ;;  %4833 = vmatprep.subr.mxu0 %v6997_v60 }
 0x31b   :  { %7716 = vst [vmem:[#allocation39_spill] sm:$0xff] %v6974_v15  ;;  %4834 = vmatpush3.msra.mxu0 %v6997_v60  ;;  %v3202_v15 = vld [vmem:[%s7514_s1 + $0x10] sm:$0xff]  ;;  %v3203_v60 = vld [vmem:[%s7514_s1 + $0x18] sm:$0xff]  ;;  %v7029_v24 = vpop.f32.mrf.mxu0 }
 0x31c   :  { %v4557_v58 = vpop.f32.mrf.mxu1  ;;  %4836 = vmatmul.mubr.f32.vlgmr.msra.gmra.mxu0 %v3201_v2  ;;  %v3204_v2 = vld [vmem:[%s7514_s1 + $0x20] sm:$0xff] }
 0x31d   :  { %4838 = vmatprep.mubr.f32.mxu0 %v3202_v15  ;;  %v3205_v15 = vld [vmem:[%s7514_s1 + $0x28] sm:$0xff]  ;;  %v7041_v7 = vpop.f32.mrf.mxu0 }
 0x31e   :  { %v2118_v14 = vpop.f32.mrf.mxu1  ;;  %7723 = vst [vmem:[#allocation46_spill] sm:$0xff] %v7041_v7 }
 0x31f   :  { %v7051_v59 = vpop.f32.mrf.mxu0 }
 0x320   :  { %v4560_v48 = vpop.f32.mrf.mxu1  ;;  %4839 = vmatmul.mubr.f32.gmra.mxu0 %v3203_v60  ;;  %v3206_v60 = vld [vmem:[%s7514_s1 + $0x30] sm:$0xff] }
 0x321   :  { %4841 = vmatprep.mubr.f32.mxu0 %v3204_v2  ;;  %v3207_v2 = vld [vmem:[%s7514_s1 + $0x38] sm:$0xff] }
 0x322   :  { %v2128_v62 = vpop.f32.mrf.mxu1 }
 0x324   :  { %v4563_v6 = vpop.f32.mrf.mxu1  ;;  %4842 = vmatmul.mubr.f32.gmra.mxu0 %v3205_v15  ;;  %v1810_v15 = vadd.f32 %v6804_v5, %v6741_v53  ;;  %v2003_v5 = vadd.f32 %v6710_v29, %v1809_v54 }
 0x325   :  { %4844 = vmatprep.mubr.f32.mxu0 %v3206_v60 }
 0x326   :  { %v2138_v55 = vpop.f32.mrf.mxu1 }
 0x328   :  { %v7019_v51 = vpop.f32.mrf.mxu1  ;;  %4845 = vmatmul.mubr.f32.gmra.mxu0 %v3207_v2  ;;  %v2004_v2 = vadd.f32 %v6708_v63, %v1810_v15  ;;  %v1813_v63 = vadd.f32 %v6852_v50, %v6757_v17  ;;  %v1815_v17 = vadd.f32 %v6878_v21, %v6764_v22 }
 0x32a   :  { %v7024_v61 = vpop.f32.mrf.mxu1  ;;  %v2198_v53 = vadd.f32 %v4557_v58, %v2004_v2 }
 0x32c   :  { %v7031_v41 = vpop.f32.mrf.mxu1  ;;  %v2392_v29 = vadd.f32 %v6745_v37, %v2198_v53  ;;  %v7728_v53 = vld [vmem:[#allocation25_spill] sm:$0xff] }
 0x32d   :  { %7721 = vst [vmem:[#allocation44_spill] sm:$0xff] %v7031_v41 }
 0x32e   :  { %v7036_v1 = vpop.f32.mrf.mxu1 }
 0x32f   :  { %7722 = vst [vmem:[#allocation45_spill] sm:$0xff] %v7036_v1  ;;  %v1812_v1 = vadd.f32 %v6816_v28, %v6748_v32 }
 0x330   :  { %v7043_v52 = vpop.f32.mrf.mxu1 }
 0x331   :  { %7724 = vst [vmem:[#allocation47_spill] sm:$0xff] %v7043_v52  ;;  %v1811_v52 = vadd.f32 %v6826_v25, %v6750_v11  ;;  %v2006_v32 = vadd.f32 %v6712_v31, %v1812_v1  ;;  %v2008_v25 = vadd.f32 %v6716_v9, %v1814_v10  ;;  %v1817_v9 = vadd.f32 %v6904_v3, %v6770_v18  ;;  %v7729_v10 = vld [vmem:[#allocation24_spill] sm:$0xff] }
 0x332   :  { %v7047_v41 = vpop.f32.mrf.mxu1  ;;  %v2009_v18 = vadd.f32 %v6722_v30, %v1815_v17 }
 0x333   :  { %7725 = vst [vmem:[#allocation48_spill] sm:$0xff] %v7047_v41  ;;  %v7063_v41 = vpop.f32.mrf.mxu0  ;;  %v2200_v15 = vadd.f32 %v4560_v48, %v2006_v32  ;;  %v2005_v11 = vadd.f32 %v6714_v57, %v1811_v52  ;;  %v1818_v57 = vadd.f32 %v6892_v36, %v6768_v35  ;;  %v2007_v52 = vadd.f32 %v6718_v45, %v1813_v63 }
 0x334   :  { %v7053_v60 = vpop.f32.mrf.mxu1  ;;  %v2202_v50 = vadd.f32 %v4563_v6, %v2008_v25  ;;  %v1820_v6 = vadd.f32 %v6926_v44, %v6774_v46  ;;  %v2011_v58 = vadd.f32 %v6726_v26, %v1817_v9  ;;  %v2203_v44 = vadd.f32 %v7024_v61, %v2009_v18  ;;  %v7727_v61 = vld [vmem:[#allocation34_spill] sm:$0xff] }
 0x335   :  { %7726 = vst [vmem:[#allocation49_spill] sm:$0xff] %v7053_v60  ;;  %v2197_v60 = vadd.f32 %v2118_v14, %v2003_v5  ;;  %v7076_v54 = vpop.f32.mrf.mxu0  ;;  %v1816_v14 = vadd.f32 %v6866_v39, %v6762_v16  ;;  %v2199_v13 = vadd.f32 %v2128_v62, %v2005_v11  ;;  %v2394_v16 = vadd.f32 %v6759_v8, %v2200_v15 }
 0x336   :  { %v7058_v7 = vpop.f32.mrf.mxu1  ;;  %v2201_v39 = vadd.f32 %v2138_v55, %v2007_v52  ;;  %v1819_v8 = vadd.f32 %v6938_v12, %v6776_v27  ;;  %v2012_v55 = vadd.f32 %v6724_v4, %v1818_v57  ;;  %v1821_v2 = vadd.f32 %v7727_v61, %v6785_v42 }
 0x337   :  { %v2391_v1 = vadd.f32 %v6752_v43, %v2197_v60  ;;  %v7090_v62 = vpop.f32.mrf.mxu0  ;;  %v2010_v21 = vadd.f32 %v6720_v19, %v1816_v14  ;;  %v2393_v36 = vadd.f32 %v6766_v33, %v2199_v13  ;;  %v2014_v5 = vadd.f32 %v7728_v53, %v1820_v6  ;;  %v7733_v13 = vld [vmem:[#allocation6_spill] sm:$0xff] }
 0x338   :  { %v7067_v0 = vpop.f32.mrf.mxu1  ;;  %v2395_v4 = vadd.f32 %v6778_v49, %v2201_v39  ;;  %v2013_v49 = vadd.f32 %v7729_v10, %v1819_v8  ;;  %v7743_v53 = vld [vmem:[#allocation26_spill] sm:$0xff] }
 0x339   :  { %v7110_v33 = vpop.f32.mrf.mxu0  ;;  %v2204_v46 = vadd.f32 %v7019_v51, %v2010_v21  ;;  %v1822_v51 = vadd.f32 %v6944_v20, %v6780_v23  ;;  %v7732_v20 = vld [vmem:[#allocation31_spill] sm:$0xff] }
 0x33a   :  { %v7072_v28 = vpop.f32.mrf.mxu1 }
 0x33b   :  { %v4740_v11 = vpop.f32.mrf.mxu0  ;;  %v2398_v42 = vadd.f32 %v7732_v20, %v2204_v46 }
 0x33c   :  { %v4669_v40 = vpop.f32.mrf.mxu1 }
 0x33d   :  { %v2586_v31 = vadd.f32 %v4669_v40, %v2392_v29  ;;  %v7730_v29 = vld [vmem:[#allocation44_spill] sm:$0xff]  ;;  %v7731_v40 = vld [vmem:[#allocation46_spill] sm:$0xff]  ;;  %v2750_v18 = vpop.f32.mrf.mxu0 }
 0x33e   :  { %v2506_v37 = vpop.f32.mrf.mxu1  ;;  %v2206_v25 = vadd.f32 %v7730_v29, %v2012_v55  ;;  %v7738_v55 = vld [vmem:[#allocation37_spill] sm:$0xff] }
 0x33f   :  { %v2585_v48 = vadd.f32 %v2506_v37, %v2391_v1  ;;  %v7093_v43 = vadd.f32 %v6999_v38, %v2586_v31  ;;  %v2396_v38 = vadd.f32 %v6772_v56, %v2202_v50  ;;  %v2397_v31 = vadd.f32 %v7733_v13, %v2203_v44  ;;  %v7734_v37 = vld [vmem:[#allocation45_spill] sm:$0xff]  ;;  %v7735_v50 = vld [vmem:[#allocation47_spill] sm:$0xff]  ;;  %v4743_v29 = vpop.f32.mrf.mxu0 }
 0x340   :  { %v4672_v22 = vpop.f32.mrf.mxu1  ;;  %v2205_v9 = vadd.f32 %v7734_v37, %v2011_v58  ;;  %v7748_v37 = vld [vmem:[#allocation29_spill] sm:$0xff] }
 0x341   :  { %v7097_v35 = vadd.f32 %v7009_v47, %v2585_v48  ;;  %v2588_v45 = vadd.f32 %v4672_v22, %v2394_v16  ;;  %v2819_v30 = vmul.f32 %v7093_v43, %v7093_v43  ;;  %v2208_v48 = vadd.f32 %v7735_v50, %v2014_v5  ;;  %v7736_v16 = vld [vmem:[#allocation27_spill] sm:$0xff] }
 0x342   :  { %v2516_v3 = vpop.f32.mrf.mxu1  ;;  %v2016_v39 = vadd.f32 %v7736_v16, %v1822_v51  ;;  %v7742_v51 = vld [vmem:[#allocation39_spill] sm:$0xff]  ;;  %v2015_v5 = vadd.f32 %v7743_v53, %v1821_v2  ;;  %v7747_v2 = vld [vmem:[#allocation14_spill] sm:$0xff]  ;;  %v7749_v16 = vld [vmem:[#allocation28_spill] sm:$0xff] }
 0x343   :  { %v2818_v19 = vmul.f32 %v7097_v35, %v7097_v35  ;;  %v2587_v47 = vadd.f32 %v2516_v3, %v2393_v36  ;;  %v2797_v26 = vadd.f32 %v7093_v43, %v7097_v35  ;;  %v7120_v12 = vadd.f32 %v7017_v34, %v2588_v45 }
 0x344   :  { %v4675_v27 = vpop.f32.mrf.mxu1  ;;  %v2209_v20 = vadd.f32 %v7058_v7, %v2015_v5 }
 0x345   :  { %v7123_v56 = vadd.f32 %v7029_v24, %v2587_v47  ;;  %v2590_v60 = vadd.f32 %v4675_v27, %v2396_v38  ;;  %v2834_v63 = vadd.f32 %v2819_v30, %v2818_v19  ;;  %v2821_v1 = vmul.f32 %v7120_v12, %v7120_v12  ;;  %v7739_v19 = vld [vmem:[#allocation48_spill] sm:$0xff]  ;;  %v7740_v38 = vld [vmem:[#allocation9_spill] sm:$0xff] }
 0x346   :  { %v2526_v32 = vpop.f32.mrf.mxu1  ;;  %v2207_v47 = vadd.f32 %v7739_v19, %v2013_v49  ;;  %v2400_v46 = vadd.f32 %v7740_v38, %v2206_v25  ;;  %v7744_v49 = vld [vmem:[#allocation10_spill] sm:$0xff]  ;;  %v7746_v25 = vld [vmem:[#allocation49_spill] sm:$0xff] }
 0x347   :  { %v2798_v15 = vadd.f32 %v2797_v26, %v7123_v56  ;;  %v2820_v34 = vmul.f32 %v7123_v56, %v7123_v56  ;;  %v2589_v24 = vadd.f32 %v2526_v32, %v2395_v4  ;;  %v7136_v23 = vadd.f32 %v7731_v40, %v2590_v60  ;;  %v7741_v60 = vld [vmem:[#allocation7_spill] sm:$0xff] }
 0x348   :  { %v4678_v14 = vpop.f32.mrf.mxu1  ;;  %v1823_v61 = vadd.f32 %v7742_v51, %v7741_v60  ;;  %v2399_v32 = vadd.f32 %v7744_v49, %v2205_v9  ;;  %v2210_v40 = vadd.f32 %v7746_v25, %v2016_v39  ;;  %v2401_v13 = vadd.f32 %v7747_v2, %v2207_v47  ;;  %v7751_v47 = vld [vmem:[#allocation22_spill] sm:$0xff]  ;;  %v7753_v49 = vld [vmem:[#allocation41_spill] sm:$0xff] }
 0x349   :  { %v2835_v17 = vadd.f32 %v2834_v63, %v2820_v34  ;;  %v7143_v57 = vadd.f32 %v7051_v59, %v2589_v24  ;;  %v2799_v52 = vadd.f32 %v2798_v15, %v7120_v12  ;;  %v2592_v22 = vadd.f32 %v4678_v14, %v2398_v42  ;;  %v7737_v59 = vld [vmem:[#allocation30_spill] sm:$0xff]  ;;  %v7745_v24 = vld [vmem:[#allocation13_spill] sm:$0xff] }
 0x34a   :  { %v2536_v21 = vpop.f32.mrf.mxu1  ;;  %v1824_v3 = vadd.f32 %v7738_v55, %v7737_v59  ;;  %v2823_v58 = vmul.f32 %v7136_v23, %v7136_v23  ;;  %v2017_v39 = vadd.f32 %v7749_v16, %v1823_v61  ;;  %v7750_v59 = vld [vmem:[#allocation20_spill] sm:$0xff] }
 0x34b   :  { %v2800_v45 = vadd.f32 %v2799_v52, %v7143_v57  ;;  %v2822_v36 = vmul.f32 %v7143_v57, %v7143_v57  ;;  %v2836_v6 = vadd.f32 %v2835_v17, %v2821_v1  ;;  %v2591_v8 = vadd.f32 %v2536_v21, %v2397_v31 }
 0x34c   :  { %v4681_v44 = vpop.f32.mrf.mxu1  ;;  %v7159_v27 = vadd.f32 %v7063_v41, %v2592_v22  ;;  %v2018_v9 = vadd.f32 %v7748_v37, %v1824_v3  ;;  %v2404_v55 = vadd.f32 %v7750_v59, %v2210_v40  ;;  %v2211_v3 = vadd.f32 %v7072_v28, %v2017_v39 }
 0x34d   :  { %v2837_v30 = vadd.f32 %v2836_v6, %v2822_v36  ;;  %v7162_v4 = vadd.f32 %v7076_v54, %v2591_v8  ;;  %v2801_v26 = vadd.f32 %v2800_v45, %v7136_v23  ;;  %v2594_v10 = vadd.f32 %v4681_v44, %v2400_v46  ;;  %v2760_v45 = vpop.f32.mrf.mxu0 }
 0x34e   :  { %v2546_v63 = vpop.f32.mrf.mxu1  ;;  %v2402_v54 = vadd.f32 %v7745_v24, %v2208_v48  ;;  %v2825_v31 = vmul.f32 %v7159_v27, %v7159_v27  ;;  %v2212_v36 = vadd.f32 %v7067_v0, %v2018_v9 }
 0x34f   :  { %v2802_v15 = vadd.f32 %v2801_v26, %v7162_v4  ;;  %v2824_v41 = vmul.f32 %v7162_v4, %v7162_v4  ;;  %v2838_v34 = vadd.f32 %v2837_v30, %v2823_v58  ;;  %v2593_v42 = vadd.f32 %v2546_v63, %v2399_v32  ;;  %v4746_v51 = vpop.f32.mrf.mxu0 }
 0x350   :  { %v4684_v14 = vpop.f32.mrf.mxu1  ;;  %v7181_v50 = vadd.f32 %v7090_v62, %v2594_v10  ;;  %v2403_v58 = vadd.f32 %v7751_v47, %v2209_v20  ;;  %v2405_v32 = vadd.f32 %v7753_v49, %v2211_v3 }
 0x351   :  { %v2839_v1 = vadd.f32 %v2838_v34, %v2824_v41  ;;  %v2803_v17 = vadd.f32 %v2802_v15, %v7159_v27  ;;  %v2596_v52 = vadd.f32 %v4684_v14, %v2402_v54  ;;  %v7184_v48 = vadd.f32 %v7110_v33, %v2593_v42  ;;  %v2770_v40 = vpop.f32.mrf.mxu0 }
 0x352   :  { %v2556_v7 = vpop.f32.mrf.mxu1  ;;  %v2827_v38 = vmul.f32 %v7181_v50, %v7181_v50 }
 0x353   :  { %v2840_v22 = vadd.f32 %v2839_v1, %v2825_v31  ;;  %v2595_v21 = vadd.f32 %v2556_v7, %v2401_v13  ;;  %v2804_v6 = vadd.f32 %v2803_v17, %v7184_v48  ;;  %v2826_v8 = vmul.f32 %v7184_v48, %v7184_v48 }
 0x354   :  { %v4687_v62 = vpop.f32.mrf.mxu1  ;;  %v7193_v33 = vadd.f32 %v4740_v11, %v2596_v52 }
 0x355   :  { %v7195_v19 = vadd.f32 %v2750_v18, %v2595_v21  ;;  %v2841_v0 = vadd.f32 %v2840_v22, %v2826_v8  ;;  %v2805_v46 = vadd.f32 %v2804_v6, %v7181_v50  ;;  %v2598_v44 = vadd.f32 %v4687_v62, %v2404_v55  ;;  %v7752_v18 = vld [vmem:[#allocation36_spill] sm:$0xff] }
 0x356   :  { %v2566_v30 = vpop.f32.mrf.mxu1  ;;  %v2406_v61 = vadd.f32 %v7752_v18, %v2212_v36  ;;  %v2829_v5 = vmul.f32 %v7193_v33, %v7193_v33  ;;  %v7754_v18 = vld [vmem:[#allocation32_spill] sm:$0xff] }
 0x357   :  { %v2828_v26 = vmul.f32 %v7195_v19, %v7195_v19  ;;  %v2597_v60 = vadd.f32 %v2566_v30, %v2403_v58  ;;  %v2806_v28 = vadd.f32 %v2805_v46, %v7195_v19  ;;  %v2842_v11 = vadd.f32 %v2841_v0, %v2827_v38 }
 0x358   :  { %v4690_v53 = vpop.f32.mrf.mxu1  ;;  %v2792_v15 = vadd.f32 %v4743_v29, %v2598_v44 }
 0x359   :  { %v7207_v10 = vadd.f32 %v2760_v45, %v2597_v60  ;;  %v2843_v63 = vadd.f32 %v2842_v11, %v2828_v26  ;;  %v2807_v41 = vadd.f32 %v2806_v28, %v7193_v33  ;;  %v2600_v34 = vadd.f32 %v4690_v53, %v2406_v61  ;;  %v2795_v26 = vld [vmem:[%s7519_s6] sm:$0x1] }
 0x35a   :  { %v2576_v24 = vpop.f32.mrf.mxu1  ;;  %v2831_v2 = vmul.f32 %v2792_v15, %v2792_v15  ;;  %v2796_v28 = vld [vmem:[%s7520_s7] sm:$0x1] }
 0x35b   :  { %v2830_v54 = vmul.f32 %v7207_v10, %v7207_v10  ;;  %v2599_v25 = vadd.f32 %v2576_v24, %v2405_v32  ;;  %v2808_v20 = vadd.f32 %v2807_v41, %v7207_v10  ;;  %v2844_v42 = vadd.f32 %v2843_v63, %v2829_v5 }
 0x35c   :  { %v7216_v31 = vadd.f32 %v4746_v51, %v2600_v34 }
 0x35d   :  { %v7214_v14 = vadd.f32 %v2770_v40, %v2599_v25  ;;  %v2845_v13 = vadd.f32 %v2844_v42, %v2830_v54  ;;  %v2809_v1 = vadd.f32 %v2808_v20, %v2792_v15 }
 0x35e   :  { %v2833_v37 = vmul.f32 %v7216_v31, %v7216_v31 }
 0x35f   :  { %v2832_v29 = vmul.f32 %v7214_v14, %v7214_v14  ;;  %v2810_v17 = vadd.f32 %v2809_v1, %v7214_v14  ;;  %v2846_v52 = vadd.f32 %v2845_v13, %v2831_v2 }
 0x361   :  { %v2811_v9 = vadd.f32 %v2810_v17, %v7216_v31  ;;  %v2847_v7 = vadd.f32 %v2846_v52, %v2832_v29 }
 0x363   :  { %v2812_v16 = vrot.slane %v2811_v9, 4  ;;  %v2848_v39 = vadd.f32 %v2847_v7, %v2833_v37  ;;  %v7755_v7 = vld [vmem:[#allocation8_spill] sm:$0xff] }
 0x365   :  { %v2813_v22 = vadd.f32 %v2812_v16, %v2811_v9  ;;  %v2849_v21 = vrot.slane %v2848_v39, 4  ;;  %v7756_v16 = vld [vmem:[#allocation11_spill] sm:$0xff] }
 0x367   :  { %v2814_v45 = vrot.slane %v2813_v22, 2  ;;  %v2850_v36 = vadd.f32 %v2849_v21, %v2848_v39 }
 0x369   :  { %v2815_v6 = vadd.f32 %v2814_v45, %v2813_v22  ;;  %v2851_v8 = vrot.slane %v2850_v36, 2 }
 0x36b   :  { %v2816_v59 = vrot.slane %v2815_v6, 1  ;;  %v2852_v55 = vadd.f32 %v2851_v8, %v2850_v36  ;;  %v7757_v36 = vld [vmem:[#allocation16_spill] sm:$0xff] }
 0x36c   :  { %v7759_v8 = vld [vmem:[#allocation12_spill] sm:$0xff] }
 0x36d   :  { %v2817_v62 = vadd.f32 %v2816_v59, %v2815_v6  ;;  %v2853_v3 = vrot.slane %v2852_v55, 1  ;;  %v7760_v59 = vld [vmem:[#allocation17_spill] sm:$0xff] }
 0x36f   :  { %v2854_v47 = vadd.f32 %v2853_v3, %v2852_v55  ;;  %v2855_v58 = vmul.f32 0.0078125, %v2817_v62  ;;  %v7761_v3 = vld [vmem:[#allocation19_spill] sm:$0xff] }
 0x371   :  { %v2856_v38 = vmul.f32 0.0078125, %v2854_v47  ;;  %v2857_v0 = vmul.f32 %v2855_v58, %v2855_v58  ;;  %v7762_v47 = vld [vmem:[#allocation18_spill] sm:$0xff] }
 0x373   :  { %v2858_v46 = vsub.f32 %v2856_v38, %v2857_v0  ;;  %v7763_v0 = vld [vmem:[#allocation21_spill] sm:$0xff] }
 0x375   :  { %v2859_v44 = vmax.f32 %v2858_v46, 0.0  ;;  %v7764_v46 = vld [vmem:[#allocation23_spill] sm:$0xff] }
 0x377   :  { %v2860_v30 = vadd.f32 1e-05, %v2859_v44 }
 0x379   :  { %4897 = vrsqrt.f32 %v2860_v30 }
 0x386   :  { %v4898_v60 = vpop.eup %4897 }
 0x387   :  { %v2862_v51 = vmul.f32 %v4898_v60, %v2795_v26  ;;  %v7765_v26 = vld [vmem:[#allocation33_spill] sm:$0xff]  ;;  %v7766_v60 = vld [vmem:[#allocation35_spill] sm:$0xff] }
 0x389   :  { %v2863_v11 = vmul.f32 %v2862_v51, %v2855_v58  ;;  %v2869_v61 = vrot.slane %v2862_v51, %v7754_v18 }
 0x38b   :  { %v2864_v53 = vsub.f32 %v2796_v28, %v2863_v11  ;;  %v2871_v5 = vmul.f32 %v2869_v61, %v7097_v35  ;;  %v2872_v49 = vmul.f32 %v2869_v61, %v7093_v43  ;;  %v2873_v32 = vmul.f32 %v2869_v61, %v7123_v56  ;;  %v7767_v11 = vld [vmem:[#allocation38_spill] sm:$0xff] }
 0x38c   :  { %v2874_v63 = vmul.f32 %v2869_v61, %v7120_v12  ;;  %v2875_v41 = vmul.f32 %v2869_v61, %v7143_v57  ;;  %v2876_v34 = vmul.f32 %v2869_v61, %v7136_v23  ;;  %v2877_v24 = vmul.f32 %v2869_v61, %v7162_v4 }
 0x38d   :  { %v2891_v54 = vrot.slane %v2864_v53, %v7754_v18  ;;  %v2878_v25 = vmul.f32 %v2869_v61, %v7159_v27  ;;  %v2879_v40 = vmul.f32 %v2869_v61, %v7184_v48  ;;  %v2880_v35 = vmul.f32 %v2869_v61, %v7181_v50 }
 0x38e   :  { %v2881_v43 = vmul.f32 %v2869_v61, %v7195_v19  ;;  %v2882_v56 = vmul.f32 %v2869_v61, %v7193_v33  ;;  %v2883_v12 = vmul.f32 %v2869_v61, %v7207_v10  ;;  %v2884_v20 = vmul.f32 %v2869_v61, %v2792_v15 }
 0x38f   :  { %v2893_v57 = vadd.f32 %v2891_v54, %v2871_v5  ;;  %v2894_v42 = vadd.f32 %v2891_v54, %v2872_v49  ;;  %v2895_v23 = vadd.f32 %v2891_v54, %v2873_v32  ;;  %v2896_v2 = vadd.f32 %v2891_v54, %v2874_v63  ;;  %v3208_v5 = vld [vmem:[%s7514_s1 + $0x40] sm:$0xff]  ;;  %v3209_v32 = vld [vmem:[%s7514_s1 + $0x48] sm:$0xff] }
 0x390   :  { %v2897_v4 = vadd.f32 %v2891_v54, %v2875_v41  ;;  %v2898_v13 = vadd.f32 %v2891_v54, %v2876_v34  ;;  %v2899_v1 = vadd.f32 %v2891_v54, %v2877_v24  ;;  %v2900_v29 = vadd.f32 %v2891_v54, %v2878_v25  ;;  %v7769_v49 = vld [vmem:[#allocation42_spill] sm:$0xff]  ;;  %v7770_v63 = vld [vmem:[#allocation43_spill] sm:$0xff]  ;;  %v3210_v41 = vld [vmem:[%s7514_s1 + $0x50] sm:$0xff] }
 0x391   :  { %v2909_v27 = vmax.f32 %v2893_v57, 0.0  ;;  %v2910_v17 = vmax.f32 %v2894_v42, 0.0  ;;  %v2911_v48 = vmax.f32 %v2895_v23, 0.0  ;;  %v2901_v50 = vadd.f32 %v2891_v54, %v2879_v40  ;;  %v3211_v34 = vld [vmem:[%s7514_s1 + $0x58] sm:$0xff]  ;;  %v3212_v24 = vld [vmem:[%s7514_s1 + $0x60] sm:$0xff]  ;;  %v3214_v25 = vld [vmem:[%s7514_s1 + $0x70] sm:$0xff] }
 0x392   :  { %v2902_v52 = vadd.f32 %v2891_v54, %v2880_v35  ;;  %v2903_v19 = vadd.f32 %v2891_v54, %v2881_v43  ;;  %v2904_v37 = vadd.f32 %v2891_v54, %v2882_v56  ;;  %v2905_v33 = vadd.f32 %v2891_v54, %v2883_v12  ;;  %v3215_v40 = vld [vmem:[%s7514_s1 + $0x78] sm:$0xff] }
 0x393   :  { %4779 = vmatprep.mubr.f32.mxu1 %v2909_v27  ;;  %v2906_v10 = vadd.f32 %v2891_v54, %v2884_v20  ;;  %v2885_v15 = vmul.f32 %v2869_v61, %v7214_v14  ;;  %v2886_v9 = vmul.f32 %v2869_v61, %v7216_v31  ;;  %v2912_v39 = vmax.f32 %v2896_v2, 0.0  ;;  %v7758_v14 = vld [vmem:[#allocation15_spill] sm:$0xff]  ;;  %v7768_v61 = vld [vmem:[#allocation40_spill] sm:$0xff] }
 0x394   :  { %4780 = vmatmul.mubr.f32.vlgmr.msra.gmra.mxu1 %v2910_v17  ;;  %v2913_v45 = vmax.f32 %v2897_v4, 0.0  ;;  %v2914_v31 = vmax.f32 %v2898_v13, 0.0  ;;  %v2915_v6 = vmax.f32 %v2899_v1, 0.0  ;;  %v2916_v55 = vmax.f32 %v2900_v29, 0.0 }
 0x395   :  { %4875 = vmatpush3.msra.mxu1 %v7755_v7  ;;  %4782 = vmatprep.mubr.f32.mxu1 %v2911_v48  ;;  %v2907_v22 = vadd.f32 %v2891_v54, %v2885_v15  ;;  %v2908_v21 = vadd.f32 %v2891_v54, %v2886_v9  ;;  %v2917_v62 = vmax.f32 %v2901_v50, 0.0  ;;  %v2918_v58 = vmax.f32 %v2902_v52, 0.0  ;;  %v3213_v54 = vld [vmem:[%s7514_s1 + $0x68] sm:$0xff] }
 0x396   :  { %4860 = vmatprep.subr.mxu1 %v7756_v16  ;;  %v2919_v38 = vmax.f32 %v2903_v19, 0.0  ;;  %v2920_v44 = vmax.f32 %v2904_v37, 0.0  ;;  %v2921_v30 = vmax.f32 %v2905_v33, 0.0  ;;  %v2922_v51 = vmax.f32 %v2906_v10, 0.0 }
 0x397   :  { %4876 = vmatpush3.msra.mxu1 %v7756_v16  ;;  %v2923_v28 = vmax.f32 %v2907_v22, 0.0  ;;  %v2924_v53 = vmax.f32 %v2908_v21, 0.0 }
 0x398   :  { %4861 = vmatprep.subr.mxu1 %v7757_v36  ;;  %4783 = vmatmul.mubr.f32.gmra.mxu1 %v2912_v39 }
 0x399   :  { %4877 = vmatpush3.msra.mxu1 %v7757_v36  ;;  %4785 = vmatprep.mubr.f32.mxu1 %v2913_v45 }
 0x39a   :  { %4862 = vmatprep.subr.mxu1 %v7758_v14 }
 0x39b   :  { %4878 = vmatpush3.msra.mxu1 %v7758_v14 }
 0x39c   :  { %4863 = vmatprep.subr.mxu1 %v7759_v8  ;;  %4786 = vmatmul.mubr.f32.gmra.mxu1 %v2914_v31 }
 0x39d   :  { %4879 = vmatpush3.msra.mxu1 %v7759_v8  ;;  %4788 = vmatprep.mubr.f32.mxu1 %v2915_v6 }
 0x39e   :  { %4864 = vmatprep.subr.mxu1 %v7760_v59 }
 0x39f   :  { %4880 = vmatpush3.msra.mxu1 %v7760_v59 }
 0x3a0   :  { %4865 = vmatprep.subr.mxu1 %v7761_v3  ;;  %4789 = vmatmul.mubr.f32.gmra.mxu1 %v2916_v55 }
 0x3a1   :  { %4881 = vmatpush3.msra.mxu1 %v7761_v3  ;;  %4791 = vmatprep.mubr.f32.mxu1 %v2917_v62 }
 0x3a2   :  { %4866 = vmatprep.subr.mxu1 %v7762_v47 }
 0x3a3   :  { %4882 = vmatpush3.msra.mxu1 %v7762_v47 }
 0x3a4   :  { %4867 = vmatprep.subr.mxu1 %v7763_v0  ;;  %4792 = vmatmul.mubr.f32.gmra.mxu1 %v2918_v58 }
 0x3a5   :  { %4883 = vmatpush3.msra.mxu1 %v7763_v0  ;;  %4794 = vmatprep.mubr.f32.mxu1 %v2919_v38 }
 0x3a6   :  { %4868 = vmatprep.subr.mxu1 %v7764_v46 }
 0x3a7   :  { %4884 = vmatpush3.msra.mxu1 %v7764_v46 }
 0x3a8   :  { %4869 = vmatprep.subr.mxu1 %v7765_v26  ;;  %4795 = vmatmul.mubr.f32.gmra.mxu1 %v2920_v44 }
 0x3a9   :  { %4885 = vmatpush3.msra.mxu1 %v7765_v26  ;;  %4797 = vmatprep.mubr.f32.mxu1 %v2921_v30 }
 0x3aa   :  { %4870 = vmatprep.subr.mxu1 %v7766_v60 }
 0x3ab   :  { %4886 = vmatpush3.msra.mxu1 %v7766_v60 }
 0x3ac   :  { %4871 = vmatprep.subr.mxu1 %v7767_v11  ;;  %4798 = vmatmul.mubr.f32.gmra.mxu1 %v2922_v51 }
 0x3ad   :  { %4887 = vmatpush3.msra.mxu1 %v7767_v11  ;;  %4800 = vmatprep.mubr.f32.mxu1 %v2923_v28 }
 0x3ae   :  { %4872 = vmatprep.subr.mxu1 %v7768_v61 }
 0x3af   :  { %4888 = vmatpush3.msra.mxu1 %v7768_v61 }
 0x3b0   :  { %4873 = vmatprep.subr.mxu1 %v7769_v49  ;;  %4801 = vmatmul.mubr.f32.gmra.mxu1 %v2924_v53 }
 0x3b1   :  { %4889 = vmatpush3.msra.mxu1 %v7769_v49  ;;  %4847 = vmatprep.mubr.f32.mxu1 %v3208_v5 }
 0x3b2   :  { %4874 = vmatprep.subr.mxu1 %v7770_v63 }
 0x3b3   :  { %4890 = vmatpush3.msra.mxu1 %v7770_v63 }
 0x3b4   :  { %4848 = vmatmul.mubr.f32.vlgmr.msra.gmra.mxu1 %v3209_v32 }
 0x3b5   :  { %4850 = vmatprep.mubr.f32.mxu1 %v3210_v41 }
 0x3b8   :  { %4851 = vmatmul.mubr.f32.gmra.mxu1 %v3211_v34 }
 0x3b9   :  { %4853 = vmatprep.mubr.f32.mxu1 %v3212_v24 }
 0x3bc   :  { %4854 = vmatmul.mubr.f32.gmra.mxu1 %v3213_v54 }
 0x3bd   :  { %4856 = vmatprep.mubr.f32.mxu1 %v3214_v25 }
 0x3c0   :  { %4857 = vmatmul.mubr.f32.gmra.mxu1 %v3215_v40 }
 0x3dc   :  { %v7302_v35 = vpop.f32.mrf.mxu0 }
 0x3dd   :  { %v3401_v13 = vmul.f32 %v7302_v35, %v7302_v35 }
 0x3de   :  { %v7304_v43 = vpop.f32.mrf.mxu0 }
 0x3df   :  { %v3400_v1 = vmul.f32 %v7304_v43, %v7304_v43  ;;  %v3379_v33 = vadd.f32 %v7302_v35, %v7304_v43 }
 0x3e0   :  { %v7312_v57 = vpop.f32.mrf.mxu0 }
 0x3e1   :  { %v3416_v15 = vadd.f32 %v3401_v13, %v3400_v1  ;;  %v3403_v8 = vmul.f32 %v7312_v57, %v7312_v57 }
 0x3e2   :  { %v7329_v48 = vpop.f32.mrf.mxu0 }
 0x3e3   :  { %v3402_v9 = vmul.f32 %v7329_v48, %v7329_v48  ;;  %v3380_v31 = vadd.f32 %v3379_v33, %v7329_v48 }
 0x3e4   :  { %v7345_v22 = vpop.f32.mrf.mxu0 }
 0x3e5   :  { %v3417_v59 = vadd.f32 %v3416_v15, %v3402_v9  ;;  %v3381_v44 = vadd.f32 %v7312_v57, %v3380_v31  ;;  %v3405_v41 = vmul.f32 %v7345_v22, %v7345_v22 }
 0x3e6   :  { %v7360_v47 = vpop.f32.mrf.mxu0 }
 0x3e7   :  { %v3404_v26 = vmul.f32 %v7360_v47, %v7360_v47  ;;  %v3418_v60 = vadd.f32 %v3417_v59, %v3403_v8  ;;  %v3382_v63 = vadd.f32 %v3381_v44, %v7360_v47 }
 0x3e8   :  { %v7375_v61 = vpop.f32.mrf.mxu0 }
 0x3e9   :  { %v3419_v24 = vadd.f32 %v3418_v60, %v3404_v26 }
 0x454   :  { %v7306_v56 = vpop.f32.mrf.mxu1 }
 0x455   :  { %v3110_v23 = vmul.f32 %v7306_v56, %v7306_v56 }
 0x456   :  { %v7308_v12 = vpop.f32.mrf.mxu1 }
 0x457   :  { %v3109_v20 = vmul.f32 %v7308_v12, %v7308_v12  ;;  %v3088_v2 = vadd.f32 %v7306_v56, %v7308_v12 }
 0x458   :  { %v7314_v42 = vpop.f32.mrf.mxu1 }
 0x459   :  { %v3125_v29 = vadd.f32 %v3110_v23, %v3109_v20  ;;  %v3112_v52 = vmul.f32 %v7314_v42, %v7314_v42  ;;  %v7390_v20 = vpop.f32.mrf.mxu0 }
 0x45a   :  { %v7320_v4 = vpop.f32.mrf.mxu1 }
 0x45b   :  { %v3089_v27 = vadd.f32 %v3088_v2, %v7320_v4  ;;  %v3111_v17 = vmul.f32 %v7320_v4, %v7320_v4 }
 0x45c   :  { %v7331_v50 = vpop.f32.mrf.mxu1 }
 0x45d   :  { %v3126_v19 = vadd.f32 %v3125_v29, %v3111_v17  ;;  %v3090_v37 = vadd.f32 %v7314_v42, %v3089_v27  ;;  %v3114_v45 = vmul.f32 %v7331_v50, %v7331_v50  ;;  %v3383_v29 = vadd.f32 %v7345_v22, %v3382_v63 }
 0x45e   :  { %v7338_v10 = vpop.f32.mrf.mxu1  ;;  %v3406_v17 = vmul.f32 %v7390_v20, %v7390_v20 }
 0x45f   :  { %v3091_v7 = vadd.f32 %v3090_v37, %v7338_v10  ;;  %v3113_v16 = vmul.f32 %v7338_v10, %v7338_v10  ;;  %v3127_v39 = vadd.f32 %v3126_v19, %v3112_v52  ;;  %v3420_v52 = vadd.f32 %v3419_v24, %v3405_v41 }
 0x460   :  { %v7347_v21 = vpop.f32.mrf.mxu1 }
 0x461   :  { %v3128_v36 = vadd.f32 %v3127_v39, %v3113_v16  ;;  %v3092_v14 = vadd.f32 %v7331_v50, %v3091_v7  ;;  %v3116_v38 = vmul.f32 %v7347_v21, %v7347_v21  ;;  %v3384_v16 = vadd.f32 %v3383_v29, %v7390_v20 }
 0x462   :  { %v7353_v6 = vpop.f32.mrf.mxu1 }
 0x463   :  { %v3093_v55 = vadd.f32 %v3092_v14, %v7353_v6  ;;  %v3115_v62 = vmul.f32 %v7353_v6, %v7353_v6  ;;  %v3129_v3 = vadd.f32 %v3128_v36, %v3114_v45  ;;  %v3407_v45 = vmul.f32 %v7375_v61, %v7375_v61 }
 0x464   :  { %v7362_v58 = vpop.f32.mrf.mxu1  ;;  %v3421_v36 = vadd.f32 %v3420_v52, %v3406_v17 }
 0x465   :  { %v3130_v0 = vadd.f32 %v3129_v3, %v3115_v62  ;;  %v3094_v46 = vadd.f32 %v7347_v21, %v3093_v55  ;;  %v3118_v5 = vmul.f32 %v7362_v58, %v7362_v58  ;;  %v3385_v62 = vadd.f32 %v7375_v61, %v3384_v16 }
 0x466   :  { %v7368_v30 = vpop.f32.mrf.mxu1 }
 0x467   :  { %v3095_v51 = vadd.f32 %v3094_v46, %v7368_v30  ;;  %v3117_v28 = vmul.f32 %v7368_v30, %v7368_v30  ;;  %v3131_v11 = vadd.f32 %v3130_v0, %v3116_v38  ;;  %v3422_v46 = vadd.f32 %v3421_v36, %v3407_v45 }
 0x468   :  { %v7377_v53 = vpop.f32.mrf.mxu1 }
 0x469   :  { %v3132_v49 = vadd.f32 %v3131_v11, %v3117_v28  ;;  %v3096_v32 = vadd.f32 %v7362_v58, %v3095_v51  ;;  %v3120_v2 = vmul.f32 %v7377_v53, %v7377_v53 }
 0x46a   :  { %v7385_v34 = vpop.f32.mrf.mxu1 }
 0x46b   :  { %v3097_v54 = vadd.f32 %v3096_v32, %v7385_v34  ;;  %v3119_v25 = vmul.f32 %v7385_v34, %v7385_v34  ;;  %v3133_v40 = vadd.f32 %v3132_v49, %v3118_v5 }
 0x46c   :  { %v7392_v23 = vpop.f32.mrf.mxu1 }
 0x46d   :  { %v3134_v13 = vadd.f32 %v3133_v40, %v3119_v25  ;;  %v3098_v1 = vadd.f32 %v7377_v53, %v3097_v54  ;;  %v3122_v9 = vmul.f32 %v7392_v23, %v7392_v23 }
 0x46e   :  { %v7398_v27 = vpop.f32.mrf.mxu1 }
 0x46f   :  { %v3099_v19 = vadd.f32 %v3098_v1, %v7398_v27  ;;  %v3121_v37 = vmul.f32 %v7398_v27, %v7398_v27  ;;  %v3135_v33 = vadd.f32 %v3134_v13, %v3120_v2 }
 0x470   :  { %v7405_v15 = vpop.f32.mrf.mxu1 }
 0x471   :  { %v3136_v7 = vadd.f32 %v3135_v33, %v3121_v37  ;;  %v3100_v39 = vadd.f32 %v7392_v23, %v3099_v19  ;;  %v3124_v3 = vmul.f32 %v7405_v15, %v7405_v15 }
 0x472   :  { %v7413_v14 = vpop.f32.mrf.mxu1 }
 0x473   :  { %v3101_v31 = vadd.f32 %v3100_v39, %v7413_v14  ;;  %v3123_v8 = vmul.f32 %v7413_v14, %v7413_v14  ;;  %v3137_v59 = vadd.f32 %v3136_v7, %v3122_v9 }
 0x474   :  { %v7418_v55 = vpop.f32.mrf.mxu1 }
 0x475   :  { %v3102_v38 = vadd.f32 %v7405_v15, %v3101_v31  ;;  %v3138_v0 = vadd.f32 %v3137_v59, %v3123_v8  ;;  %v3409_v32 = vmul.f32 %v7418_v55, %v7418_v55 }
 0x476   :  { %v7424_v44 = vpop.f32.mrf.mxu1 }
 0x477   :  { %v3103_v26 = vrot.slane %v3102_v38, 4  ;;  %v3139_v60 = vadd.f32 %v3138_v0, %v3124_v3  ;;  %v3386_v51 = vadd.f32 %v3385_v62, %v7424_v44  ;;  %v3408_v28 = vmul.f32 %v7424_v44, %v7424_v44 }
 0x478   :  { %v7429_v11 = vpop.f32.mrf.mxu1 }
 0x479   :  { %v3104_v5 = vadd.f32 %v3103_v26, %v3102_v38  ;;  %v3140_v49 = vrot.slane %v3139_v60, 4  ;;  %v3423_v63 = vadd.f32 %v3422_v46, %v3408_v28  ;;  %v3387_v24 = vadd.f32 %v7418_v55, %v3386_v51 }
 0x47a   :  { %v7433_v41 = vpop.f32.mrf.mxu1  ;;  %v3411_v52 = vmul.f32 %v7429_v11, %v7429_v11 }
 0x47b   :  { %v3105_v54 = vrot.slane %v3104_v5, 2  ;;  %v3141_v25 = vadd.f32 %v3140_v49, %v3139_v60  ;;  %v3410_v40 = vmul.f32 %v7433_v41, %v7433_v41  ;;  %v3424_v2 = vadd.f32 %v3423_v63, %v3409_v32 }
 0x47c   :  { %v3388_v13 = vadd.f32 %v3387_v24, %v7433_v41  ;;  %v7439_v1 = vpop.f32.mrf.mxu1 }
 0x47d   :  { %v3106_v29 = vadd.f32 %v3105_v54, %v3104_v5  ;;  %v3142_v17 = vrot.slane %v3141_v25, 2  ;;  %v3425_v19 = vadd.f32 %v3424_v2, %v3410_v40  ;;  %v3413_v59 = vmul.f32 %v7439_v1, %v7439_v1 }
 0x47e   :  { %v7443_v37 = vpop.f32.mrf.mxu1  ;;  %v3389_v33 = vadd.f32 %v7429_v11, %v3388_v13 }
 0x47f   :  { %v3107_v9 = vrot.slane %v3106_v29, 1  ;;  %v3143_v7 = vadd.f32 %v3142_v17, %v3141_v25  ;;  %v3412_v16 = vmul.f32 %v7443_v37, %v7443_v37  ;;  %v3426_v39 = vadd.f32 %v3425_v19, %v3411_v52 }
 0x480   :  { %v3390_v45 = vadd.f32 %v3389_v33, %v7443_v37  ;;  %v7449_v36 = vpop.f32.mrf.mxu1 }
 0x481   :  { %v3108_v31 = vadd.f32 %v3107_v9, %v3106_v29  ;;  %v3144_v8 = vrot.slane %v3143_v7, 1  ;;  %v3427_v62 = vadd.f32 %v3426_v39, %v3412_v16  ;;  %v3415_v49 = vmul.f32 %v7449_v36, %v7449_v36 }
 0x482   :  { %v7453_v3 = vpop.f32.mrf.mxu1  ;;  %v3391_v38 = vadd.f32 %v7439_v1, %v3390_v45 }
 0x483   :  { %v3145_v0 = vadd.f32 %v3144_v8, %v3143_v7  ;;  %v3146_v46 = vmul.f32 0.0078125, %v3108_v31  ;;  %v3414_v26 = vmul.f32 %v7453_v3, %v7453_v3  ;;  %v3428_v60 = vadd.f32 %v3427_v62, %v3413_v59  ;;  %v3086_v62 = vld [vmem:[%s7522_s9] sm:$0x1] }
 0x484   :  { %v3392_v51 = vadd.f32 %v3391_v38, %v7453_v3 }
 0x485   :  { %v3147_v28 = vmul.f32 0.0078125, %v3145_v0  ;;  %v3148_v5 = vmul.f32 %v3146_v46, %v3146_v46  ;;  %v3429_v32 = vadd.f32 %v3428_v60, %v3414_v26 }
 0x486   :  { %v3393_v63 = vadd.f32 %v7449_v36, %v3392_v51 }
 0x487   :  { %v3149_v24 = vsub.f32 %v3147_v28, %v3148_v5  ;;  %v3430_v54 = vadd.f32 %v3429_v32, %v3415_v49  ;;  %v3087_v5 = vld [vmem:[%s7523_s10] sm:$0x1] }
 0x488   :  { %v3394_v25 = vrot.slane %v3393_v63, 4 }
 0x489   :  { %v3150_v40 = vmax.f32 %v3149_v24, 0.0  ;;  %v3431_v2 = vrot.slane %v3430_v54, 4 }
 0x48a   :  { %v3395_v13 = vadd.f32 %v3394_v25, %v3393_v63 }
 0x48b   :  { %v3151_v29 = vadd.f32 1e-05, %v3150_v40  ;;  %v3432_v17 = vadd.f32 %v3431_v2, %v3430_v54 }
 0x48c   :  { %v3396_v52 = vrot.slane %v3395_v13, 2 }
 0x48d   :  { %4899 = vrsqrt.f32 %v3151_v29  ;;  %v3433_v19 = vrot.slane %v3432_v17, 2  ;;  %v3377_v29 = vld [vmem:[%s7525_s12] sm:$0x1] }
 0x48e   :  { %v3397_v33 = vadd.f32 %v3396_v52, %v3395_v13 }
 0x48f   :  { %v3434_v9 = vadd.f32 %v3433_v19, %v3432_v17 }
 0x490   :  { %v3398_v7 = vrot.slane %v3397_v33, 1 }
 0x491   :  { %v3435_v16 = vrot.slane %v3434_v9, 1 }
 0x492   :  { %v3399_v39 = vadd.f32 %v3398_v7, %v3397_v33 }
 0x493   :  { %v3436_v45 = vadd.f32 %v3435_v16, %v3434_v9 }
 0x494   :  { %v3437_v31 = vmul.f32 0.0078125, %v3399_v39 }
 0x495   :  { %v3438_v8 = vmul.f32 0.0078125, %v3436_v45 }
 0x496   :  { %v3439_v59 = vmul.f32 %v3437_v31, %v3437_v31 }
 0x498   :  { %v3440_v38 = vsub.f32 %v3438_v8, %v3439_v59 }
 0x49a   :  { %v4900_v0 = vpop.eup %4899  ;;  %v3441_v26 = vmax.f32 %v3440_v38, 0.0 }
 0x49b   :  { %v3153_v60 = vmul.f32 %v4900_v0, %v3086_v62 }
 0x49c   :  { %v3442_v51 = vadd.f32 1e-05, %v3441_v26 }
 0x49d   :  { %v3154_v28 = vmul.f32 %v3153_v60, %v3146_v46  ;;  %v3160_v32 = vrot.slane %v3153_v60, %v7754_v18 }
 0x49e   :  { %4901 = vrsqrt.f32 %v3442_v51 }
 0x49f   :  { %v3155_v49 = vsub.f32 %v3087_v5, %v3154_v28  ;;  %v3176_v24 = vmul.f32 %v3160_v32, %v7413_v14  ;;  %v3162_v54 = vmul.f32 %v3160_v32, %v7308_v12  ;;  %v3163_v25 = vmul.f32 %v7306_v56, %v3160_v32 }
 0x4a0   :  { %v3164_v40 = vmul.f32 %v3160_v32, %v7320_v4  ;;  %v3165_v46 = vmul.f32 %v7314_v42, %v3160_v32  ;;  %v3166_v2 = vmul.f32 %v3160_v32, %v7338_v10  ;;  %v3167_v13 = vmul.f32 %v7331_v50, %v3160_v32 }
 0x4a1   :  { %v3182_v63 = vrot.slane %v3155_v49, %v7754_v18  ;;  %v3168_v17 = vmul.f32 %v3160_v32, %v7353_v6  ;;  %v3169_v14 = vmul.f32 %v7347_v21, %v3160_v32  ;;  %v3170_v12 = vmul.f32 %v3160_v32, %v7368_v30 }
 0x4a2   :  { %v3171_v56 = vmul.f32 %v7362_v58, %v3160_v32  ;;  %v3172_v4 = vmul.f32 %v3160_v32, %v7385_v34  ;;  %v3173_v42 = vmul.f32 %v7377_v53, %v3160_v32  ;;  %v3174_v10 = vmul.f32 %v3160_v32, %v7398_v27  ;;  %v3378_v58 = vld [vmem:[%s7526_s13] sm:$0x1]  ;;  %s4927_s13 = smov [#allocation3]  }
 0x4a3   :  { %v3198_v52 = vadd.f32 %v3182_v63, %v3176_v24  ;;  %v3175_v19 = vmul.f32 %v7392_v23, %v3160_v32  ;;  %v3177_v33 = vmul.f32 %v7405_v15, %v3160_v32  ;;  %v3184_v9 = vadd.f32 %v3182_v63, %v3162_v54  ;;  %s3544_s30 = sshll.u32 %s4927_s13, 4  ;;  %s3545_s30 = int_to_ptr.vmem [resolvable:$true] %s3544_s30 }
 0x4a4   :  { %v3185_v6 = vadd.f32 %v3182_v63, %v3163_v25  ;;  %v3186_v21 = vadd.f32 %v3182_v63, %v3164_v40  ;;  %v3187_v16 = vadd.f32 %v3182_v63, %v3165_v46  ;;  %v3188_v30 = vadd.f32 %v3182_v63, %v3166_v2  ;;  %s4904_s15 = scalar_lea.vmem %s3545_s30, 2048  ;;  %p4909_p1 = scmp.lt.s32.totalorder %s3545_s30, %s3545_s30 }
 0x4a5   :  { %v3189_v34 = vadd.f32 %v3182_v63, %v3167_v13  ;;  %v3190_v39 = vadd.f32 %v3182_v63, %v3168_v17  ;;  %v3191_v53 = vadd.f32 %v3182_v63, %v3169_v14  ;;  %v3192_v45 = vadd.f32 %v3182_v63, %v3170_v12  ;;  %p4905_p0 = scmp.ne.s32.totalorder %s3545_s30, %s4904_s15  ;;  %p4910_p2 = scmp.lt.s32.totalorder %s4904_s15, %s4904_s15 }
 0x4a6   :  { %v3193_v23 = vadd.f32 %v3182_v63, %v3171_v56  ;;  %v3194_v59 = vadd.f32 %v3182_v63, %v3172_v4  ;;  %v3195_v15 = vadd.f32 %v3182_v63, %v3173_v42  ;;  %v3196_v62 = vadd.f32 %v3182_v63, %v3174_v10 }
 0x4a7   :  { %v3197_v38 = vadd.f32 %v3182_v63, %v3175_v19  ;;  %v3199_v0 = vadd.f32 %v3182_v63, %v3177_v33  ;;  %p4911_p3 = por %p4910_p2, %p4909_p1 }
 0x4a9   :  { %p4912_p4 = pnand %p4911_p3, %p4905_p0 }
 0x4ab   :  { %v4902_v50 = vpop.eup %4901 }
 0x4ac   :  { %v3444_v7 = vmul.f32 %v4902_v50, %v3377_v29 }
 0x4ae   :  { %v3445_v27 = vmul.f32 %v3444_v7, %v3437_v31  ;;  %v3451_v8 = vrot.slane %v3444_v7, %v7754_v18 }
 0x4b0   :  { %v3446_v26 = vsub.f32 %v3378_v58, %v3445_v27  ;;  %v3467_v60 = vmul.f32 %v3451_v8, %v7453_v3  ;;  %v3453_v51 = vmul.f32 %v3451_v8, %v7304_v43  ;;  %v3454_v28 = vmul.f32 %v7302_v35, %v3451_v8 }
 0x4b1   :  { %v3455_v5 = vmul.f32 %v3451_v8, %v7329_v48  ;;  %v3456_v49 = vmul.f32 %v7312_v57, %v3451_v8  ;;  %v3457_v31 = vmul.f32 %v3451_v8, %v7360_v47  ;;  %v3458_v32 = vmul.f32 %v7345_v22, %v3451_v8 }
 0x4b2   :  { %v3473_v24 = vrot.slane %v3446_v26, %v7754_v18  ;;  %v3459_v54 = vmul.f32 %v3451_v8, %v7390_v20  ;;  %v3460_v63 = vmul.f32 %v7375_v61, %v3451_v8  ;;  %v3461_v3 = vmul.f32 %v3451_v8, %v7424_v44 }
 0x4b3   :  { %v3462_v43 = vmul.f32 %v7418_v55, %v3451_v8  ;;  %v3463_v35 = vmul.f32 %v3451_v8, %v7433_v41  ;;  %v3464_v48 = vmul.f32 %v7429_v11, %v3451_v8  ;;  %v3465_v57 = vmul.f32 %v3451_v8, %v7443_v37 }
 0x4b4   :  { %v3489_v25 = vadd.f32 %v3473_v24, %v3467_v60  ;;  %v3466_v47 = vmul.f32 %v7439_v1, %v3451_v8  ;;  %v3468_v22 = vmul.f32 %v7449_v36, %v3451_v8  ;;  %v3475_v18 = vadd.f32 %v3473_v24, %v3453_v51 }
 0x4b5   :  { %v3476_v40 = vadd.f32 %v3473_v24, %v3454_v28  ;;  %v3477_v20 = vadd.f32 %v3473_v24, %v3455_v5  ;;  %v3478_v46 = vadd.f32 %v3473_v24, %v3456_v49  ;;  %v3479_v61 = vadd.f32 %v3473_v24, %v3457_v31 }
 0x4b6   :  { %v3505_v2 = vadd.f32 %v3489_v25, %v3198_v52  ;;  %v3480_v44 = vadd.f32 %v3473_v24, %v3458_v32  ;;  %v3481_v13 = vadd.f32 %v3473_v24, %v3459_v54  ;;  %v3482_v55 = vadd.f32 %v3473_v24, %v3460_v63 }
 0x4b7   :  { %v3483_v29 = vadd.f32 %v3473_v24, %v3461_v3  ;;  %v3484_v41 = vadd.f32 %v3473_v24, %v3462_v43  ;;  %v3485_v17 = vadd.f32 %v3473_v24, %v3463_v35  ;;  %v3486_v11 = vadd.f32 %v3473_v24, %v3464_v48 }
 0x4b8   :  { %v3521_v14 = vmax.f32 %v3505_v2, 0.0  ;;  %v3487_v37 = vadd.f32 %v3473_v24, %v3465_v57  ;;  %v3488_v12 = vadd.f32 %v3473_v24, %v3466_v47  ;;  %v3490_v56 = vadd.f32 %v3473_v24, %v3468_v22 }
 0x4b9   :  { %v3491_v1 = vadd.f32 %v3475_v18, %v3184_v9  ;;  %v3492_v4 = vadd.f32 %v3476_v40, %v3185_v6  ;;  %v3493_v36 = vadd.f32 %v3477_v20, %v3186_v21  ;;  %v3494_v42 = vadd.f32 %v3478_v46, %v3187_v16 }
 0x4ba   :  { %3537 = vst [vmem:[#allocation3 + $0x70] sm:$0xff] %v3521_v14  ;;  %v3495_v10 = vadd.f32 %v3479_v61, %v3188_v30  ;;  %v3496_v50 = vadd.f32 %v3480_v44, %v3189_v34  ;;  %v3497_v19 = vadd.f32 %v3481_v13, %v3190_v39  ;;  %v3498_v52 = vadd.f32 %v3482_v55, %v3191_v53 }
 0x4bb   :  { %v3499_v33 = vadd.f32 %v3483_v29, %v3192_v45  ;;  %v3500_v7 = vadd.f32 %v3484_v41, %v3193_v23  ;;  %v3501_v58 = vadd.f32 %v3485_v17, %v3194_v59  ;;  %v3502_v27 = vadd.f32 %v3486_v11, %v3195_v15 }
 0x4bc   :  { %v3503_v8 = vadd.f32 %v3487_v37, %v3196_v62  ;;  %v3504_v26 = vadd.f32 %v3488_v12, %v3197_v38  ;;  %v3506_v60 = vadd.f32 %v3490_v56, %v3199_v0  ;;  %v3507_v51 = vmax.f32 %v3491_v1, 0.0 }
 0x4bd   :  { %v3508_v28 = vmax.f32 %v3492_v4, 0.0  ;;  %v3509_v9 = vmax.f32 %v3493_v36, 0.0  ;;  %v3510_v6 = vmax.f32 %v3494_v42, 0.0  ;;  %v3511_v21 = vmax.f32 %v3495_v10, 0.0 }
 0x4be   :  { %v3512_v16 = vmax.f32 %v3496_v50, 0.0  ;;  %v3513_v5 = vmax.f32 %v3497_v19, 0.0  ;;  %v3514_v30 = vmax.f32 %v3498_v52, 0.0  ;;  %v3515_v34 = vmax.f32 %v3499_v33, 0.0  ;;  %3523 = vst [vmem:[#allocation3] sm:$0xff] %v3507_v51 }
 0x4bf   :  { %v3516_v39 = vmax.f32 %v3500_v7, 0.0  ;;  %v3517_v53 = vmax.f32 %v3501_v58, 0.0  ;;  %v3518_v45 = vmax.f32 %v3502_v27, 0.0  ;;  %v3519_v23 = vmax.f32 %v3503_v8, 0.0  ;;  %3524 = vst [vmem:[#allocation3 + $0x8] sm:$0xff] %v3508_v28  ;;  %3525 = vst [vmem:[#allocation3 + $0x10] sm:$0xff] %v3509_v9 }
 0x4c0   :  { %3526 = vst [vmem:[#allocation3 + $0x18] sm:$0xff] %v3510_v6  ;;  %3527 = vst [vmem:[#allocation3 + $0x20] sm:$0xff] %v3511_v21  ;;  %v3520_v59 = vmax.f32 %v3504_v26, 0.0  ;;  %v3522_v15 = vmax.f32 %v3506_v60, 0.0 }
 0x4c1   :  { %3528 = vst [vmem:[#allocation3 + $0x28] sm:$0xff] %v3512_v16  ;;  %3529 = vst [vmem:[#allocation3 + $0x30] sm:$0xff] %v3513_v5 }
 0x4c2   :  { %3530 = vst [vmem:[#allocation3 + $0x38] sm:$0xff] %v3514_v30  ;;  %3531 = vst [vmem:[#allocation3 + $0x40] sm:$0xff] %v3515_v34 }
 0x4c3   :  { %3532 = vst [vmem:[#allocation3 + $0x48] sm:$0xff] %v3516_v39  ;;  %3533 = vst [vmem:[#allocation3 + $0x50] sm:$0xff] %v3517_v53 }
 0x4c4   :  { %3534 = vst [vmem:[#allocation3 + $0x58] sm:$0xff] %v3518_v45  ;;  %3535 = vst [vmem:[#allocation3 + $0x60] sm:$0xff] %v3519_v23 }
 0x4c5   :  { %3536 = vst [vmem:[#allocation3 + $0x68] sm:$0xff] %v3520_v59  ;;  %3538 = vst [vmem:[#allocation3 + $0x78] sm:$0xff] %v3522_v15 }
 0x4c6   :  { %4915 = shalt.err (!%p4912_p4)
}
 0x4c7   :  { %s4928_s16 = smov 128   ;;  %s4929_s17 = smov 8  }
 0x4c8   :  { %3550 = dma.vmem_to_hbm [thread:$0]  %s3545_s30, 2048, %s7527_s14, [#allocation4], %s4928_s16, %s4928_s16, %s4929_s17  }
 0x4c9   :  { %4924 = dma.done.wait [#allocation4], 2048  }
 0x4ca   :  { %4925 = vsyncadd [#allocation4], 4294965248 }
 0x4cb   :  { %3554 = vsyncpa [#allocation4], 1 }

</bundles_post_ra>
